<compile_context>
chip_gen: v6e
topology: v6e:2x2x1
jax: 0.10.0
libtpu: 0.0.40
codegen_flags: <defaults>
</compile_context>

<pallas_src>
import math

import jax
import jax.numpy as jnp
import numpy as np
from jax.experimental import pallas as pl
from jax.experimental.pallas import tpu as pltpu

TE = 256     # edge rows per message-kernel grid step
TEA = 256    # edge rows per aggregation chunk
TN = 128     # node rows per aggregation/update grid step

COMPUTE_DTYPE = jnp.bfloat16                   # MXU input dtype; accumulation stays f32
BN_EVAL_SCALE = 1.0 / math.sqrt(1.0 + 1e-5)    # eval BatchNorm1d with default running stats
SENTINEL = np.int32(2 ** 30)                   # sorts after every real node id, matches nothing

_MSG_W_KEYS = ('wfi', 'wfe', 'wfj', 'bf', 'we2', 'be2',
               'wa1', 'ba1', 'wa2', 'ba2', 'g')
_AGG_W_KEYS = ('wu1n', 'wu1a', 'bu1', 'wu2', 'bu2')


def _round_up(x, m):
    return (x + m - 1) // m * m


# ----------------------------- kernels ------------------------------------------


def _make_message_kernel(h1, hc, inv_temp, apply_edge_relu, cdt):
    def kernel(xi_ref, ef_ref, xj_ref,
               wfi_ref, wfe_ref, wfj_ref, bf_ref, we2_ref, be2_ref,
               wa1_ref, ba1_ref, wa2_ref, ba2_ref, g_ref,
               val_ref, trip_ref, prob_ref):
        xi = xi_ref[...].astype(cdt)
        ef = ef_ref[...].astype(cdt)
        xj = xj_ref[...].astype(cdt)

        # one fused block-structured matmul per input row-block (no in-kernel concat):
        # output columns = [ nn_edge hidden | head-major (q|k) | head-major v ]
        fused = (jnp.dot(xi, wfi_ref[...], preferred_element_type=jnp.float32)
                 + jnp.dot(ef, wfe_ref[...], preferred_element_type=jnp.float32)
                 + jnp.dot(xj, wfj_ref[...], preferred_element_type=jnp.float32)
                 + bf_ref[...])

        # ---- triplet branch: Linear -> ReLU -> Linear ----
        h = jnp.maximum(fused[:, :h1], 0.0)
        trip = jnp.dot(h.astype(cdt), we2_ref[...],
                       preferred_element_type=jnp.float32) + be2_ref[...]
        if apply_edge_relu:
            trip = jnp.maximum(trip, 0.0)
        trip_ref[...] = trip

        # ---- FAN attention branch (per-head MLP via block-diagonal weights) ----
        qk = fused[:, h1:h1 + hc]
        v = fused[:, h1 + hc:]
        a1 = jnp.dot(qk.astype(cdt), wa1_ref[...],
                     preferred_element_type=jnp.float32) + ba1_ref[...]
        a1 = jnp.maximum(a1, 0.0)                      # eval-BN scale folded into wa1/ba1
        att = (jnp.dot(a1.astype(cdt), wa2_ref[...],
                       preferred_element_type=jnp.float32) + ba2_ref[...]) * inv_temp

        # per-head softmax over dep: columns are head-major so each head's logits are
        # lane-contiguous; the per-head sum is broadcast back with a block-diagonal
        # ones matmul (no strided slicing).  The shift uses the row-global max
        # (softmax is shift-invariant per head).
        m = jnp.max(att, axis=-1, keepdims=True)
        ex = jnp.exp(att - m)
        denom = jnp.dot(ex, g_ref[...], preferred_element_type=jnp.float32)
        prob = ex / denom
        prob_ref[...] = prob
        val_ref[...] = prob * v

    return kernel


def _make_agg_kernel(n_chunks, tn, tea, apply_node_relu, cdt):
    def kernel(lo_ref, nact_ref,
               val_ref, idxc_ref, idxr_ref, xo_ref,
               wu1n_ref, wu1a_ref, bu1_ref, wu2_ref, bu2_ref,
               out_ref, acc_ref, cnt_ref):
        i = pl.program_id(0)
        r = pl.program_id(1)

        @pl.when(r == 0)
        def _init():
            acc_ref[...] = jnp.full(acc_ref.shape, -jnp.inf, acc_ref.dtype)
            cnt_ref[...] = jnp.zeros(cnt_ref.shape, cnt_ref.dtype)

        # edges are sorted by target node, so this node tile only touches a contiguous
        # range of edge chunks -> total work is O(E), not O(N * E).
        @pl.when(r < nact_ref[i])
        def _accumulate():
            val = val_ref[...]                  # [tea, Da] f32, sorted by target node
            idc = idxc_ref[...]                 # [tea, 1]  i32 sorted target ids
            idr = idxr_ref[...][0:1, :]         # [1, tea]  same ids, lane layout

            # segmented inclusive prefix-max scan along the (sorted) edge axis
            s = val
            shift = 1
            while shift < tea:
                sv = jnp.concatenate(
                    [jnp.full((shift, s.shape[1]), -jnp.inf, s.dtype),
                     s[:-shift, :]], axis=0)
                si = jnp.concatenate(
                    [jnp.full((shift, 1), -1, idc.dtype), idc[:-shift, :]], axis=0)
                s = jnp.maximum(s, jnp.where(si == idc, sv, -jnp.inf))
                shift *= 2

            # per node, pick the last row of its run (= chunk-local segment max) with a
            # one-hot MXU matmul -- no per-node scan loop, no row concats.
            nxt = jnp.concatenate(
                [idr[:, 1:], jnp.full((1, 1), -1, idr.dtype)], axis=1)
            is_last = nxt != idr                                        # [1, tea]
            node_id = jax.lax.broadcasted_iota(jnp.int32, (tn, tea), 0) + i * tn
            onehot = jnp.logical_and(idr == node_id, is_last).astype(jnp.float32)
            sel = jnp.dot(onehot, s, preferred_element_type=jnp.float32)   # [tn, Da]
            present = jnp.sum(onehot, axis=1, keepdims=True)               # [tn, 1]
            acc_ref[...] = jnp.maximum(
                acc_ref[...], jnp.where(present > 0.0, sel, -jnp.inf))
            cnt_ref[...] = cnt_ref[...] + present

        @pl.when(r == n_chunks - 1)
        def _finalize():
            agg = jnp.where(cnt_ref[...] > 0.0, acc_ref[...], 0.0)  # empty nodes -> 0
            # update_node: split-accumulated Linear -> ReLU -> Linear (no concat)
            h = (jnp.dot(xo_ref[...].astype(cdt), wu1n_ref[...],
                         preferred_element_type=jnp.float32)
                 + jnp.dot(agg.astype(cdt), wu1a_ref[...],
                           preferred_element_type=jnp.float32)
                 + bu1_ref[...])
            h = jnp.maximum(h, 0.0)
            out = jnp.dot(h.astype(cdt), wu2_ref[...],
                          preferred_element_type=jnp.float32) + bu2_ref[...]
            if apply_node_relu:
                out = jnp.maximum(out, 0.0)
            out_ref[...] = out

    return kernel


# ----------------------------- wrapper ------------------------------------------


def prepare_edge_structure(edge_index, num_nodes):
    """Sort edges by aggregation target once; shared by all layers."""
    src = edge_index[0].astype(jnp.int32)   # flow='target_to_source': i / aggregation index
    dst = edge_index[1].astype(jnp.int32)   # j
    E = int(edge_index.shape[1])
    Np = _round_up(num_nodes, TN)
    Ep = _round_up(E, TEA)
    n_node_tiles = Np // TN

    order = jnp.argsort(src)
    sorted_idx = src[order]
    sorted_idx_p = jnp.concatenate(
        [sorted_idx, jnp.full((Ep - E,), SENTINEL, jnp.int32)])
    idx_col = sorted_idx_p.reshape(Ep, 1)
    idx_row = jnp.broadcast_to(sorted_idx_p[None, :], (8, Ep))  # lane layout copy

    bounds = jnp.arange(n_node_tiles + 1, dtype=jnp.int32) * TN
    pos = jnp.searchsorted(sorted_idx, bounds, side='left').astype(jnp.int32)
    first, end = pos[:-1], pos[1:]
    lo = (first // TEA).astype(jnp.int32)
    nact = jnp.where(end > first, (end + TEA - 1) // TEA - lo, 0).astype(jnp.int32)

    return dict(src=src, dst=dst, order=order, idx_col=idx_col, idx_row=idx_row,
                lo=lo, nact=nact, E=E, Ep=Ep, Np=Np,
                n_node_tiles=n_node_tiles, n_chunks=Ep // TEA)


def msg_fan_layer(w, x, edge_feat, est, dims, apply_relu):
    dim_node, dim_edge, dim_atten, num_heads = dims
    dep = dim_edge // num_heads
    h1 = dim_node + dim_edge
    hc = dim_node + dim_edge
    hd = dim_edge
    inv_temp = 1.0 / math.sqrt(dep)
    N = x.shape[0]
    E, Ep, Np = est['E'], est['Ep'], est['Np']

    # per-edge endpoint gathers (XLA glue)
    xi = x[est['src']]
    xj = x[est['dst']]

    Em = _round_up(E, TE)
    pe = Em - E
    xi_p = jnp.pad(xi, ((0, pe), (0, 0)))
    xj_p = jnp.pad(xj, ((0, pe), (0, 0)))
    ef_p = jnp.pad(edge_feat, ((0, pe), (0, 0)))

    tile = lambda i: (i, 0)
    full = lambda i: (0, 0)

    msg_kernel = _make_message_kernel(h1, hc, inv_temp, apply_relu, COMPUTE_DTYPE)
    value_p, trip_p, prob_p = pl.pallas_call(
        msg_kernel,
        out_shape=(jax.ShapeDtypeStruct((Em, dim_atten), jnp.float32),
                   jax.ShapeDtypeStruct((Em, dim_edge), jnp.float32),
                   jax.ShapeDtypeStruct((Em, hd), jnp.float32)),
        grid_spec=pltpu.PrefetchScalarGridSpec(
            num_scalar_prefetch=0,
            grid=(Em // TE,),
            in_specs=[pl.BlockSpec((TE, dim_node), tile),
                      pl.BlockSpec((TE, dim_edge), tile),
                      pl.BlockSpec((TE, dim_node), tile)]
                     + [pl.BlockSpec(w[k].shape, full) for k in _MSG_W_KEYS],
            out_specs=[pl.BlockSpec((TE, dim_atten), tile),
                       pl.BlockSpec((TE, dim_edge), tile),
                       pl.BlockSpec((TE, hd), tile)]),
        compiler_params=pltpu.CompilerParams(dimension_semantics=("parallel",)),
    )(xi_p, ef_p, xj_p, *[w[k] for k in _MSG_W_KEYS])

    value = value_p[:E]
    edge_out = trip_p[:E]
    prob_hm = prob_p[:E]

    # reorder per-edge values into the (precomputed) sorted-by-target order
    value_sorted = jnp.pad(value[est['order']], ((0, Ep - E), (0, 0)))
    x_p = jnp.pad(x, ((0, Np - N), (0, 0)))

    n_nt, n_ch = est['n_node_tiles'], est['n_chunks']

    def chunk_map(i, r, lo_ref, nact_ref):
        step = jnp.minimum(r, jnp.maximum(nact_ref[i] - 1, 0))
        return (jnp.clip(lo_ref[i] + step, 0, n_ch - 1), 0)

    def chunk_map_row(i, r, lo_ref, nact_ref):
        step = jnp.minimum(r, jnp.maximum(nact_ref[i] - 1, 0))
        return (0, jnp.clip(lo_ref[i] + step, 0, n_ch - 1))

    node_map = lambda i, r, lo_ref, nact_ref: (i, 0)
    w_map = lambda i, r, lo_ref, nact_ref: (0, 0)

    agg_kernel = _make_agg_kernel(n_ch, TN, TEA, apply_relu, COMPUTE_DTYPE)
    node_out_p = pl.pallas_call(
        agg_kernel,
        out_shape=jax.ShapeDtypeStruct((Np, dim_node), jnp.float32),
        grid_spec=pltpu.PrefetchScalarGridSpec(
            num_scalar_prefetch=2,
            grid=(n_nt, n_ch),
            in_specs=[pl.BlockSpec((TEA, dim_atten), chunk_map),
                      pl.BlockSpec((TEA, 1), chunk_map),
                      pl.BlockSpec((8, TEA), chunk_map_row),
                      pl.BlockSpec((TN, dim_node), node_map)]
                     + [pl.BlockSpec(w[k].shape, w_map) for k in _AGG_W_KEYS],
            out_specs=pl.BlockSpec((TN, dim_node), node_map),
            scratch_shapes=[pltpu.VMEM((TN, dim_atten), jnp.float32),
                            pltpu.VMEM((TN, 1), jnp.float32)]),
        compiler_params=pltpu.CompilerParams(
            dimension_semantics=("parallel", "arbitrary")),
    )(est['lo'], est['nact'], value_sorted, est['idx_col'], est['idx_row'],
      x_p, *[w[k] for k in _AGG_W_KEYS])

    node_out = node_out_p[:N]
    # head-major flat prob -> torch layout [E, dep, num_heads]
    prob = prob_hm.reshape(E, num_heads, dep).transpose(0, 2, 1)
    return node_out, edge_out, prob


def graph_edge_atten_network(layer_params, node_x, edge_x, edge_index, dims):
    num_layers = len(layer_params)
    est = prepare_edge_structure(edge_index, node_x.shape[0])
    nf, ef = node_x, edge_x
    probs = []
    for li, w in enumerate(layer_params):
        # outer-module ReLU (and eval-mode dropout = identity) folded into the kernels
        apply_relu = (li < num_layers - 1) or (num_layers == 1)
        nf, ef, prob = msg_fan_layer(w, nf, ef, est, dims, apply_relu)
        probs.append(prob)
    return nf, ef, probs


# ----------------------------- parameters ---------------------------------------


def init_layer_params(key, dim_node, dim_edge, dim_atten, num_heads):
    """Random parameters in the PyTorch layout (Linear weights already [in, out])."""
    dnp = dim_node // num_heads
    dep = dim_edge // num_heads
    C = dnp + dep
    h1 = dim_node + dim_edge
    h2 = dim_node + dim_atten
    ks = jax.random.split(key, 11)

    def lin(k, din, dout, scale=0.1):
        kw, kb = jax.random.split(k)
        return (jax.random.normal(kw, (din, dout), jnp.float32) * scale,
                jax.random.normal(kb, (dout,), jnp.float32) * scale)

    raw = {}
    raw['we1'], raw['be1'] = lin(ks[0], 2 * dim_node + dim_edge, h1)
    raw['we2'], raw['be2'] = lin(ks[1], h1, dim_edge)
    raw['wq'], raw['bq'] = lin(ks[2], dim_node, dim_node)
    raw['wk'], raw['bk'] = lin(ks[3], dim_edge, dim_edge)
    raw['wv'], raw['bv'] = lin(ks[4], dim_node, dim_atten)
    raw['a1_w'] = jax.random.normal(ks[5], (C, C), jnp.float32) * 0.1
    raw['a1_b'] = jax.random.normal(ks[6], (C,), jnp.float32) * 0.1
    raw['a2_w'] = jax.random.normal(ks[7], (dep, C), jnp.float32) * 0.1
    raw['a2_b'] = jax.random.normal(ks[8], (dep,), jnp.float32) * 0.1
    raw['wu1'], raw['bu1'] = lin(ks[9], dim_node + dim_atten, h2)
    raw['wu2'], raw['bu2'] = lin(ks[10], h2, dim_node)
    return raw


def prepare_layer_params(raw, dims, cdt=COMPUTE_DTYPE):
    """Fuse / permute the PyTorch-layout weights into the kernel layout."""
    dim_node, dim_edge, dim_atten, H = dims
    assert dim_atten == dim_edge, "prob.reshape_as(v) requires dim_atten == dim_edge"
    dnp, dep, dvp = dim_node // H, dim_edge // H, dim_atten // H
    C = dnp + dep
    h1 = dim_node + dim_edge
    hc = H * C
    F = h1 + hc + dim_atten

    def hm_perm(d):   # head-major column j = h*d + c  <-  torch column c*H + h
        j = np.arange(H * d)
        return (j % d) * H + (j // d)

    perm_v = hm_perm(dvp)
    hq = np.repeat(np.arange(H), dnp)
    cq = np.tile(np.arange(dnp), H)
    q_pos, q_src = hq * C + cq, cq * H + hq
    hk = np.repeat(np.arange(H), dep)
    ck = np.tile(np.arange(dep), H)
    k_pos, k_src = hk * C + dnp + ck, ck * H + hk

    wfi = jnp.zeros((dim_node, F), jnp.float32)
    wfi = wfi.at[:, :h1].set(raw['we1'][:dim_node])
    wfi = wfi.at[:, h1 + q_pos].set(raw['wq'][:, q_src])
    wfe = jnp.zeros((dim_edge, F), jnp.float32)
    wfe = wfe.at[:, :h1].set(raw['we1'][dim_node:dim_node + dim_edge])
    wfe = wfe.at[:, h1 + k_pos].set(raw['wk'][:, k_src])
    wfj = jnp.zeros((dim_node, F), jnp.float32)
    wfj = wfj.at[:, :h1].set(raw['we1'][dim_node + dim_edge:])
    wfj = wfj.at[:, h1 + hc:].set(raw['wv'][:, perm_v])

    bf = jnp.zeros((F,), jnp.float32)
    bf = bf.at[:h1].set(raw['be1'])
    bf = bf.at[h1 + q_pos].set(raw['bq'][q_src])
    bf = bf.at[h1 + k_pos].set(raw['bk'][k_src])
    bf = bf.at[h1 + hc:].set(raw['bv'][perm_v])

    eye = jnp.eye(H, dtype=jnp.float32)
    # TODO(synk): eval BatchNorm folded assuming default running stats (mean=0, var=1,
    #             affine identity); rebuild scale/shift from trained stats when importing.
    wa1 = jnp.kron(eye, raw['a1_w'].T) * BN_EVAL_SCALE
    ba1 = jnp.tile(raw['a1_b'], H) * BN_EVAL_SCALE
    wa2 = jnp.kron(eye, raw['a2_w'].T)
    ba2 = jnp.tile(raw['a2_b'], H)
    g = jnp.kron(eye, jnp.ones((dep, dep), jnp.float32))   # per-head sum broadcast

    return {
        'wfi': wfi.astype(cdt), 'wfe': wfe.astype(cdt), 'wfj': wfj.astype(cdt),
        'bf': bf.reshape(1, F),
        'we2': raw['we2'].astype(cdt), 'be2': raw['be2'].reshape(1, -1),
        'wa1': wa1.astype(cdt), 'ba1': ba1.reshape(1, -1),
        'wa2': wa2.astype(cdt), 'ba2': ba2.reshape(1, -1),
        'g': g,
        'wu1n': raw['wu1'][:dim_node].astype(cdt),
        'wu1a': raw['wu1'][dim_node:][perm_v].astype(cdt),
        'bu1': raw['bu1'].reshape(1, -1),
        'wu2': raw['wu2'].astype(cdt),
        'bu2': raw['bu2'].reshape(1, -1),
    }


# ----------------------------- demo ---------------------------------------------


if __name__ == "__main__":
    dim_node = dim_edge = dim_atten = 32   # reshape_as requires dim_edge == dim_atten
    num_heads = 4
    num_layers = 2
    N, E = 8, 16
    dims = (dim_node, dim_edge, dim_atten, num_heads)

    key = jax.random.PRNGKey(0)
    k1, k2, k3, kp = jax.random.split(key, 4)
    node_x = jax.random.normal(k1, (N, dim_node), jnp.float32)
    edge_x = jax.random.normal(k2, (E, dim_edge), jnp.float32)
    edge_index = jax.random.randint(k3, (2, E), 0, N, dtype=jnp.int32)

    raws = [init_layer_params(k, dim_node, dim_edge, dim_atten, num_heads)
            for k in jax.random.split(kp, num_layers)]
    params = [prepare_layer_params(r, dims) for r in raws]

    nf, ef, probs = graph_edge_atten_network(params, node_x, edge_x, edge_index, dims)
    jax.block_until_ready((nf, ef, probs))

    dep = dim_edge // num_heads
    assert nf.shape == (N, dim_node)
    assert ef.shape == (E, dim_edge)
    assert len(probs) == num_layers and probs[0].shape == (E, dep, num_heads)
    assert bool(jnp.all(jnp.isfinite(nf))) and bool(jnp.all(jnp.isfinite(ef)))
    print("KERNEL_OK")
</pallas_src>

<mosaic_0001>
module attributes {stable_mosaic.version = 11 : i64} {
  func.func @kernel(%arg0: i32, %arg1: memref<256x32xf32, #tpu.memory_space<vmem>>, %arg2: memref<256x32xf32, #tpu.memory_space<vmem>>, %arg3: memref<256x32xf32, #tpu.memory_space<vmem>>, %arg4: memref<32x160xbf16, #tpu.memory_space<vmem>>, %arg5: memref<32x160xbf16, #tpu.memory_space<vmem>>, %arg6: memref<32x160xbf16, #tpu.memory_space<vmem>>, %arg7: memref<1x160xf32, #tpu.memory_space<vmem>>, %arg8: memref<64x32xbf16, #tpu.memory_space<vmem>>, %arg9: memref<1x32xf32, #tpu.memory_space<vmem>>, %arg10: memref<64x64xbf16, #tpu.memory_space<vmem>>, %arg11: memref<1x64xf32, #tpu.memory_space<vmem>>, %arg12: memref<64x32xbf16, #tpu.memory_space<vmem>>, %arg13: memref<1x32xf32, #tpu.memory_space<vmem>>, %arg14: memref<32x32xf32, #tpu.memory_space<vmem>>, %arg15: memref<256x32xf32, #tpu.memory_space<vmem>>, %arg16: memref<256x32xf32, #tpu.memory_space<vmem>>, %arg17: memref<256x32xf32, #tpu.memory_space<vmem>>) attributes {dimension_semantics = [#tpu.dimension_semantics<parallel>], iteration_bounds = array<i64: 1>, scalar_prefetch = 0 : i64, scratch_operands = 0 : i64, tpu.core_type = #tpu.core_type<tc>, window_params = [{transform_indices = @transform_0, window_bounds = array<i64: 256, 32>}, {transform_indices = @transform_1, window_bounds = array<i64: 256, 32>}, {transform_indices = @transform_2, window_bounds = array<i64: 256, 32>}, {pipeline_mode = #tpu.pipeline_mode<synchronous>, transform_indices = @transform_3, window_bounds = array<i64: 32, 160>}, {pipeline_mode = #tpu.pipeline_mode<synchronous>, transform_indices = @transform_4, window_bounds = array<i64: 32, 160>}, {pipeline_mode = #tpu.pipeline_mode<synchronous>, transform_indices = @transform_5, window_bounds = array<i64: 32, 160>}, {pipeline_mode = #tpu.pipeline_mode<synchronous>, transform_indices = @transform_6, window_bounds = array<i64: 1, 160>}, {pipeline_mode = #tpu.pipeline_mode<synchronous>, transform_indices = @transform_7, window_bounds = array<i64: 64, 32>}, {pipeline_mode = #tpu.pipeline_mode<synchronous>, transform_indices = @transform_8, window_bounds = array<i64: 1, 32>}, {pipeline_mode = #tpu.pipeline_mode<synchronous>, transform_indices = @transform_9, window_bounds = array<i64: 64, 64>}, {pipeline_mode = #tpu.pipeline_mode<synchronous>, transform_indices = @transform_10, window_bounds = array<i64: 1, 64>}, {pipeline_mode = #tpu.pipeline_mode<synchronous>, transform_indices = @transform_11, window_bounds = array<i64: 64, 32>}, {pipeline_mode = #tpu.pipeline_mode<synchronous>, transform_indices = @transform_12, window_bounds = array<i64: 1, 32>}, {pipeline_mode = #tpu.pipeline_mode<synchronous>, transform_indices = @transform_13, window_bounds = array<i64: 32, 32>}, {transform_indices = @transform_14, window_bounds = array<i64: 256, 32>}, {transform_indices = @transform_15, window_bounds = array<i64: 256, 32>}, {transform_indices = @transform_16, window_bounds = array<i64: 256, 32>}]} {
    %c0 = arith.constant 0 : index
    %c0_0 = arith.constant 0 : index
    %0 = vector.load %arg1[%c0, %c0_0] : memref<256x32xf32, #tpu.memory_space<vmem>>, vector<256x32xf32>
    %1 = arith.truncf %0 : vector<256x32xf32> to vector<256x32xbf16>
    %c0_1 = arith.constant 0 : index
    %c0_2 = arith.constant 0 : index
    %2 = vector.load %arg2[%c0_1, %c0_2] : memref<256x32xf32, #tpu.memory_space<vmem>>, vector<256x32xf32>
    %3 = arith.truncf %2 : vector<256x32xf32> to vector<256x32xbf16>
    %c0_3 = arith.constant 0 : index
    %c0_4 = arith.constant 0 : index
    %4 = vector.load %arg3[%c0_3, %c0_4] : memref<256x32xf32, #tpu.memory_space<vmem>>, vector<256x32xf32>
    %5 = arith.truncf %4 : vector<256x32xf32> to vector<256x32xbf16>
    %c0_5 = arith.constant 0 : index
    %c0_6 = arith.constant 0 : index
    %6 = vector.load %arg4[%c0_5, %c0_6] : memref<32x160xbf16, #tpu.memory_space<vmem>>, vector<32x160xbf16>
    %cst = arith.constant dense<0.000000e+00> : vector<256x160xf32>
    %7 = tpu.matmul %1, %6, %cst {dimension_numbers = #tpu.dot_dimension_numbers<[1], [0], [0], [1], [0, 0, 1, 1], [], []>} : vector<256x32xbf16>, vector<32x160xbf16>, vector<256x160xf32> -> vector<256x160xf32>
    %c0_7 = arith.constant 0 : index
    %c0_8 = arith.constant 0 : index
    %8 = vector.load %arg5[%c0_7, %c0_8] : memref<32x160xbf16, #tpu.memory_space<vmem>>, vector<32x160xbf16>
    %cst_9 = arith.constant dense<0.000000e+00> : vector<256x160xf32>
    %9 = tpu.matmul %3, %8, %cst_9 {dimension_numbers = #tpu.dot_dimension_numbers<[1], [0], [0], [1], [0, 0, 1, 1], [], []>} : vector<256x32xbf16>, vector<32x160xbf16>, vector<256x160xf32> -> vector<256x160xf32>
    %10 = arith.addf %7, %9 : vector<256x160xf32>
    %c0_10 = arith.constant 0 : index
    %c0_11 = arith.constant 0 : index
    %11 = vector.load %arg6[%c0_10, %c0_11] : memref<32x160xbf16, #tpu.memory_space<vmem>>, vector<32x160xbf16>
    %cst_12 = arith.constant dense<0.000000e+00> : vector<256x160xf32>
    %12 = tpu.matmul %5, %11, %cst_12 {dimension_numbers = #tpu.dot_dimension_numbers<[1], [0], [0], [1], [0, 0, 1, 1], [], []>} : vector<256x32xbf16>, vector<32x160xbf16>, vector<256x160xf32> -> vector<256x160xf32>
    %13 = arith.addf %10, %12 : vector<256x160xf32>
    %c0_13 = arith.constant 0 : index
    %c0_14 = arith.constant 0 : index
    %14 = vector.load %arg7[%c0_13, %c0_14] : memref<1x160xf32, #tpu.memory_space<vmem>>, vector<1x160xf32>
    %15 = vector.broadcast %14 : vector<1x160xf32> to vector<256x160xf32>
    %16 = arith.addf %13, %15 : vector<256x160xf32>
    %17 = vector.extract_strided_slice %16 {offsets = [0, 0], sizes = [256, 64], strides = [1, 1]} : vector<256x160xf32> to vector<256x64xf32>
    %cst_15 = arith.constant 0.000000e+00 : f32
    %18 = vector.broadcast %cst_15 : f32 to vector<256x64xf32>
    %19 = arith.maximumf %17, %18 : vector<256x64xf32>
    %20 = arith.truncf %19 : vector<256x64xf32> to vector<256x64xbf16>
    %c0_16 = arith.constant 0 : index
    %c0_17 = arith.constant 0 : index
    %21 = vector.load %arg8[%c0_16, %c0_17] : memref<64x32xbf16, #tpu.memory_space<vmem>>, vector<64x32xbf16>
    %cst_18 = arith.constant dense<0.000000e+00> : vector<256x32xf32>
    %22 = tpu.matmul %20, %21, %cst_18 {dimension_numbers = #tpu.dot_dimension_numbers<[1], [0], [0], [1], [0, 0, 1, 1], [], []>} : vector<256x64xbf16>, vector<64x32xbf16>, vector<256x32xf32> -> vector<256x32xf32>
    %c0_19 = arith.constant 0 : index
    %c0_20 = arith.constant 0 : index
    %23 = vector.load %arg9[%c0_19, %c0_20] : memref<1x32xf32, #tpu.memory_space<vmem>>, vector<1x32xf32>
    %24 = vector.broadcast %23 : vector<1x32xf32> to vector<256x32xf32>
    %25 = arith.addf %22, %24 : vector<256x32xf32>
    %cst_21 = arith.constant 0.000000e+00 : f32
    %26 = vector.broadcast %cst_21 : f32 to vector<256x32xf32>
    %27 = arith.maximumf %25, %26 : vector<256x32xf32>
    %c0_22 = arith.constant 0 : index
    %c0_23 = arith.constant 0 : index
    %28 = vector.load %arg16[%c0_22, %c0_23] : memref<256x32xf32, #tpu.memory_space<vmem>>, vector<256x32xf32>
    tpu.vector_store %arg16[%c0_22, %c0_23], %27 {strides = array<i32>} : memref<256x32xf32, #tpu.memory_space<vmem>>, vector<256x32xf32>,
    %29 = vector.extract_strided_slice %16 {offsets = [0, 64], sizes = [256, 64], strides = [1, 1]} : vector<256x160xf32> to vector<256x64xf32>
    %30 = vector.extract_strided_slice %16 {offsets = [0, 128], sizes = [256, 32], strides = [1, 1]} : vector<256x160xf32> to vector<256x32xf32>
    %31 = arith.truncf %29 : vector<256x64xf32> to vector<256x64xbf16>
    %c0_24 = arith.constant 0 : index
    %c0_25 = arith.constant 0 : index
    %32 = vector.load %arg10[%c0_24, %c0_25] : memref<64x64xbf16, #tpu.memory_space<vmem>>, vector<64x64xbf16>
    %cst_26 = arith.constant dense<0.000000e+00> : vector<256x64xf32>
    %33 = tpu.matmul %31, %32, %cst_26 {dimension_numbers = #tpu.dot_dimension_numbers<[1], [0], [0], [1], [0, 0, 1, 1], [], []>} : vector<256x64xbf16>, vector<64x64xbf16>, vector<256x64xf32> -> vector<256x64xf32>
    %c0_27 = arith.constant 0 : index
    %c0_28 = arith.constant 0 : index
    %34 = vector.load %arg11[%c0_27, %c0_28] : memref<1x64xf32, #tpu.memory_space<vmem>>, vector<1x64xf32>
    %35 = vector.broadcast %34 : vector<1x64xf32> to vector<256x64xf32>
    %36 = arith.addf %33, %35 : vector<256x64xf32>
    %cst_29 = arith.constant 0.000000e+00 : f32
    %37 = vector.broadcast %cst_29 : f32 to vector<256x64xf32>
    %38 = arith.maximumf %36, %37 : vector<256x64xf32>
    %39 = arith.truncf %38 : vector<256x64xf32> to vector<256x64xbf16>
    %c0_30 = arith.constant 0 : index
    %c0_31 = arith.constant 0 : index
    %40 = vector.load %arg12[%c0_30, %c0_31] : memref<64x32xbf16, #tpu.memory_space<vmem>>, vector<64x32xbf16>
    %cst_32 = arith.constant dense<0.000000e+00> : vector<256x32xf32>
    %41 = tpu.matmul %39, %40, %cst_32 {dimension_numbers = #tpu.dot_dimension_numbers<[1], [0], [0], [1], [0, 0, 1, 1], [], []>} : vector<256x64xbf16>, vector<64x32xbf16>, vector<256x32xf32> -> vector<256x32xf32>
    %c0_33 = arith.constant 0 : index
    %c0_34 = arith.constant 0 : index
    %42 = vector.load %arg13[%c0_33, %c0_34] : memref<1x32xf32, #tpu.memory_space<vmem>>, vector<1x32xf32>
    %43 = vector.broadcast %42 : vector<1x32xf32> to vector<256x32xf32>
    %44 = arith.addf %41, %43 : vector<256x32xf32>
    %cst_35 = arith.constant 0.353553385 : f32
    %45 = vector.broadcast %cst_35 : f32 to vector<256x32xf32>
    %46 = arith.mulf %44, %45 : vector<256x32xf32>
    %cst_36 = arith.constant dense<0xFF800000> : vector<256xf32>
    %47 = vector.multi_reduction <maximumf>, %46, %cst_36 [1] : vector<256x32xf32> to vector<256xf32>
    %48 = vector.shape_cast %47 : vector<256xf32> to vector<256x1xf32>
    %49 = vector.broadcast %48 : vector<256x1xf32> to vector<256x32xf32>
    %50 = arith.subf %46, %49 : vector<256x32xf32>
    %51 = math.exp %50 : vector<256x32xf32>
    %c0_37 = arith.constant 0 : index
    %c0_38 = arith.constant 0 : index
    %52 = vector.load %arg14[%c0_37, %c0_38] : memref<32x32xf32, #tpu.memory_space<vmem>>, vector<32x32xf32>
    %cst_39 = arith.constant dense<0.000000e+00> : vector<256x32xf32>
    %53 = tpu.matmul %51, %52, %cst_39 {dimension_numbers = #tpu.dot_dimension_numbers<[1], [0], [0], [1], [0, 0, 1, 1], [], []>} : vector<256x32xf32>, vector<32x32xf32>, vector<256x32xf32> -> vector<256x32xf32>
    %54 = arith.divf %51, %53 : vector<256x32xf32>
    %c0_40 = arith.constant 0 : index
    %c0_41 = arith.constant 0 : index
    %55 = vector.load %arg17[%c0_40, %c0_41] : memref<256x32xf32, #tpu.memory_space<vmem>>, vector<256x32xf32>
    tpu.vector_store %arg17[%c0_40, %c0_41], %54 {strides = array<i32>} : memref<256x32xf32, #tpu.memory_space<vmem>>, vector<256x32xf32>,
    %56 = arith.mulf %54, %30 : vector<256x32xf32>
    %c0_42 = arith.constant 0 : index
    %c0_43 = arith.constant 0 : index
    %57 = vector.load %arg15[%c0_42, %c0_43] : memref<256x32xf32, #tpu.memory_space<vmem>>, vector<256x32xf32>
    tpu.vector_store %arg15[%c0_42, %c0_43], %56 {strides = array<i32>} : memref<256x32xf32, #tpu.memory_space<vmem>>, vector<256x32xf32>,
    return
  }
  func.func @transform_0(%arg0: i32) -> (i32, i32) {
    %c0_i32 = arith.constant 0 : i32
    %c0_i32_0 = arith.constant 0 : i32
    return %arg0, %c0_i32 : i32, i32
  }
  func.func @transform_1(%arg0: i32) -> (i32, i32) {
    %c0_i32 = arith.constant 0 : i32
    %c0_i32_0 = arith.constant 0 : i32
    return %arg0, %c0_i32 : i32, i32
  }
  func.func @transform_2(%arg0: i32) -> (i32, i32) {
    %c0_i32 = arith.constant 0 : i32
    %c0_i32_0 = arith.constant 0 : i32
    return %arg0, %c0_i32 : i32, i32
  }
  func.func @transform_3(%arg0: i32) -> (i32, i32) {
    %c0_i32 = arith.constant 0 : i32
    %c0_i32_0 = arith.constant 0 : i32
    %c0_i32_1 = arith.constant 0 : i32
    return %c0_i32, %c0_i32_0 : i32, i32
  }
  func.func @transform_4(%arg0: i32) -> (i32, i32) {
    %c0_i32 = arith.constant 0 : i32
    %c0_i32_0 = arith.constant 0 : i32
    %c0_i32_1 = arith.constant 0 : i32
    return %c0_i32, %c0_i32_0 : i32, i32
  }
  func.func @transform_5(%arg0: i32) -> (i32, i32) {
    %c0_i32 = arith.constant 0 : i32
    %c0_i32_0 = arith.constant 0 : i32
    %c0_i32_1 = arith.constant 0 : i32
    return %c0_i32, %c0_i32_0 : i32, i32
  }
  func.func @transform_6(%arg0: i32) -> (i32, i32) {
    %c0_i32 = arith.constant 0 : i32
    %c0_i32_0 = arith.constant 0 : i32
    %c0_i32_1 = arith.constant 0 : i32
    return %c0_i32, %c0_i32_0 : i32, i32
  }
  func.func @transform_7(%arg0: i32) -> (i32, i32) {
    %c0_i32 = arith.constant 0 : i32
    %c0_i32_0 = arith.constant 0 : i32
    %c0_i32_1 = arith.constant 0 : i32
    return %c0_i32, %c0_i32_0 : i32, i32
  }
  func.func @transform_8(%arg0: i32) -> (i32, i32) {
    %c0_i32 = arith.constant 0 : i32
    %c0_i32_0 = arith.constant 0 : i32
    %c0_i32_1 = arith.constant 0 : i32
    return %c0_i32, %c0_i32_0 : i32, i32
  }
  func.func @transform_9(%arg0: i32) -> (i32, i32) {
    %c0_i32 = arith.constant 0 : i32
    %c0_i32_0 = arith.constant 0 : i32
    %c0_i32_1 = arith.constant 0 : i32
    return %c0_i32, %c0_i32_0 : i32, i32
  }
  func.func @transform_10(%arg0: i32) -> (i32, i32) {
    %c0_i32 = arith.constant 0 : i32
    %c0_i32_0 = arith.constant 0 : i32
    %c0_i32_1 = arith.constant 0 : i32
    return %c0_i32, %c0_i32_0 : i32, i32
  }
  func.func @transform_11(%arg0: i32) -> (i32, i32) {
    %c0_i32 = arith.constant 0 : i32
    %c0_i32_0 = arith.constant 0 : i32
    %c0_i32_1 = arith.constant 0 : i32
    return %c0_i32, %c0_i32_0 : i32, i32
  }
  func.func @transform_12(%arg0: i32) -> (i32, i32) {
    %c0_i32 = arith.constant 0 : i32
    %c0_i32_0 = arith.constant 0 : i32
    %c0_i32_1 = arith.constant 0 : i32
    return %c0_i32, %c0_i32_0 : i32, i32
  }
  func.func @transform_13(%arg0: i32) -> (i32, i32) {
    %c0_i32 = arith.constant 0 : i32
    %c0_i32_0 = arith.constant 0 : i32
    %c0_i32_1 = arith.constant 0 : i32
    return %c0_i32, %c0_i32_0 : i32, i32
  }
  func.func @transform_14(%arg0: i32) -> (i32, i32) {
    %c0_i32 = arith.constant 0 : i32
    %c0_i32_0 = arith.constant 0 : i32
    return %arg0, %c0_i32 : i32, i32
  }
  func.func @transform_15(%arg0: i32) -> (i32, i32) {
    %c0_i32 = arith.constant 0 : i32
    %c0_i32_0 = arith.constant 0 : i32
    return %arg0, %c0_i32 : i32, i32
  }
  func.func @transform_16(%arg0: i32) -> (i32, i32) {
    %c0_i32 = arith.constant 0 : i32
    %c0_i32_0 = arith.constant 0 : i32
    return %arg0, %c0_i32 : i32, i32
  }
}

</mosaic_0001>

<bundles_post_ra>
// kernel: tpu_custom_call.1
= control target key start
LH: loop header
LB: loop body
LE: loop exit
PB: predicated region body
PF: predicated region fallthrough
CT: control target
= control target key end

     0   :  { %v3408_v1 = vmov 0   ;;  %vm223_vm0 = vcmask 261120   ;;  %vm1218_vm1 = vcmask 523264   ;;  %s3409_s21 = smov 64   ;;  %s5365_s4 = inlined_call_operand.vmem [shape: bf16[32,160], index: 4, kind: input, shape index: {}]   ;;  %s5366_s3 = inlined_call_operand.vmem [shape: bf16[32,160], index: 3, kind: input, shape index: {}]   ;;  %s5367_s1 = inlined_call_operand.vmem [shape: f32[256,32], index: 1, kind: input, shape index: {}]   ;;  %s5368_s0 = inlined_call_operand.vmem [shape: f32[256,32], index: 0, kind: input, shape index: {}]   ;;  %s5369_s5 = inlined_call_operand.vmem [shape: bf16[32,160], index: 5, kind: input, shape index: {}]   ;;  %s5370_s2 = inlined_call_operand.vmem [shape: f32[256,32], index: 2, kind: input, shape index: {}]   ;;  %s5371_s7 = inlined_call_operand.vmem [shape: bf16[64,32], index: 7, kind: input, shape index: {}]   ;;  %s5372_s6 = inlined_call_operand.vmem [shape: f32[1,160], index: 6, kind: input, shape index: {}]   ;;  %s5373_s9 = inlined_call_operand.vmem [shape: bf16[64,64], index: 9, kind: input, shape index: {}]   ;;  %s5374_s11 = inlined_call_operand.vmem [shape: bf16[64,32], index: 11, kind: input, shape index: {}]   ;;  %s5375_s8 = inlined_call_operand.vmem [shape: f32[1,32], index: 8, kind: input, shape index: {}]   ;;  %s5376_s15 = inlined_call_operand.vmem [shape: f32[256,32], index: 15, kind: output, shape index: {1}]   ;;  %s5377_s10 = inlined_call_operand.vmem [shape: f32[1,64], index: 10, kind: input, shape index: {}]   ;;  %s5378_s12 = inlined_call_operand.vmem [shape: f32[1,32], index: 12, kind: input, shape index: {}]   ;;  %s5379_s13 = inlined_call_operand.vmem [shape: f32[32,32], index: 13, kind: input, shape index: {}]   ;;  %s5380_s16 = inlined_call_operand.vmem [shape: f32[256,32], index: 16, kind: output, shape index: {2}]   ;;  %s5381_s14 = inlined_call_operand.vmem [shape: f32[256,32], index: 14, kind: output, shape index: {0}]  }
   0x1   :  { %5384 = sst [smem:[#allocation68_spill]] %s5365_s4  ;;  %304 = vmatprep.mubr.bf16.mxu0 %v3408_v1  ;;  %565 = vmatprep.mubr.bf16.mxu1 %v3408_v1  ;;  %v3252_v2 = vld [vmem:[%s5366_s3 + $0x14] ss:$8 sps:$4 sm:$0xff]   ;;  %v3255_v4 = vld [vmem:[%s5366_s3 + $0x10] ss:$8 sps:$4 sm:$0xff]   ;;  %v99_v9 = vld [vmem:[%s5367_s1] sm:$0xff] }
   0x2   :  { %s5385_s23 = sld [smem:[#allocation68_spill]]  ;;  %545 = vmatprep.subr.bf16.mxu1 %v3252_v2  ;;  %v3258_v6 = vld [vmem:[%s5366_s3 + $0x4] ss:$8 sps:$4 sm:$0xff]   ;;  %v3261_v8 = vld [vmem:[%s5366_s3] ss:$8 sps:$4 sm:$0xff]   ;;  %v101_v17 = vld [vmem:[%s5367_s1 + $0x10] sm:$0xff] }
   0x3   :  { %546 = vmatpush1.bf16.msra.mxu1 %v3255_v4  ;;  %v100_v10 = vld [vmem:[%s5367_s1 + $0x8] sm:$0xff]  ;;  %v51_v11 = vld [vmem:[%s5368_s0] sm:$0xff]  ;;  %v3264_v15 = vld [vmem:[%s5369_s5 + $0x14] ss:$8 sps:$4 sm:$0xff]  }
   0x4   :  { %547 = vmatprep.subr.bf16.mxu1 %v3258_v6  ;;  %v52_v12 = vld [vmem:[%s5368_s0 + $0x8] sm:$0xff]  ;;  %v131_v13 = vpack.c.bf16 %v100_v10, %v99_v9  ;;  %v3262_v16 = vld [vmem:[%s5369_s5 + $0x10] ss:$8 sps:$4 sm:$0xff]   ;;  %v103_v23 = vld [vmem:[%s5367_s1 + $0x20] sm:$0xff] }
   0x5   :  { %v83_v14 = vpack.c.bf16 %v52_v12, %v51_v11  ;;  %v102_v18 = vld [vmem:[%s5367_s1 + $0x18] sm:$0xff]  ;;  %v53_v19 = vld [vmem:[%s5368_s0 + $0x10] sm:$0xff]  ;;  %v3265_v24 = vld [vmem:[%s5369_s5] ss:$8 sps:$4 sm:$0xff]  }
   0x6   :  { %v54_v20 = vld [vmem:[%s5368_s0 + $0x18] sm:$0xff]  ;;  %v132_v21 = vpack.c.bf16 %v102_v18, %v101_v17  ;;  %v3267_v25 = vld [vmem:[%s5369_s5 + $0x4] ss:$8 sps:$4 sm:$0xff]   ;;  %v105_v31 = vld [vmem:[%s5367_s1 + $0x30] sm:$0xff] }
   0x7   :  { %548 = vmatpush1.bf16.msra.mxu1 %v3261_v8  ;;  %v84_v22 = vpack.c.bf16 %v54_v20, %v53_v19  ;;  %v104_v26 = vld [vmem:[%s5367_s1 + $0x28] sm:$0xff]  ;;  %v55_v27 = vld [vmem:[%s5368_s0 + $0x20] sm:$0xff]  ;;  %v106_v32 = vld [vmem:[%s5367_s1 + $0x38] sm:$0xff] }
   0x8   :  { %v3250_v0 = vld [vmem:[%s5385_s23 + $0x14] ss:$8 sps:$4 sm:$0xff]   ;;  %v3254_v3 = vld [vmem:[%s5385_s23 + $0x10] ss:$8 sps:$4 sm:$0xff]   ;;  %v3256_v5 = vld [vmem:[%s5385_s23 + $0x4] ss:$8 sps:$4 sm:$0xff]   ;;  %v133_v29 = vpack.c.bf16 %v104_v26, %v103_v23  ;;  %v134_v35 = vpack.c.bf16 %v106_v32, %v105_v31 }
   0x9   :  { %284 = vmatprep.subr.bf16.mxu0 %v3250_v0  ;;  %v3260_v7 = vld [vmem:[%s5385_s23] ss:$8 sps:$4 sm:$0xff]   ;;  %v57_v33 = vld [vmem:[%s5368_s0 + $0x30] sm:$0xff]  ;;  %v58_v34 = vld [vmem:[%s5368_s0 + $0x38] sm:$0xff] }
   0xa   :  { %285 = vmatpush1.bf16.msra.mxu0 %v3254_v3  ;;  %2845 = vmatmul.mubr.msk.bf16.vlgmr.msra.gmra.mxu1 %vm223_vm0, %v83_v14  ;;  %v56_v28 = vld [vmem:[%s5368_s0 + $0x28] sm:$0xff]  ;;  %v86_v36 = vpack.c.bf16 %v58_v34, %v57_v33  ;;  %v107_v37 = vld [vmem:[%s5367_s1 + $0x40] sm:$0xff]  ;;  %v109_v43 = vld [vmem:[%s5367_s1 + $0x50] sm:$0xff] }
   0xb   :  { %286 = vmatprep.subr.bf16.mxu0 %v3256_v5  ;;  %575 = vmatprep.mubr.bf16.mxu1 %v3408_v1  ;;  %v85_v30 = vpack.c.bf16 %v56_v28, %v55_v27  ;;  %v108_v38 = vld [vmem:[%s5367_s1 + $0x48] sm:$0xff]  ;;  %v59_v39 = vld [vmem:[%s5368_s0 + $0x40] sm:$0xff]  ;;  %v110_v44 = vld [vmem:[%s5367_s1 + $0x58] sm:$0xff] }
   0xc   :  { %v60_v40 = vld [vmem:[%s5368_s0 + $0x48] sm:$0xff]  ;;  %v135_v41 = vpack.c.bf16 %v108_v38, %v107_v37  ;;  %v61_v45 = vld [vmem:[%s5368_s0 + $0x50] sm:$0xff]  ;;  %v62_v46 = vld [vmem:[%s5368_s0 + $0x58] sm:$0xff]  ;;  %v136_v47 = vpack.c.bf16 %v110_v44, %v109_v43 }
   0xd   :  { %v87_v42 = vpack.c.bf16 %v60_v40, %v59_v39  ;;  %v88_v48 = vpack.c.bf16 %v62_v46, %v61_v45  ;;  %v111_v49 = vld [vmem:[%s5367_s1 + $0x60] sm:$0xff]  ;;  %v112_v50 = vld [vmem:[%s5367_s1 + $0x68] sm:$0xff]  ;;  %v113_v55 = vld [vmem:[%s5367_s1 + $0x70] sm:$0xff] }
   0xe   :  { %287 = vmatpush1.bf16.msra.mxu0 %v3260_v7  ;;  %v63_v51 = vld [vmem:[%s5368_s0 + $0x60] sm:$0xff]  ;;  %v64_v52 = vld [vmem:[%s5368_s0 + $0x68] sm:$0xff]  ;;  %v137_v53 = vpack.c.bf16 %v112_v50, %v111_v49  ;;  %v114_v56 = vld [vmem:[%s5367_s1 + $0x78] sm:$0xff] }
   0xf   :  { %810 = vmatprep.subr.bf16.mxu0 %v3264_v15  ;;  %v89_v54 = vpack.c.bf16 %v64_v52, %v63_v51  ;;  %v65_v57 = vld [vmem:[%s5368_s0 + $0x70] sm:$0xff]  ;;  %v66_v58 = vld [vmem:[%s5368_s0 + $0x78] sm:$0xff]  ;;  %v138_v59 = vpack.c.bf16 %v114_v56, %v113_v55  ;;  %v115_v61 = vld [vmem:[%s5367_s1 + $0x80] sm:$0xff] }
  0x10   :  { %v90_v60 = vpack.c.bf16 %v66_v58, %v65_v57  ;;  %v116_v62 = vld [vmem:[%s5367_s1 + $0x88] sm:$0xff]  ;;  %v67_v63 = vld [vmem:[%s5368_s0 + $0x80] sm:$0xff]  ;;  %v117_v4 = vld [vmem:[%s5367_s1 + $0x90] sm:$0xff] }
  0x11   :  { %2825 = vmatmul.mubr.msk.bf16.vlgmr.msra.gmra.mxu0 %vm223_vm0, %v131_v13  ;;  %v68_v0 = vld [vmem:[%s5368_s0 + $0x88] sm:$0xff]  ;;  %v139_v2 = vpack.c.bf16 %v116_v62, %v115_v61  ;;  %v118_v5 = vld [vmem:[%s5367_s1 + $0x98] sm:$0xff]  ;;  %v69_v6 = vld [vmem:[%s5368_s0 + $0x90] sm:$0xff] }
  0x12   :  { %811 = vmatpush1.bf16.msra.mxu0 %v3262_v16  ;;  %314 = vmatprep.mubr.bf16.mxu0 %v3408_v1  ;;  %v91_v3 = vpack.c.bf16 %v68_v0, %v67_v63  ;;  %v70_v7 = vld [vmem:[%s5368_s0 + $0x98] sm:$0xff]  ;;  %v140_v8 = vpack.c.bf16 %v118_v5, %v117_v4  ;;  %v119_v10 = vld [vmem:[%s5367_s1 + $0xa0] sm:$0xff]  ;;  %v120_v11 = vld [vmem:[%s5367_s1 + $0xa8] sm:$0xff] }
  0x13   :  { %2846 = vmatmul.mubr.msk.bf16.gmra.mxu1 %vm223_vm0, %v84_v22  ;;  %812 = vmatprep.subr.bf16.mxu0 %v3267_v25  ;;  %v92_v9 = vpack.c.bf16 %v70_v7, %v69_v6  ;;  %v71_v12 = vld [vmem:[%s5368_s0 + $0xa0] sm:$0xff]  ;;  %v72_v13 = vld [vmem:[%s5368_s0 + $0xa8] sm:$0xff]  ;;  %v141_v14 = vpack.c.bf16 %v120_v11, %v119_v10  ;;  %v121_v16 = vld [vmem:[%s5367_s1 + $0xb0] sm:$0xff] }
  0x14   :  { %585 = vmatprep.mubr.bf16.mxu1 %v3408_v1  ;;  %v93_v15 = vpack.c.bf16 %v72_v13, %v71_v12  ;;  %v122_v17 = vld [vmem:[%s5367_s1 + $0xb8] sm:$0xff]  ;;  %v73_v18 = vld [vmem:[%s5368_s0 + $0xb0] sm:$0xff]  ;;  %v123_v22 = vld [vmem:[%s5367_s1 + $0xc0] sm:$0xff] }
  0x15   :  { %v74_v19 = vld [vmem:[%s5368_s0 + $0xb8] sm:$0xff]  ;;  %v142_v20 = vpack.c.bf16 %v122_v17, %v121_v16  ;;  %v124_v23 = vld [vmem:[%s5367_s1 + $0xc8] sm:$0xff]  ;;  %v125_v28 = vld [vmem:[%s5367_s1 + $0xd0] sm:$0xff] }
  0x16   :  { %813 = vmatpush1.bf16.msra.mxu0 %v3265_v24  ;;  %v75_v24 = vld [vmem:[%s5368_s0 + $0xc0] sm:$0xff]  ;;  %v76_v25 = vld [vmem:[%s5368_s0 + $0xc8] sm:$0xff]  ;;  %v143_v26 = vpack.c.bf16 %v124_v23, %v123_v22  ;;  %v78_v31 = vld [vmem:[%s5368_s0 + $0xd8] sm:$0xff] }
  0x17   :  { %v95_v27 = vpack.c.bf16 %v76_v25, %v75_v24  ;;  %v127_v34 = vld [vmem:[%s5367_s1 + $0xe0] sm:$0xff]  ;;  %v80_v37 = vld [vmem:[%s5368_s0 + $0xe8] sm:$0xff]  ;;  %v129_v40 = vld [vmem:[%s5367_s1 + $0xf0] sm:$0xff] }
  0x18   :  { %v82_v43 = vld [vmem:[%s5368_s0 + $0xf8] sm:$0xff]  ;;  %v147_v46 = vld [vmem:[%s5370_s2] sm:$0xff]  ;;  %v149_v49 = vld [vmem:[%s5370_s2 + $0x10] sm:$0xff] }
  0x19   :  { %2826 = vmatmul.mubr.msk.bf16.gmra.mxu0 %vm223_vm0, %v132_v21  ;;  %v94_v21 = vpack.c.bf16 %v74_v19, %v73_v18  ;;  %v150_v50 = vld [vmem:[%s5370_s2 + $0x18] sm:$0xff]  ;;  %v151_v52 = vld [vmem:[%s5370_s2 + $0x20] sm:$0xff]  ;;  %v153_v55 = vld [vmem:[%s5370_s2 + $0x30] sm:$0xff] }
  0x1a   :  { %324 = vmatprep.mubr.bf16.mxu0 %v3408_v1  ;;  %v180_v51 = vpack.c.bf16 %v150_v50, %v149_v49  ;;  %v154_v56 = vld [vmem:[%s5370_s2 + $0x38] sm:$0xff]  ;;  %v155_v58 = vld [vmem:[%s5370_s2 + $0x40] sm:$0xff]  ;;  %v157_v61 = vld [vmem:[%s5370_s2 + $0x50] sm:$0xff] }
  0x1b   :  { %2847 = vmatmul.mubr.msk.bf16.gmra.mxu1 %vm223_vm0, %v85_v30  ;;  %v77_v30 = vld [vmem:[%s5368_s0 + $0xd0] sm:$0xff]  ;;  %v182_v57 = vpack.c.bf16 %v154_v56, %v153_v55  ;;  %v158_v62 = vld [vmem:[%s5370_s2 + $0x58] sm:$0xff]  ;;  %v159_v0 = vld [vmem:[%s5370_s2 + $0x60] sm:$0xff] }
  0x1c   :  { %595 = vmatprep.mubr.bf16.mxu1 %v3408_v1  ;;  %v96_v33 = vpack.c.bf16 %v78_v31, %v77_v30  ;;  %v184_v63 = vpack.c.bf16 %v158_v62, %v157_v61  ;;  %v161_v4 = vld [vmem:[%s5370_s2 + $0x70] sm:$0xff]  ;;  %v162_v5 = vld [vmem:[%s5370_s2 + $0x78] sm:$0xff]  ;;  %v163_v7 = vld [vmem:[%s5370_s2 + $0x80] sm:$0xff] }
  0x1d   :  { %v186_v6 = vpack.c.bf16 %v162_v5, %v161_v4  ;;  %v165_v11 = vld [vmem:[%s5370_s2 + $0x90] sm:$0xff]  ;;  %v166_v16 = vld [vmem:[%s5370_s2 + $0x98] sm:$0xff]  ;;  %v3878_v17 = vld [vmem:[%s5372_s6] sm:$0x3] }
  0x1e   :  { %v188_v25 = vpack.c.bf16 %v166_v16, %v165_v11  ;;  %v167_v31 = vld [vmem:[%s5370_s2 + $0xa0] sm:$0xff] }
  0x21   :  { %2827 = vmatmul.mubr.msk.bf16.gmra.mxu0 %vm223_vm0, %v133_v29  ;;  %v126_v29 = vld [vmem:[%s5367_s1 + $0xd8] sm:$0xff] }
  0x22   :  { %334 = vmatprep.mubr.bf16.mxu0 %v3408_v1  ;;  %v144_v32 = vpack.c.bf16 %v126_v29, %v125_v28  ;;  %v3269_v28 = vld [vmem:[%s5371_s7 + $0x10] sm:$0xff]  }
  0x23   :  { %2848 = vmatmul.mubr.msk.bf16.gmra.mxu1 %vm223_vm0, %v86_v36  ;;  %v79_v36 = vld [vmem:[%s5368_s0 + $0xe0] sm:$0xff] }
  0x24   :  { %605 = vmatprep.mubr.bf16.mxu1 %v3408_v1  ;;  %v97_v39 = vpack.c.bf16 %v80_v37, %v79_v36  ;;  %v3270_v36 = vld [vmem:[%s5371_s7 + $0x8] sm:$0xff]  }
  0x29   :  { %2828 = vmatmul.mubr.msk.bf16.gmra.mxu0 %vm223_vm0, %v134_v35  ;;  %v128_v35 = vld [vmem:[%s5367_s1 + $0xe8] sm:$0xff] }
  0x2a   :  { %344 = vmatprep.mubr.bf16.mxu0 %v3408_v1  ;;  %v145_v38 = vpack.c.bf16 %v128_v35, %v127_v34 }
  0x2b   :  { %2849 = vmatmul.mubr.msk.bf16.gmra.mxu1 %vm223_vm0, %v87_v42  ;;  %v81_v42 = vld [vmem:[%s5368_s0 + $0xf0] sm:$0xff] }
  0x2c   :  { %615 = vmatprep.mubr.bf16.mxu1 %v3408_v1  ;;  %v98_v45 = vpack.c.bf16 %v82_v43, %v81_v42  ;;  %v3271_v42 = vld [vmem:[%s5371_s7] sm:$0xff]  }
  0x31   :  { %2829 = vmatmul.mubr.msk.bf16.gmra.mxu0 %vm223_vm0, %v135_v41  ;;  %v130_v41 = vld [vmem:[%s5367_s1 + $0xf8] sm:$0xff] }
  0x32   :  { %354 = vmatprep.mubr.bf16.mxu0 %v3408_v1  ;;  %v146_v44 = vpack.c.bf16 %v130_v41, %v129_v40 }
  0x33   :  { %2850 = vmatmul.mubr.msk.bf16.gmra.mxu1 %vm223_vm0, %v88_v48 }
  0x34   :  { %625 = vmatprep.mubr.bf16.mxu1 %v3408_v1 }
  0x39   :  { %2830 = vmatmul.mubr.msk.bf16.gmra.mxu0 %vm223_vm0, %v136_v47  ;;  %v148_v47 = vld [vmem:[%s5370_s2 + $0x8] sm:$0xff] }
  0x3a   :  { %364 = vmatprep.mubr.bf16.mxu0 %v3408_v1  ;;  %v179_v48 = vpack.c.bf16 %v148_v47, %v147_v46  ;;  %v170_v46 = vld [vmem:[%s5370_s2 + $0xb8] sm:$0xff] }
  0x3b   :  { %2851 = vmatmul.mubr.msk.bf16.gmra.mxu1 %vm223_vm0, %v89_v54 }
  0x3c   :  { %635 = vmatprep.mubr.bf16.mxu1 %v3408_v1 }
  0x41   :  { %2831 = vmatmul.mubr.msk.bf16.gmra.mxu0 %vm223_vm0, %v137_v53  ;;  %v152_v53 = vld [vmem:[%s5370_s2 + $0x28] sm:$0xff] }
  0x42   :  { %374 = vmatprep.mubr.bf16.mxu0 %v3408_v1  ;;  %v181_v54 = vpack.c.bf16 %v152_v53, %v151_v52 }
  0x43   :  { %2852 = vmatmul.mubr.msk.bf16.gmra.mxu1 %vm223_vm0, %v90_v60 }
  0x44   :  { %645 = vmatprep.mubr.bf16.mxu1 %v3408_v1 }
  0x49   :  { %2832 = vmatmul.mubr.msk.bf16.gmra.mxu0 %vm223_vm0, %v138_v59  ;;  %v156_v59 = vld [vmem:[%s5370_s2 + $0x48] sm:$0xff] }
  0x4a   :  { %384 = vmatprep.mubr.bf16.mxu0 %v3408_v1  ;;  %v183_v60 = vpack.c.bf16 %v156_v59, %v155_v58  ;;  %v172_v58 = vld [vmem:[%s5370_s2 + $0xc8] sm:$0xff] }
  0x4b   :  { %2853 = vmatmul.mubr.msk.bf16.gmra.mxu1 %vm223_vm0, %v91_v3 }
  0x4c   :  { %655 = vmatprep.mubr.bf16.mxu1 %v3408_v1 }
  0x51   :  { %2833 = vmatmul.mubr.msk.bf16.gmra.mxu0 %vm223_vm0, %v139_v2  ;;  %v160_v2 = vld [vmem:[%s5370_s2 + $0x68] sm:$0xff] }
  0x52   :  { %394 = vmatprep.mubr.bf16.mxu0 %v3408_v1  ;;  %v185_v3 = vpack.c.bf16 %v160_v2, %v159_v0 }
  0x53   :  { %2854 = vmatmul.mubr.msk.bf16.gmra.mxu1 %vm223_vm0, %v92_v9  ;;  %v1057_v9 = vlaneseq }
  0x54   :  { %665 = vmatprep.mubr.bf16.mxu1 %v3408_v1 }
  0x55   :  { %v3861_v12 = vshrl.u32 %v1057_v9, 7 }
  0x57   :  { %v1063_v18 = vsub.s32 1, %v3861_v12 }
  0x59   :  { %2834 = vmatmul.mubr.msk.bf16.gmra.mxu0 %vm223_vm0, %v140_v8  ;;  %v164_v8 = vld [vmem:[%s5370_s2 + $0x88] sm:$0xff]  ;;  %v3884_v22 = vrot.slane %v3878_v17, %v1063_v18 }
  0x5a   :  { %404 = vmatprep.mubr.bf16.mxu0 %v3408_v1  ;;  %v187_v10 = vpack.c.bf16 %v164_v8, %v163_v7  ;;  %v174_v7 = vld [vmem:[%s5370_s2 + $0xd8] sm:$0xff] }
  0x5b   :  { %2855 = vmatmul.mubr.msk.bf16.gmra.mxu1 %vm223_vm0, %v93_v15  ;;  %v3268_v15 = vld [vmem:[%s5371_s7 + $0x18] sm:$0xff]   ;;  %5386 = vst [vmem:[#allocation2_spill] sm:$0xff] %v3884_v22 }
  0x5c   :  { %675 = vmatprep.mubr.bf16.mxu1 %v3408_v1  ;;  %3072 = vmatprep.subr.bf16.mxu1 %v3268_v15 }
  0x5d   :  { %3073 = vmatpush3.bf16.msra.mxu1 %v3268_v15 }
  0x5e   :  { %3074 = vmatprep.subr.bf16.mxu1 %v3269_v28 }
  0x61   :  { %2835 = vmatmul.mubr.msk.bf16.gmra.mxu0 %vm223_vm0, %v141_v14  ;;  %3075 = vmatpush3.bf16.msra.mxu1 %v3269_v28  ;;  %v176_v28 = vld [vmem:[%s5370_s2 + $0xe8] sm:$0xff] }
  0x62   :  { %414 = vmatprep.mubr.bf16.mxu0 %v3408_v1  ;;  %3076 = vmatprep.subr.bf16.mxu1 %v3270_v36 }
  0x63   :  { %2856 = vmatmul.mubr.msk.bf16.gmra.mxu1 %vm223_vm0, %v94_v21 }
  0x64   :  { %685 = vmatprep.mubr.bf16.mxu1 %v3408_v1 }
  0x65   :  { %3077 = vmatpush3.bf16.msra.mxu1 %v3270_v36 }
  0x66   :  { %3078 = vmatprep.subr.bf16.mxu1 %v3271_v42 }
  0x69   :  { %2836 = vmatmul.mubr.msk.bf16.gmra.mxu0 %vm223_vm0, %v142_v20  ;;  %3079 = vmatpush3.bf16.msra.mxu1 %v3271_v42 }
  0x6a   :  { %424 = vmatprep.mubr.bf16.mxu0 %v3408_v1 }
  0x6b   :  { %2857 = vmatmul.mubr.msk.bf16.gmra.mxu1 %vm223_vm0, %v95_v27 }
  0x6c   :  { %695 = vmatprep.mubr.bf16.mxu1 %v3408_v1 }
  0x71   :  { %2837 = vmatmul.mubr.msk.bf16.gmra.mxu0 %vm223_vm0, %v143_v26 }
  0x72   :  { %434 = vmatprep.mubr.bf16.mxu0 %v3408_v1 }
  0x73   :  { %2858 = vmatmul.mubr.msk.bf16.gmra.mxu1 %vm223_vm0, %v96_v33 }
  0x74   :  { %705 = vmatprep.mubr.bf16.mxu1 %v3408_v1 }
  0x79   :  { %2838 = vmatmul.mubr.msk.bf16.gmra.mxu0 %vm223_vm0, %v144_v32  ;;  %v168_v32 = vld [vmem:[%s5370_s2 + $0xa8] sm:$0xff] }
  0x7a   :  { %444 = vmatprep.mubr.bf16.mxu0 %v3408_v1 }
  0x7b   :  { %2859 = vmatmul.mubr.msk.bf16.gmra.mxu1 %vm223_vm0, %v97_v39  ;;  %v189_v39 = vpack.c.bf16 %v168_v32, %v167_v31 }
  0x7c   :  { %715 = vmatprep.mubr.bf16.mxu1 %v3408_v1 }
  0x81   :  { %2839 = vmatmul.mubr.msk.bf16.gmra.mxu0 %vm223_vm0, %v145_v38 }
  0x82   :  { %454 = vmatprep.mubr.bf16.mxu0 %v3408_v1 }
  0x83   :  { %2860 = vmatmul.mubr.msk.bf16.gmra.mxu1 %vm223_vm0, %v98_v45  ;;  %v169_v45 = vld [vmem:[%s5370_s2 + $0xb0] sm:$0xff] }
  0x84   :  { %v190_v52 = vpack.c.bf16 %v170_v46, %v169_v45 }
  0x89   :  { %2840 = vmatmul.mubr.msk.bf16.gmra.mxu0 %vm223_vm0, %v146_v44 }
  0x8a   :  { %830 = vmatprep.mubr.bf16.mxu0 %v3408_v1 }
  0x91   :  { %2865 = vmatmul.mubr.msk.bf16.vlgmr.msra.gmra.mxu0 %vm223_vm0, %v179_v48 }
  0x92   :  { %840 = vmatprep.mubr.bf16.mxu0 %v3408_v1 }
  0x99   :  { %2866 = vmatmul.mubr.msk.bf16.gmra.mxu0 %vm223_vm0, %v180_v51 }
  0x9a   :  { %850 = vmatprep.mubr.bf16.mxu0 %v3408_v1 }
  0xa1   :  { %2867 = vmatmul.mubr.msk.bf16.gmra.mxu0 %vm223_vm0, %v181_v54 }
  0xa2   :  { %860 = vmatprep.mubr.bf16.mxu0 %v3408_v1 }
  0xa9   :  { %2868 = vmatmul.mubr.msk.bf16.gmra.mxu0 %vm223_vm0, %v182_v57  ;;  %v171_v57 = vld [vmem:[%s5370_s2 + $0xc0] sm:$0xff] }
  0xaa   :  { %870 = vmatprep.mubr.bf16.mxu0 %v3408_v1  ;;  %v191_v0 = vpack.c.bf16 %v172_v58, %v171_v57 }
  0xb1   :  { %2869 = vmatmul.mubr.msk.bf16.gmra.mxu0 %vm223_vm0, %v183_v60 }
  0xb2   :  { %880 = vmatprep.mubr.bf16.mxu0 %v3408_v1 }
  0xb9   :  { %2870 = vmatmul.mubr.msk.bf16.gmra.mxu0 %vm223_vm0, %v184_v63 }
  0xba   :  { %890 = vmatprep.mubr.bf16.mxu0 %v3408_v1 }
  0xc1   :  { %2871 = vmatmul.mubr.msk.bf16.gmra.mxu0 %vm223_vm0, %v185_v3 }
  0xc2   :  { %900 = vmatprep.mubr.bf16.mxu0 %v3408_v1 }
  0xc9   :  { %2872 = vmatmul.mubr.msk.bf16.gmra.mxu0 %vm223_vm0, %v186_v6  ;;  %v173_v6 = vld [vmem:[%s5370_s2 + $0xd0] sm:$0xff] }
  0xca   :  { %910 = vmatprep.mubr.bf16.mxu0 %v3408_v1  ;;  %v3865_v14 = vpop.f32.mrf.mxu1  ;;  %v192_v15 = vpack.c.bf16 %v174_v7, %v173_v6 }
  0xcc   :  { %v569_v20 = vpop.f32.mrf.mxu1 }
  0xce   :  { %v3888_v24 = vpop.f32.mrf.mxu1 }
  0xd0   :  { %v3892_v27 = vpop.f32.mrf.mxu1 }
  0xd1   :  { %v3863_v13 = vpop.f32.mrf.mxu0  ;;  %2873 = vmatmul.mubr.msk.bf16.gmra.mxu0 %vm223_vm0, %v187_v10 }
  0xd2   :  { %920 = vmatprep.mubr.bf16.mxu0 %v3408_v1 }
  0xd3   :  { %v308_v19 = vpop.f32.mrf.mxu0  ;;  %v3899_v30 = vpop.f32.mrf.mxu1 }
  0xd4   :  { %v3881_v21 = vadd.f32 %v569_v20, %v308_v19 }
  0xd5   :  { %v3886_v23 = vpop.f32.mrf.mxu0  ;;  %v579_v34 = vpop.f32.mrf.mxu1 }
  0xd7   :  { %v3890_v26 = vpop.f32.mrf.mxu0  ;;  %v3916_v38 = vpop.f32.mrf.mxu1 }
  0xd9   :  { %v3897_v29 = vpop.f32.mrf.mxu0  ;;  %2874 = vmatmul.mubr.msk.bf16.gmra.mxu0 %vm223_vm0, %v188_v25  ;;  %v3920_v41 = vpop.f32.mrf.mxu1  ;;  %v175_v25 = vld [vmem:[%s5370_s2 + $0xe0] sm:$0xff] }
  0xda   :  { %930 = vmatprep.mubr.bf16.mxu0 %v3408_v1  ;;  %v193_v36 = vpack.c.bf16 %v176_v28, %v175_v25 }
  0xdb   :  { %v318_v33 = vpop.f32.mrf.mxu0  ;;  %v3927_v44 = vpop.f32.mrf.mxu1 }
  0xdc   :  { %v3909_v35 = vadd.f32 %v579_v34, %v318_v33 }
  0xdd   :  { %v3914_v37 = vpop.f32.mrf.mxu0  ;;  %v589_v48 = vpop.f32.mrf.mxu1 }
  0xdf   :  { %v3918_v40 = vpop.f32.mrf.mxu0  ;;  %v3941_v51 = vpop.f32.mrf.mxu1 }
  0xe1   :  { %v3925_v43 = vpop.f32.mrf.mxu0  ;;  %2875 = vmatmul.mubr.msk.bf16.gmra.mxu0 %vm223_vm0, %v189_v39  ;;  %v3945_v54 = vpop.f32.mrf.mxu1 }
  0xe2   :  { %940 = vmatprep.mubr.bf16.mxu0 %v3408_v1 }
  0xe3   :  { %v328_v47 = vpop.f32.mrf.mxu0  ;;  %v3949_v56 = vpop.f32.mrf.mxu1 }
  0xe4   :  { %v3937_v49 = vadd.f32 %v589_v48, %v328_v47  ;;  %v177_v47 = vld [vmem:[%s5370_s2 + $0xf0] sm:$0xff]  ;;  %v178_v48 = vld [vmem:[%s5370_s2 + $0xf8] sm:$0xff] }
  0xe5   :  { %v3939_v50 = vpop.f32.mrf.mxu0  ;;  %v599_v60 = vpop.f32.mrf.mxu1 }
  0xe7   :  { %v3943_v53 = vpop.f32.mrf.mxu0  ;;  %v3963_v63 = vpop.f32.mrf.mxu1 }
  0xe9   :  { %v3947_v55 = vpop.f32.mrf.mxu0  ;;  %2876 = vmatmul.mubr.msk.bf16.gmra.mxu0 %vm223_vm0, %v190_v52  ;;  %v3967_v3 = vpop.f32.mrf.mxu1 }
  0xea   :  { %950 = vmatprep.mubr.bf16.mxu0 %v3408_v1 }
  0xeb   :  { %v338_v59 = vpop.f32.mrf.mxu0  ;;  %v3971_v5 = vpop.f32.mrf.mxu1 }
  0xec   :  { %v3959_v61 = vadd.f32 %v599_v60, %v338_v59  ;;  %v194_v60 = vpack.c.bf16 %v178_v48, %v177_v47 }
  0xed   :  { %v3961_v62 = vpop.f32.mrf.mxu0  ;;  %v3983_v9 = vpop.f32.mrf.mxu1 }
  0xef   :  { %v3965_v2 = vpop.f32.mrf.mxu0  ;;  %v3987_v11 = vpop.f32.mrf.mxu1 }
  0xf1   :  { %v3969_v4 = vpop.f32.mrf.mxu0  ;;  %2877 = vmatmul.mubr.msk.bf16.gmra.mxu0 %vm223_vm0, %v191_v0  ;;  %v3991_v18 = vpop.f32.mrf.mxu1 }
  0xf2   :  { %960 = vmatprep.mubr.bf16.mxu0 %v3408_v1  ;;  %5388 = vst [vmem:[#allocation4_spill] sm:$0xff] %v3991_v18 }
  0xf3   :  { %v3981_v8 = vpop.f32.mrf.mxu0  ;;  %v3995_v20 = vpop.f32.mrf.mxu1 }
  0xf5   :  { %v3985_v10 = vpop.f32.mrf.mxu0  ;;  %v4007_v32 = vpop.f32.mrf.mxu1 }
  0xf7   :  { %v3989_v16 = vpop.f32.mrf.mxu0  ;;  %v4011_v34 = vpop.f32.mrf.mxu1 }
  0xf8   :  { %5387 = vst [vmem:[#allocation3_spill] sm:$0xff] %v3989_v16 }
  0xf9   :  { %v3993_v19 = vpop.f32.mrf.mxu0  ;;  %2878 = vmatmul.mubr.msk.bf16.gmra.mxu0 %vm223_vm0, %v192_v15  ;;  %v4015_v42 = vpop.f32.mrf.mxu1 }
  0xfa   :  { %970 = vmatprep.mubr.bf16.mxu0 %v3408_v1  ;;  %5390 = vst [vmem:[#allocation6_spill] sm:$0xff] %v4015_v42 }
  0xfb   :  { %v4005_v31 = vpop.f32.mrf.mxu0  ;;  %v4019_v46 = vpop.f32.mrf.mxu1 }
  0xfd   :  { %v4009_v33 = vpop.f32.mrf.mxu0  ;;  %v4031_v57 = vpop.f32.mrf.mxu1 }
  0xff   :  { %v4013_v39 = vpop.f32.mrf.mxu0  ;;  %v4035_v59 = vpop.f32.mrf.mxu1 }
 0x100   :  { %5389 = vst [vmem:[#allocation5_spill] sm:$0xff] %v4013_v39 }
 0x101   :  { %v4017_v45 = vpop.f32.mrf.mxu0  ;;  %2879 = vmatmul.mubr.msk.bf16.gmra.mxu0 %vm223_vm0, %v193_v36 }
 0x102   :  { %980 = vmatprep.mubr.bf16.mxu0 %v3408_v1  ;;  %v4039_v1 = vpop.f32.mrf.mxu1 }
 0x103   :  { %v4029_v52 = vpop.f32.mrf.mxu0  ;;  %5392 = vst [vmem:[#allocation8_spill] sm:$0xff] %v4039_v1 }
 0x104   :  { %v4043_v7 = vpop.f32.mrf.mxu1 }
 0x105   :  { %v4033_v58 = vpop.f32.mrf.mxu0 }
 0x106   :  { %v4048_v25 = vpop.f32.mrf.mxu1 }
 0x107   :  { %v4037_v0 = vpop.f32.mrf.mxu0  ;;  %5394 = vst [vmem:[#allocation10_spill] sm:$0xff] %v4048_v25 }
 0x108   :  { %5391 = vst [vmem:[#allocation7_spill] sm:$0xff] %v4037_v0  ;;  %v4052_v36 = vpop.f32.mrf.mxu1 }
 0x109   :  { %v4041_v6 = vpop.f32.mrf.mxu0  ;;  %2880 = vmatmul.mubr.msk.bf16.gmra.mxu0 %vm223_vm0, %v194_v60  ;;  %5396 = vst [vmem:[#allocation12_spill] sm:$0xff] %v4052_v36 }
 0x10a   :  { %v4056_v47 = vpop.f32.mrf.mxu1 }
 0x10b   :  { %v4046_v15 = vpop.f32.mrf.mxu0  ;;  %5398 = vst [vmem:[#allocation14_spill] sm:$0xff] %v4056_v47 }
 0x10c   :  { %5393 = vst [vmem:[#allocation9_spill] sm:$0xff] %v4046_v15  ;;  %v4060_v1 = vpop.f32.mrf.mxu1 }
 0x10d   :  { %v4050_v28 = vpop.f32.mrf.mxu0  ;;  %5400 = vst [vmem:[#allocation16_spill] sm:$0xff] %v4060_v1 }
 0x10e   :  { %5395 = vst [vmem:[#allocation11_spill] sm:$0xff] %v4050_v28  ;;  %v4064_v39 = vpop.f32.mrf.mxu1 }
 0x10f   :  { %v4054_v42 = vpop.f32.mrf.mxu0  ;;  %5402 = vst [vmem:[#allocation18_spill] sm:$0xff] %v4064_v39 }
 0x110   :  { %5397 = vst [vmem:[#allocation13_spill] sm:$0xff] %v4054_v42  ;;  %v4068_v18 = vpop.f32.mrf.mxu1 }
 0x111   :  { %v4058_v48 = vpop.f32.mrf.mxu0  ;;  %5404 = vst [vmem:[#allocation20_spill] sm:$0xff] %v4068_v18 }
 0x112   :  { %5399 = vst [vmem:[#allocation15_spill] sm:$0xff] %v4058_v48  ;;  %v4072_v22 = vpop.f32.mrf.mxu1 }
 0x113   :  { %v4062_v0 = vpop.f32.mrf.mxu0  ;;  %5406 = vst [vmem:[#allocation22_spill] sm:$0xff] %v4072_v22 }
 0x114   :  { %5401 = vst [vmem:[#allocation17_spill] sm:$0xff] %v4062_v0  ;;  %v4076_v42 = vpop.f32.mrf.mxu1 }
 0x115   :  { %v4066_v60 = vpop.f32.mrf.mxu0  ;;  %5408 = vst [vmem:[#allocation24_spill] sm:$0xff] %v4076_v42 }
 0x116   :  { %5403 = vst [vmem:[#allocation19_spill] sm:$0xff] %v4066_v60  ;;  %v4080_v48 = vpop.f32.mrf.mxu1 }
 0x117   :  { %v4070_v16 = vpop.f32.mrf.mxu0  ;;  %5410 = vst [vmem:[#allocation26_spill] sm:$0xff] %v4080_v48 }
 0x118   :  { %5405 = vst [vmem:[#allocation21_spill] sm:$0xff] %v4070_v16  ;;  %v4084_v0 = vpop.f32.mrf.mxu1 }
 0x119   :  { %v4074_v36 = vpop.f32.mrf.mxu0  ;;  %5412 = vst [vmem:[#allocation28_spill] sm:$0xff] %v4084_v0 }
 0x11a   :  { %5407 = vst [vmem:[#allocation23_spill] sm:$0xff] %v4074_v36  ;;  %v4088_v60 = vpop.f32.mrf.mxu1 }
 0x11b   :  { %v4078_v47 = vpop.f32.mrf.mxu0  ;;  %5414 = vst [vmem:[#allocation30_spill] sm:$0xff] %v4088_v60 }
 0x11c   :  { %5409 = vst [vmem:[#allocation25_spill] sm:$0xff] %v4078_v47  ;;  %v4092_v16 = vpop.f32.mrf.mxu1 }
 0x11d   :  { %v4082_v1 = vpop.f32.mrf.mxu0  ;;  %5416 = vst [vmem:[#allocation32_spill] sm:$0xff] %v4092_v16 }
 0x11e   :  { %5411 = vst [vmem:[#allocation27_spill] sm:$0xff] %v4082_v1  ;;  %v4096_v36 = vpop.f32.mrf.mxu1 }
 0x11f   :  { %v4086_v39 = vpop.f32.mrf.mxu0  ;;  %5418 = vst [vmem:[#allocation34_spill] sm:$0xff] %v4096_v36 }
 0x120   :  { %5413 = vst [vmem:[#allocation29_spill] sm:$0xff] %v4086_v39  ;;  %v4100_v47 = vpop.f32.mrf.mxu1 }
 0x121   :  { %v4090_v18 = vpop.f32.mrf.mxu0  ;;  %5420 = vst [vmem:[#allocation36_spill] sm:$0xff] %v4100_v47 }
 0x122   :  { %5415 = vst [vmem:[#allocation31_spill] sm:$0xff] %v4090_v18  ;;  %v4104_v1 = vpop.f32.mrf.mxu1 }
 0x123   :  { %v4094_v22 = vpop.f32.mrf.mxu0  ;;  %5422 = vst [vmem:[#allocation38_spill] sm:$0xff] %v4104_v1 }
 0x124   :  { %5417 = vst [vmem:[#allocation33_spill] sm:$0xff] %v4094_v22  ;;  %v4108_v39 = vpop.f32.mrf.mxu1 }
 0x125   :  { %v4098_v42 = vpop.f32.mrf.mxu0  ;;  %5424 = vst [vmem:[#allocation40_spill] sm:$0xff] %v4108_v39 }
 0x126   :  { %5419 = vst [vmem:[#allocation35_spill] sm:$0xff] %v4098_v42  ;;  %v4112_v18 = vpop.f32.mrf.mxu1 }
 0x127   :  { %v4102_v48 = vpop.f32.mrf.mxu0  ;;  %5426 = vst [vmem:[#allocation42_spill] sm:$0xff] %v4112_v18 }
 0x128   :  { %5421 = vst [vmem:[#allocation37_spill] sm:$0xff] %v4102_v48  ;;  %v4116_v22 = vpop.f32.mrf.mxu1 }
 0x129   :  { %v4106_v0 = vpop.f32.mrf.mxu0  ;;  %5428 = vst [vmem:[#allocation44_spill] sm:$0xff] %v4116_v22 }
 0x12a   :  { %5423 = vst [vmem:[#allocation39_spill] sm:$0xff] %v4106_v0  ;;  %v4120_v42 = vpop.f32.mrf.mxu1 }
 0x12b   :  { %v4110_v60 = vpop.f32.mrf.mxu0  ;;  %5430 = vst [vmem:[#allocation46_spill] sm:$0xff] %v4120_v42 }
 0x12c   :  { %5425 = vst [vmem:[#allocation41_spill] sm:$0xff] %v4110_v60  ;;  %v4124_v48 = vpop.f32.mrf.mxu1 }
 0x12d   :  { %v4114_v16 = vpop.f32.mrf.mxu0  ;;  %5432 = vst [vmem:[#allocation48_spill] sm:$0xff] %v4124_v48 }
 0x12e   :  { %5427 = vst [vmem:[#allocation43_spill] sm:$0xff] %v4114_v16  ;;  %v689_v0 = vpop.f32.mrf.mxu1 }
 0x12f   :  { %v4118_v36 = vpop.f32.mrf.mxu0 }
 0x130   :  { %5429 = vst [vmem:[#allocation45_spill] sm:$0xff] %v4118_v36  ;;  %v4130_v60 = vpop.f32.mrf.mxu1 }
 0x131   :  { %v4122_v47 = vpop.f32.mrf.mxu0  ;;  %5435 = vst [vmem:[#allocation51_spill] sm:$0xff] %v4130_v60 }
 0x132   :  { %5431 = vst [vmem:[#allocation47_spill] sm:$0xff] %v4122_v47  ;;  %v693_v16 = vpop.f32.mrf.mxu1 }
 0x133   :  { %v428_v1 = vpop.f32.mrf.mxu0 }
 0x134   :  { %v4126_v28 = vadd.f32 %v689_v0, %v428_v1  ;;  %v4136_v36 = vpop.f32.mrf.mxu1 }
 0x135   :  { %v4128_v39 = vpop.f32.mrf.mxu0  ;;  %5438 = vst [vmem:[#allocation54_spill] sm:$0xff] %v4136_v36 }
 0x136   :  { %5433 = vst [vmem:[#allocation49_spill] sm:$0xff] %v4126_v28  ;;  %5434 = vst [vmem:[#allocation50_spill] sm:$0xff] %v4128_v39  ;;  %v699_v47 = vpop.f32.mrf.mxu1 }
 0x137   :  { %v432_v18 = vpop.f32.mrf.mxu0 }
 0x138   :  { %v4132_v25 = vadd.f32 %v693_v16, %v432_v18  ;;  %v4142_v0 = vpop.f32.mrf.mxu1 }
 0x139   :  { %v4134_v22 = vpop.f32.mrf.mxu0  ;;  %5441 = vst [vmem:[#allocation57_spill] sm:$0xff] %v4142_v0 }
 0x13a   :  { %5436 = vst [vmem:[#allocation52_spill] sm:$0xff] %v4132_v25  ;;  %5437 = vst [vmem:[#allocation53_spill] sm:$0xff] %v4134_v22  ;;  %v703_v28 = vpop.f32.mrf.mxu1 }
 0x13b   :  { %v438_v42 = vpop.f32.mrf.mxu0 }
 0x13c   :  { %v4138_v15 = vadd.f32 %v699_v47, %v438_v42  ;;  %v4148_v16 = vpop.f32.mrf.mxu1 }
 0x13d   :  { %v4140_v48 = vpop.f32.mrf.mxu0  ;;  %5444 = vst [vmem:[#allocation60_spill] sm:$0xff] %v4148_v16  ;;  %v1059_v16 = vsub.s32 0, %v3861_v12  ;;  %v572_v12 = vadd.f32 %v3888_v24, %v3886_v23 }
 0x13e   :  { %5439 = vst [vmem:[#allocation55_spill] sm:$0xff] %v4138_v15  ;;  %5440 = vst [vmem:[#allocation56_spill] sm:$0xff] %v4140_v48  ;;  %v709_v25 = vpop.f32.mrf.mxu1 }
 0x13f   :  { %v442_v1 = vpop.f32.mrf.mxu0 }
 0x140   :  { %v4144_v39 = vadd.f32 %v703_v28, %v442_v1  ;;  %v4154_v42 = vpop.f32.mrf.mxu1 }
 0x141   :  { %v4146_v60 = vpop.f32.mrf.mxu0 }
 0x142   :  { %5442 = vst [vmem:[#allocation58_spill] sm:$0xff] %v4144_v39  ;;  %5443 = vst [vmem:[#allocation59_spill] sm:$0xff] %v4146_v60  ;;  %v713_v15 = vpop.f32.mrf.mxu1 }
 0x143   :  { %v448_v18 = vpop.f32.mrf.mxu0 }
 0x144   :  { %v4150_v22 = vadd.f32 %v709_v25, %v448_v18  ;;  %v4160_v28 = vpop.f32.mrf.mxu1  ;;  %v3272_v25 = vld [vmem:[%s5373_s9 + $0x18] sm:$0xff]  }
 0x145   :  { %v4152_v36 = vpop.f32.mrf.mxu0  ;;  %5448 = vst [vmem:[#allocation64_spill] sm:$0xff] %v4160_v28  ;;  %3112 = vmatprep.subr.bf16.mxu1 %v3272_v25  ;;  %v4175_v28 = vrot.slane %v3878_v17, %v1059_v16 }
 0x146   :  { %5445 = vst [vmem:[#allocation61_spill] sm:$0xff] %v4150_v22  ;;  %v719_v39 = vpop.f32.mrf.mxu1 }
 0x147   :  { %v452_v47 = vpop.f32.mrf.mxu0 }
 0x148   :  { %v4156_v48 = vadd.f32 %v713_v15, %v452_v47  ;;  %v568_v15 = vadd.f32 %v3865_v14, %v3863_v13  ;;  %v578_v14 = vadd.f32 %v3899_v30, %v3897_v29  ;;  %v584_v30 = vadd.f32 %v3920_v41, %v3918_v40 }
 0x149   :  { %v4158_v0 = vpop.f32.mrf.mxu0  ;;  %v592_v40 = vadd.f32 %v3941_v51, %v3939_v50 }
 0x14a   :  { %5446 = vst [vmem:[#allocation62_spill] sm:$0xff] %v4156_v48  ;;  %5447 = vst [vmem:[#allocation63_spill] sm:$0xff] %v4158_v0 }
 0x14b   :  { %v458_v1 = vpop.f32.mrf.mxu0 }
 0x14c   :  { %v4162_v60 = vadd.f32 %v719_v39, %v458_v1 }
 0x14d   :  { %v4168_v18 = vpop.f32.mrf.mxu0 }
 0x14e   :  { %5449 = vst [vmem:[#allocation65_spill] sm:$0xff] %v4162_v60  ;;  %5450 = vst [vmem:[#allocation66_spill] sm:$0xff] %v4168_v18  ;;  %v574_v18 = vadd.f32 %v3892_v27, %v3890_v26  ;;  %v582_v26 = vadd.f32 %v3916_v38, %v3914_v37  ;;  %v588_v37 = vadd.f32 %v3927_v44, %v3925_v43  ;;  %v3273_v43 = vld [vmem:[%s5373_s9 + $0x10] sm:$0xff]  }
 0x14f   :  { %v4170_v22 = vpop.f32.mrf.mxu0 }
 0x150   :  { %5451 = vst [vmem:[#allocation67_spill] sm:$0xff] %v4170_v22 }
 0x151   :  { %v832_v47 = vpop.f32.mrf.mxu0 }
 0x152   :  { %v991_v48 = vadd.f32 %v832_v47, %v568_v15 }
 0x153   :  { %v834_v39 = vpop.f32.mrf.mxu0 }
 0x154   :  { %v4180_v1 = vadd.f32 %v834_v39, %v3881_v21  ;;  %v1067_v22 = vadd.f32 %v4175_v28, %v991_v48 }
 0x155   :  { %v836_v60 = vpop.f32.mrf.mxu0 }
 0x156   :  { %v993_v0 = vadd.f32 %v836_v60, %v572_v12  ;;  %v1131_v23 = vmax.f32 %v1067_v22, 0.0 }
 0x157   :  { %v838_v13 = vpop.f32.mrf.mxu0 }
 0x158   :  { %v1069_v17 = vadd.f32 %v4175_v28, %v993_v0  ;;  %v4188_v16 = vadd.f32 %v838_v13, %v574_v18 }
 0x159   :  { %v842_v15 = vpop.f32.mrf.mxu0 }
 0x15a   :  { %v1132_v24 = vmax.f32 %v1069_v17, 0.0  ;;  %v995_v21 = vadd.f32 %v842_v15, %v578_v14  ;;  %v1492_v47 = vpack.c.bf16 %v1069_v17, %v1067_v22 }
 0x15b   :  { %v844_v39 = vpop.f32.mrf.mxu0 }
 0x15c   :  { %v1163_v27 = vpack.c.bf16 %v1132_v24, %v1131_v23  ;;  %v4193_v48 = vadd.f32 %v844_v39, %v3909_v35  ;;  %1539 = vrot.lane.b32.xlu0 %v1492_v47, %s3409_s21  ;;  %v1071_v60 = vadd.f32 %v4175_v28, %v995_v21  ;;  %v594_v24 = vadd.f32 %v3945_v54, %v3943_v53 }
 0x15d   :  { %v846_v29 = vpop.f32.mrf.mxu0 }
 0x15e   :  { %v997_v0 = vadd.f32 %v846_v29, %v582_v26  ;;  %3080 = vmatprep.mubr.msk.bf16.mxu1 %vm1218_vm1, %v1163_v27  ;;  %v1133_v12 = vmax.f32 %v1071_v60, 0.0  ;;  %v3274_v26 = vld [vmem:[%s5373_s9 + $0x8] sm:$0xff]  }
 0x15f   :  { %v848_v22 = vpop.f32.mrf.mxu0 }
 0x160   :  { %v1073_v38 = vadd.f32 %v4175_v28, %v997_v0  ;;  %v4203_v35 = vadd.f32 %v848_v22, %v584_v30  ;;  %v3275_v0 = vld [vmem:[%s5373_s9] sm:$0xff]  }
 0x161   :  { %v852_v18 = vpop.f32.mrf.mxu0 }
 0x162   :  { %v1134_v13 = vmax.f32 %v1073_v38, 0.0  ;;  %v999_v14 = vadd.f32 %v852_v18, %v588_v37  ;;  %v1493_v17 = vpack.c.bf16 %v1073_v38, %v1071_v60  ;;  %v604_v37 = vadd.f32 %v3967_v3, %v3965_v2 }
 0x163   :  { %v854_v15 = vpop.f32.mrf.mxu0 }
 0x164   :  { %v1164_v41 = vpack.c.bf16 %v1134_v13, %v1133_v12  ;;  %v4208_v23 = vadd.f32 %v854_v15, %v3937_v49  ;;  %1541 = vrot.lane.b32.xlu0 %v1493_v17, %s3409_s21  ;;  %v1075_v21 = vadd.f32 %v4175_v28, %v999_v14  ;;  %v598_v49 = vadd.f32 %v3949_v56, %v3947_v55 }
 0x165   :  { %v856_v44 = vpop.f32.mrf.mxu0  ;;  %v610_v13 = vadd.f32 %v3983_v9, %v3981_v8  ;;  %v618_v9 = vadd.f32 %v3995_v20, %v3993_v19 }
 0x166   :  { %v1001_v47 = vadd.f32 %v856_v44, %v592_v40  ;;  %3081 = vmatmul.mubr.msk.bf16.vlgmr.msra.gmra.mxu1 %vm1218_vm1, %v1164_v41  ;;  %v1135_v54 = vmax.f32 %v1075_v21, 0.0  ;;  %v612_v41 = vadd.f32 %v3987_v11, %v3985_v10  ;;  %v620_v10 = vadd.f32 %v4007_v32, %v4005_v31 }
 0x167   :  { %v858_v50 = vpop.f32.mrf.mxu0  ;;  %3113 = vmatpush3.bf16.msra.mxu1 %v3272_v25  ;;  %v602_v25 = vadd.f32 %v3963_v63, %v3961_v62  ;;  %v628_v32 = vadd.f32 %v4019_v46, %v4017_v45 }
 0x168   :  { %v1077_v51 = vadd.f32 %v4175_v28, %v1001_v47  ;;  %v4221_v39 = vadd.f32 %v858_v50, %v594_v24  ;;  %3114 = vmatprep.subr.bf16.mxu1 %v3273_v43 }
 0x169   :  { %v862_v53 = vpop.f32.mrf.mxu0 }
 0x16a   :  { %v1136_v27 = vmax.f32 %v1077_v51, 0.0  ;;  %v1003_v29 = vadd.f32 %v862_v53, %v598_v49  ;;  %v1494_v30 = vpack.c.bf16 %v1077_v51, %v1075_v21  ;;  %v622_v53 = vadd.f32 %v4011_v34, %v4009_v33 }
 0x16b   :  { %v864_v60 = vpop.f32.mrf.mxu0  ;;  %3115 = vmatpush3.bf16.msra.mxu1 %v3273_v43  ;;  %v630_v33 = vadd.f32 %v4031_v57, %v4029_v52  ;;  %v638_v57 = vadd.f32 %v4043_v7, %v4041_v6 }
 0x16c   :  { %v1165_v55 = vpack.c.bf16 %v1136_v27, %v1135_v54  ;;  %v4229_v56 = vadd.f32 %v864_v60, %v3959_v61  ;;  %1543 = vrot.lane.b32.xlu1 %v1494_v30, %s3409_s21  ;;  %3116 = vmatprep.subr.bf16.mxu1 %v3274_v26  ;;  %v1079_v38 = vadd.f32 %v4175_v28, %v1003_v29 }
 0x16d   :  { %v866_v22 = vpop.f32.mrf.mxu0  ;;  %v608_v61 = vadd.f32 %v3971_v5, %v3969_v4 }
 0x16e   :  { %v1005_v18 = vadd.f32 %v866_v22, %v602_v25  ;;  %3084 = vmatprep.mubr.msk.bf16.mxu1 %vm1218_vm1, %v1165_v55  ;;  %v1137_v2 = vmax.f32 %v1079_v38, 0.0 }
 0x16f   :  { %v868_v62 = vpop.f32.mrf.mxu0  ;;  %3117 = vmatpush3.bf16.msra.mxu1 %v3274_v26 }
 0x170   :  { %v1081_v63 = vadd.f32 %v4175_v28, %v1005_v18  ;;  %v4242_v12 = vadd.f32 %v868_v62, %v604_v37  ;;  %3118 = vmatprep.subr.bf16.mxu1 %v3275_v0  ;;  %v632_v37 = vadd.f32 %v4035_v59, %v4033_v58  ;;  %v5453_v58 = vld [vmem:[#allocation10_spill] sm:$0xff] }
 0x171   :  { %v872_v14 = vpop.f32.mrf.mxu0 }
 0x172   :  { %v1138_v3 = vmax.f32 %v1081_v63, 0.0  ;;  %v1007_v17 = vadd.f32 %v872_v14, %v608_v61  ;;  %v1495_v15 = vpack.c.bf16 %v1081_v63, %v1079_v38  ;;  %v5452_v63 = vld [vmem:[#allocation9_spill] sm:$0xff] }
 0x173   :  { %v874_v40 = vpop.f32.mrf.mxu0  ;;  %3119 = vmatpush3.bf16.msra.mxu1 %v3275_v0  ;;  %v640_v59 = vadd.f32 %v5453_v58, %v5452_v63 }
 0x174   :  { %v1166_v43 = vpack.c.bf16 %v1138_v3, %v1137_v2  ;;  %v4248_v4 = vadd.f32 %v874_v40, %v610_v13  ;;  %1545 = vrot.lane.b32.xlu1 %v1495_v15, %s3409_s21  ;;  %v1083_v44 = vadd.f32 %v4175_v28, %v1007_v17  ;;  %v5454_v40 = vld [vmem:[#allocation11_spill] sm:$0xff] }
 0x175   :  { %v876_v5 = vpop.f32.mrf.mxu0 }
 0x176   :  { %v1009_v24 = vadd.f32 %v876_v5, %v612_v41  ;;  %3085 = vmatmul.mubr.msk.bf16.gmra.mxu1 %vm1218_vm1, %v1166_v43  ;;  %v1139_v47 = vmax.f32 %v1083_v44, 0.0  ;;  %v5455_v41 = vld [vmem:[#allocation12_spill] sm:$0xff] }
 0x177   :  { %v4253_v8 = vpop.f32.mrf.mxu0  ;;  %v642_v43 = vadd.f32 %v5455_v41, %v5454_v40 }
 0x178   :  { %v1085_v21 = vadd.f32 %v4175_v28, %v1009_v24 }
 0x179   :  { %v882_v11 = vpop.f32.mrf.mxu0 }
 0x17a   :  { %v1140_v50 = vmax.f32 %v1085_v21, 0.0  ;;  %v1011_v49 = vadd.f32 %v882_v11, %v618_v9  ;;  %v1496_v51 = vpack.c.bf16 %v1085_v21, %v1083_v44  ;;  %v5456_v21 = vld [vmem:[#allocation15_spill] sm:$0xff] }
 0x17b   :  { %v884_v26 = vpop.f32.mrf.mxu0 }
 0x17c   :  { %v1167_v54 = vpack.c.bf16 %v1140_v50, %v1139_v47  ;;  %v4262_v27 = vadd.f32 %v884_v26, %v620_v10  ;;  %1547 = vrot.lane.b32.xlu0 %v1496_v51, %s3409_s21  ;;  %v1087_v20 = vadd.f32 %v4175_v28, %v1011_v49  ;;  %v5457_v10 = vld [vmem:[#allocation16_spill] sm:$0xff]  ;;  %v5458_v50 = vld [vmem:[#allocation17_spill] sm:$0xff]  ;;  %v5459_v49 = vld [vmem:[#allocation18_spill] sm:$0xff] }
 0x17d   :  { %v886_v19 = vpop.f32.mrf.mxu0  ;;  %v648_v11 = vadd.f32 %v5457_v10, %v5456_v21  ;;  %v650_v51 = vadd.f32 %v5459_v49, %v5458_v50  ;;  %v5471_v21 = vld [vmem:[#allocation32_spill] sm:$0xff]  ;;  %v5473_v50 = vld [vmem:[#allocation34_spill] sm:$0xff] }
 0x17e   :  { %v1013_v29 = vadd.f32 %v886_v19, %v622_v53  ;;  %3088 = vmatprep.mubr.msk.bf16.mxu1 %vm1218_vm1, %v1167_v54  ;;  %v1141_v60 = vmax.f32 %v1087_v20, 0.0 }
 0x17f   :  { %v4267_v31 = vpop.f32.mrf.mxu0 }
 0x180   :  { %v1089_v30 = vadd.f32 %v4175_v28, %v1013_v29 }
 0x181   :  { %v892_v34 = vpop.f32.mrf.mxu0 }
 0x182   :  { %v1142_v25 = vmax.f32 %v1089_v30, 0.0  ;;  %v1015_v55 = vadd.f32 %v892_v34, %v628_v32  ;;  %v1497_v0 = vpack.c.bf16 %v1089_v30, %v1087_v20  ;;  %v5460_v32 = vld [vmem:[#allocation19_spill] sm:$0xff]  ;;  %v5461_v30 = vld [vmem:[#allocation20_spill] sm:$0xff] }
 0x183   :  { %v894_v22 = vpop.f32.mrf.mxu0 }
 0x184   :  { %v1168_v38 = vpack.c.bf16 %v1142_v25, %v1141_v60  ;;  %v4276_v18 = vadd.f32 %v894_v22, %v630_v33  ;;  %1549 = vrot.lane.b32.xlu1 %v1497_v0, %s3409_s21  ;;  %v1091_v46 = vadd.f32 %v4175_v28, %v1015_v55  ;;  %v652_v33 = vadd.f32 %v5461_v30, %v5460_v32  ;;  %v5475_v32 = vld [vmem:[#allocation36_spill] sm:$0xff] }
 0x185   :  { %v896_v45 = vpop.f32.mrf.mxu0 }
 0x186   :  { %v1017_v62 = vadd.f32 %v896_v45, %v632_v37  ;;  %3089 = vmatmul.mubr.msk.bf16.gmra.mxu1 %vm1218_vm1, %v1168_v38  ;;  %v1143_v14 = vmax.f32 %v1091_v46, 0.0  ;;  %v5463_v37 = vld [vmem:[#allocation23_spill] sm:$0xff]  ;;  %v5464_v38 = vld [vmem:[#allocation24_spill] sm:$0xff] }
 0x187   :  { %v4281_v52 = vpop.f32.mrf.mxu0  ;;  %v658_v45 = vadd.f32 %v5464_v38, %v5463_v37  ;;  %v5478_v38 = vld [vmem:[#allocation39_spill] sm:$0xff] }
 0x188   :  { %v1093_v61 = vadd.f32 %v4175_v28, %v1017_v62  ;;  %v5465_v62 = vld [vmem:[#allocation25_spill] sm:$0xff] }
 0x189   :  { %v902_v13 = vpop.f32.mrf.mxu0 }
 0x18a   :  { %v1144_v2 = vmax.f32 %v1093_v61, 0.0  ;;  %v1019_v3 = vadd.f32 %v902_v13, %v638_v57  ;;  %v1498_v17 = vpack.c.bf16 %v1093_v61, %v1091_v46  ;;  %v5466_v57 = vld [vmem:[#allocation26_spill] sm:$0xff] }
 0x18b   :  { %v904_v15 = vpop.f32.mrf.mxu0  ;;  %v660_v61 = vadd.f32 %v5466_v57, %v5465_v62  ;;  %v5480_v57 = vld [vmem:[#allocation41_spill] sm:$0xff] }
 0x18c   :  { %v1169_v5 = vpack.c.bf16 %v1144_v2, %v1143_v14  ;;  %v4290_v44 = vadd.f32 %v904_v15, %v640_v59  ;;  %1551 = vrot.lane.b32.xlu0 %v1498_v17, %s3409_s21  ;;  %v1095_v7 = vadd.f32 %v4175_v28, %v1019_v3  ;;  %v5467_v3 = vld [vmem:[#allocation27_spill] sm:$0xff]  ;;  %v5468_v17 = vld [vmem:[#allocation28_spill] sm:$0xff] }
 0x18d   :  { %v906_v6 = vpop.f32.mrf.mxu0  ;;  %v662_v15 = vadd.f32 %v5468_v17, %v5467_v3  ;;  %v5482_v17 = vld [vmem:[#allocation43_spill] sm:$0xff] }
 0x18e   :  { %v1021_v24 = vadd.f32 %v906_v6, %v642_v43  ;;  %3092 = vmatprep.mubr.msk.bf16.mxu1 %vm1218_vm1, %v1169_v5  ;;  %v1145_v53 = vmax.f32 %v1095_v7, 0.0 }
 0x18f   :  { %v4295_v9 = vpop.f32.mrf.mxu0 }
 0x190   :  { %v1097_v47 = vadd.f32 %v4175_v28, %v1021_v24  ;;  %v5470_v24 = vld [vmem:[#allocation31_spill] sm:$0xff] }
 0x191   :  { %v912_v26 = vpop.f32.mrf.mxu0  ;;  %v668_v10 = vadd.f32 %v5471_v21, %v5470_v24 }
 0x192   :  { %v1146_v54 = vmax.f32 %v1097_v47, 0.0  ;;  %v1023_v19 = vadd.f32 %v912_v26, %v648_v11  ;;  %v1499_v20 = vpack.c.bf16 %v1097_v47, %v1095_v7  ;;  %v5472_v47 = vld [vmem:[#allocation33_spill] sm:$0xff] }
 0x193   :  { %v914_v29 = vpop.f32.mrf.mxu0  ;;  %v670_v49 = vadd.f32 %v5473_v50, %v5472_v47  ;;  %v5487_v47 = vld [vmem:[#allocation48_spill] sm:$0xff] }
 0x194   :  { %v1170_v34 = vpack.c.bf16 %v1146_v54, %v1145_v53  ;;  %v4304_v60 = vadd.f32 %v914_v29, %v650_v51  ;;  %1553 = vrot.lane.b32.xlu1 %v1499_v20, %s3409_s21  ;;  %v1099_v55 = vadd.f32 %v4175_v28, %v1023_v19  ;;  %v5474_v29 = vld [vmem:[#allocation35_spill] sm:$0xff] }
 0x195   :  { %v916_v25 = vpop.f32.mrf.mxu0  ;;  %v672_v30 = vadd.f32 %v5475_v32, %v5474_v29  ;;  %v5488_v29 = vld [vmem:[#allocation50_spill] sm:$0xff]  ;;  %v5489_v32 = vld [vmem:[#allocation51_spill] sm:$0xff] }
 0x196   :  { %5462 = vst [vmem:[#allocation9_spill] sm:$0xff] %v4304_v60  ;;  %v1025_v0 = vadd.f32 %v916_v25, %v652_v33  ;;  %3093 = vmatmul.mubr.msk.bf16.gmra.mxu1 %vm1218_vm1, %v1170_v34  ;;  %v1147_v58 = vmax.f32 %v1099_v55, 0.0 }
 0x197   :  { %v4309_v22 = vpop.f32.mrf.mxu0 }
 0x198   :  { %v1101_v46 = vadd.f32 %v4175_v28, %v1025_v0 }
 0x199   :  { %v922_v63 = vpop.f32.mrf.mxu0 }
 0x19a   :  { %v1148_v59 = vmax.f32 %v1101_v46, 0.0  ;;  %v1027_v13 = vadd.f32 %v922_v63, %v658_v45  ;;  %v1500_v14 = vpack.c.bf16 %v1101_v46, %v1099_v55  ;;  %v5479_v45 = vld [vmem:[#allocation40_spill] sm:$0xff] }
 0x19b   :  { %v924_v2 = vpop.f32.mrf.mxu0  ;;  %v678_v46 = vadd.f32 %v5479_v45, %v5478_v38 }
 0x19c   :  { %v1171_v40 = vpack.c.bf16 %v1148_v59, %v1147_v58  ;;  %v4318_v41 = vadd.f32 %v924_v2, %v660_v61  ;;  %1555 = vrot.lane.b32.xlu0 %v1500_v14, %s3409_s21  ;;  %v1103_v5 = vadd.f32 %v4175_v28, %v1027_v13  ;;  %v5481_v61 = vld [vmem:[#allocation42_spill] sm:$0xff] }
 0x19d   :  { %v926_v43 = vpop.f32.mrf.mxu0  ;;  %v680_v63 = vadd.f32 %v5481_v61, %v5480_v57  ;;  %v5493_v57 = vld [vmem:[#allocation54_spill] sm:$0xff] }
 0x19e   :  { %5469 = vst [vmem:[#allocation10_spill] sm:$0xff] %v4318_v41  ;;  %v1029_v6 = vadd.f32 %v926_v43, %v662_v15  ;;  %3096 = vmatprep.mubr.msk.bf16.mxu1 %vm1218_vm1, %v1171_v40  ;;  %v1149_v26 = vmax.f32 %v1103_v5, 0.0  ;;  %v5483_v15 = vld [vmem:[#allocation44_spill] sm:$0xff] }
 0x19f   :  { %v4323_v7 = vpop.f32.mrf.mxu0  ;;  %v682_v40 = vadd.f32 %v5483_v15, %v5482_v17 }
 0x1a0   :  { %v1105_v11 = vadd.f32 %v4175_v28, %v1029_v6 }
 0x1a1   :  { %v932_v51 = vpop.f32.mrf.mxu0 }
 0x1a2   :  { %v1150_v53 = vmax.f32 %v1105_v11, 0.0  ;;  %v1031_v54 = vadd.f32 %v932_v51, %v668_v10  ;;  %v1501_v19 = vpack.c.bf16 %v1105_v11, %v1103_v5  ;;  %v5486_v11 = vld [vmem:[#allocation47_spill] sm:$0xff] }
 0x1a3   :  { %v934_v20 = vpop.f32.mrf.mxu0  ;;  %v688_v50 = vadd.f32 %v5487_v47, %v5486_v11 }
 0x1a4   :  { %v1172_v33 = vpack.c.bf16 %v1150_v53, %v1149_v26  ;;  %v4332_v34 = vadd.f32 %v934_v20, %v670_v49  ;;  %1557 = vrot.lane.b32.xlu1 %v1501_v19, %s3409_s21  ;;  %v1107_v55 = vadd.f32 %v4175_v28, %v1031_v54 }
 0x1a5   :  { %v936_v25 = vpop.f32.mrf.mxu0 }
 0x1a6   :  { %5476 = vst [vmem:[#allocation11_spill] sm:$0xff] %v4332_v34  ;;  %v1033_v0 = vadd.f32 %v936_v25, %v672_v30  ;;  %3097 = vmatmul.mubr.msk.bf16.gmra.mxu1 %vm1218_vm1, %v1172_v33  ;;  %v1151_v59 = vmax.f32 %v1107_v55, 0.0  ;;  %v692_v30 = vadd.f32 %v5489_v32, %v5488_v29  ;;  %v5490_v25 = vld [vmem:[#allocation49_spill] sm:$0xff] }
 0x1a7   :  { %v4337_v37 = vpop.f32.mrf.mxu0 }
 0x1a8   :  { %5477 = vst [vmem:[#allocation12_spill] sm:$0xff] %v4337_v37  ;;  %v1109_v62 = vadd.f32 %v4175_v28, %v1033_v0 }
 0x1a9   :  { %v942_v58 = vpop.f32.mrf.mxu0 }
 0x1aa   :  { %v1152_v13 = vmax.f32 %v1109_v62, 0.0  ;;  %v1035_v14 = vadd.f32 %v942_v58, %v678_v46  ;;  %v1502_v2 = vpack.c.bf16 %v1109_v62, %v1107_v55  ;;  %v5492_v62 = vld [vmem:[#allocation53_spill] sm:$0xff]  ;;  %v5494_v58 = vld [vmem:[#allocation52_spill] sm:$0xff] }
 0x1ab   :  { %v944_v3 = vpop.f32.mrf.mxu0  ;;  %v698_v61 = vadd.f32 %v5493_v57, %v5492_v62  ;;  %v5504_v62 = vld [vmem:[#allocation61_spill] sm:$0xff] }
 0x1ac   :  { %v1173_v43 = vpack.c.bf16 %v1152_v13, %v1151_v59  ;;  %v4346_v5 = vadd.f32 %v944_v3, %v680_v63  ;;  %1559 = vrot.lane.b32.xlu0 %v1502_v2, %s3409_s21  ;;  %v1111_v24 = vadd.f32 %v4175_v28, %v1035_v14 }
 0x1ad   :  { %v946_v6 = vpop.f32.mrf.mxu0 }
 0x1ae   :  { %5484 = vst [vmem:[#allocation15_spill] sm:$0xff] %v4346_v5  ;;  %v1037_v21 = vadd.f32 %v946_v6, %v682_v40  ;;  %3100 = vmatprep.mubr.msk.bf16.mxu1 %vm1218_vm1, %v1173_v43  ;;  %v1153_v26 = vmax.f32 %v1111_v24, 0.0  ;;  %v5496_v40 = vld [vmem:[#allocation56_spill] sm:$0xff]  ;;  %v5497_v43 = vld [vmem:[#allocation57_spill] sm:$0xff] }
 0x1af   :  { %v4351_v10 = vpop.f32.mrf.mxu0  ;;  %v702_v6 = vadd.f32 %v5497_v43, %v5496_v40 }
 0x1b0   :  { %5485 = vst [vmem:[#allocation16_spill] sm:$0xff] %v4351_v10  ;;  %v1113_v49 = vadd.f32 %v4175_v28, %v1037_v21  ;;  %v5498_v21 = vld [vmem:[#allocation55_spill] sm:$0xff] }
 0x1b1   :  { %v952_v51 = vpop.f32.mrf.mxu0 }
 0x1b2   :  { %v1154_v53 = vmax.f32 %v1113_v49, 0.0  ;;  %v1039_v54 = vadd.f32 %v952_v51, %v688_v50  ;;  %v1503_v19 = vpack.c.bf16 %v1113_v49, %v1111_v24 }
 0x1b3   :  { %v954_v20 = vpop.f32.mrf.mxu0 }
 0x1b4   :  { %v1174_v33 = vpack.c.bf16 %v1154_v53, %v1153_v26  ;;  %v4359_v55 = vadd.f32 %v954_v20, %v5490_v25  ;;  %1561 = vrot.lane.b32.xlu1 %v1503_v19, %s3409_s21  ;;  %v1115_v38 = vadd.f32 %v4175_v28, %v1039_v54  ;;  %v5500_v26 = vld [vmem:[#allocation59_spill] sm:$0xff]  ;;  %v5501_v53 = vld [vmem:[#allocation60_spill] sm:$0xff]  ;;  %v5502_v20 = vld [vmem:[#allocation58_spill] sm:$0xff] }
 0x1b5   :  { %v956_v0 = vpop.f32.mrf.mxu0  ;;  %v708_v54 = vadd.f32 %v5501_v53, %v5500_v26  ;;  %v5511_v26 = vld [vmem:[#allocation65_spill] sm:$0xff] }
 0x1b6   :  { %5491 = vst [vmem:[#allocation17_spill] sm:$0xff] %v4359_v55  ;;  %v1041_v45 = vadd.f32 %v956_v0, %v692_v30  ;;  %3101 = vmatmul.mubr.msk.bf16.gmra.mxu1 %vm1218_vm1, %v1174_v33  ;;  %v1155_v14 = vmax.f32 %v1115_v38, 0.0 }
 0x1b7   :  { %v958_v46 = vpop.f32.mrf.mxu0 }
 0x1b8   :  { %v1117_v63 = vadd.f32 %v4175_v28, %v1041_v45  ;;  %v4368_v59 = vadd.f32 %v958_v46, %v5494_v58  ;;  %v712_v45 = vadd.f32 %v4154_v42, %v4152_v36  ;;  %v721_v42 = vpop.f32.mrf.mxu1 }
 0x1b9   :  { %v962_v13 = vpop.f32.mrf.mxu0 }
 0x1ba   :  { %5495 = vst [vmem:[#allocation18_spill] sm:$0xff] %v4368_v59  ;;  %v1156_v2 = vmax.f32 %v1117_v63, 0.0  ;;  %v1043_v3 = vadd.f32 %v962_v13, %v698_v61  ;;  %v1504_v17 = vpack.c.bf16 %v1117_v63, %v1115_v38 }
 0x1bb   :  { %v964_v15 = vpop.f32.mrf.mxu0 }
 0x1bc   :  { %v1175_v24 = vpack.c.bf16 %v1156_v2, %v1155_v14  ;;  %v4373_v11 = vadd.f32 %v964_v15, %v5498_v21  ;;  %1563 = vrot.lane.b32.xlu0 %v1504_v17, %s3409_s21  ;;  %v1119_v50 = vadd.f32 %v4175_v28, %v1043_v3  ;;  %v5506_v14 = vld [vmem:[#allocation63_spill] sm:$0xff]  ;;  %v5507_v2 = vld [vmem:[#allocation64_spill] sm:$0xff]  ;;  %v5508_v15 = vld [vmem:[#allocation62_spill] sm:$0xff] }
 0x1bd   :  { %v966_v47 = vpop.f32.mrf.mxu0  ;;  %v718_v3 = vadd.f32 %v5507_v2, %v5506_v14 }
 0x1be   :  { %5499 = vst [vmem:[#allocation19_spill] sm:$0xff] %v4373_v11  ;;  %v1045_v49 = vadd.f32 %v966_v47, %v702_v6  ;;  %3104 = vmatprep.mubr.msk.bf16.mxu1 %vm1218_vm1, %v1175_v24  ;;  %v1157_v30 = vmax.f32 %v1119_v50, 0.0 }
 0x1bf   :  { %v968_v51 = vpop.f32.mrf.mxu0 }
 0x1c0   :  { %v1121_v19 = vadd.f32 %v4175_v28, %v1045_v49  ;;  %v4382_v29 = vadd.f32 %v968_v51, %v5502_v20 }
 0x1c1   :  { %v972_v32 = vpop.f32.mrf.mxu0 }
 0x1c2   :  { %5503 = vst [vmem:[#allocation20_spill] sm:$0xff] %v4382_v29  ;;  %v1158_v33 = vmax.f32 %v1121_v19, 0.0  ;;  %v1047_v25 = vadd.f32 %v972_v32, %v708_v54  ;;  %v1505_v0 = vpack.c.bf16 %v1121_v19, %v1119_v50  ;;  %v5510_v50 = vld [vmem:[#allocation66_spill] sm:$0xff] }
 0x1c3   :  { %v974_v38 = vpop.f32.mrf.mxu0  ;;  %v722_v49 = vadd.f32 %v721_v42, %v5510_v50  ;;  %v4428_v42 = vpop.f32.mrf.mxu1 }
 0x1c4   :  { %v1176_v46 = vpack.c.bf16 %v1158_v33, %v1157_v30  ;;  %v4387_v57 = vadd.f32 %v974_v38, %v5504_v62  ;;  %1565 = vrot.lane.b32.xlu1 %v1505_v0, %s3409_s21  ;;  %v1123_v63 = vadd.f32 %v4175_v28, %v1047_v25  ;;  %5513 = vst [vmem:[#allocation26_spill] sm:$0xff] %v4428_v42 }
 0x1c5   :  { %v976_v61 = vpop.f32.mrf.mxu0 }
 0x1c6   :  { %5505 = vst [vmem:[#allocation23_spill] sm:$0xff] %v4387_v57  ;;  %v1049_v58 = vadd.f32 %v976_v61, %v712_v45  ;;  %3105 = vmatmul.mubr.msk.bf16.gmra.mxu1 %vm1218_vm1, %v1176_v46  ;;  %v1159_v43 = vmax.f32 %v1123_v63, 0.0 }
 0x1c7   :  { %v978_v13 = vpop.f32.mrf.mxu0 }
 0x1c8   :  { %v1125_v17 = vadd.f32 %v4175_v28, %v1049_v58  ;;  %v4396_v36 = vadd.f32 %v978_v13, %v5508_v15  ;;  %v3277_v13 = vld [vmem:[%s5374_s11 + $0x10] sm:$0xff]   ;;  %v3278_v15 = vld [vmem:[%s5374_s11 + $0x8] sm:$0xff]  }
 0x1c9   :  { %v982_v40 = vpop.f32.mrf.mxu0 }
 0x1ca   :  { %5509 = vst [vmem:[#allocation24_spill] sm:$0xff] %v4396_v36  ;;  %v1160_v6 = vmax.f32 %v1125_v17, 0.0  ;;  %v1051_v24 = vadd.f32 %v982_v40, %v718_v3  ;;  %v1506_v21 = vpack.c.bf16 %v1125_v17, %v1123_v63  ;;  %v4433_v40 = vld [vmem:[%s5375_s8] ss:$0 sm:$0xff] }
 0x1cb   :  { %v984_v47 = vpop.f32.mrf.mxu0 }
 0x1cc   :  { %v1177_v51 = vpack.c.bf16 %v1160_v6, %v1159_v43  ;;  %v4400_v53 = vadd.f32 %v984_v47, %v5511_v26  ;;  %1567 = vrot.lane.b32.xlu0 %v1506_v21, %s3409_s21  ;;  %v1127_v19 = vadd.f32 %v4175_v28, %v1051_v24  ;;  %v3279_v24 = vld [vmem:[%s5374_s11] sm:$0xff]  }
 0x1cd   :  { %v986_v54 = vpop.f32.mrf.mxu0 }
 0x1ce   :  { %5512 = vst [vmem:[#allocation25_spill] sm:$0xff] %v4400_v53  ;;  %v1053_v20 = vadd.f32 %v986_v54, %v722_v49  ;;  %3108 = vmatprep.mubr.msk.bf16.mxu1 %vm1218_vm1, %v1177_v51  ;;  %v1161_v30 = vmax.f32 %v1127_v19, 0.0  ;;  %v1540_v38 = vpop.permute.xlu0 %1539 }
 0x1d0   :  { %v1129_v32 = vadd.f32 %v4175_v28, %v1053_v20  ;;  %v3276_v28 = vld [vmem:[%s5374_s11 + $0x18] sm:$0xff]  }
 0x1d1   :  { %3152 = vmatprep.subr.bf16.mxu0 %v3276_v28 }
 0x1d2   :  { %v1162_v33 = vmax.f32 %v1129_v32, 0.0  ;;  %v1507_v25 = vpack.c.bf16 %v1129_v32, %v1127_v19  ;;  %3153 = vmatpush3.bf16.msra.mxu0 %v3276_v28 }
 0x1d3   :  { %3154 = vmatprep.subr.bf16.mxu0 %v3277_v13 }
 0x1d4   :  { %v1178_v0 = vpack.c.bf16 %v1162_v33, %v1161_v30  ;;  %1569 = vrot.lane.b32.xlu1 %v1507_v25, %s3409_s21 }
 0x1d6   :  { %3109 = vmatmul.mubr.msk.bf16.gmra.mxu1 %vm1218_vm1, %v1178_v0  ;;  %v1542_v45 = vpop.permute.xlu0 %1541  ;;  %3155 = vmatpush3.bf16.msra.mxu0 %v3277_v13 }
 0x1d7   :  { %3120 = vmatprep.mubr.msk.bf16.mxu1 %vm1218_vm1, %v1540_v38  ;;  %3156 = vmatprep.subr.bf16.mxu0 %v3278_v15 }
 0x1da   :  { %3157 = vmatpush3.bf16.msra.mxu0 %v3278_v15 }
 0x1db   :  { %3158 = vmatprep.subr.bf16.mxu0 %v3279_v24 }
 0x1de   :  { %v1544_v46 = vpop.permute.xlu1 %1543  ;;  %3121 = vmatmul.mubr.msk.bf16.vlgmr.msra.gmra.mxu1 %vm1218_vm1, %v1542_v45  ;;  %3159 = vmatpush3.bf16.msra.mxu0 %v3279_v24 }
 0x1df   :  { %3124 = vmatprep.mubr.msk.bf16.mxu1 %vm1218_vm1, %v1544_v46 }
 0x1e6   :  { %v1546_v62 = vpop.permute.xlu1 %1545 }
 0x1e7   :  { %3125 = vmatmul.mubr.msk.bf16.gmra.mxu1 %vm1218_vm1, %v1546_v62 }
 0x1ee   :  { %v1548_v61 = vpop.permute.xlu0 %1547 }
 0x1ef   :  { %3128 = vmatprep.mubr.msk.bf16.mxu1 %vm1218_vm1, %v1548_v61 }
 0x1f6   :  { %v1550_v63 = vpop.permute.xlu1 %1549 }
 0x1f7   :  { %3129 = vmatmul.mubr.msk.bf16.gmra.mxu1 %vm1218_vm1, %v1550_v63 }
 0x1fe   :  { %v1552_v58 = vpop.permute.xlu0 %1551 }
 0x1ff   :  { %3132 = vmatprep.mubr.msk.bf16.mxu1 %vm1218_vm1, %v1552_v58 }
 0x206   :  { %v1554_v14 = vpop.permute.xlu1 %1553 }
 0x207   :  { %3133 = vmatmul.mubr.msk.bf16.gmra.mxu1 %vm1218_vm1, %v1554_v14 }
 0x20e   :  { %v1556_v2 = vpop.permute.xlu0 %1555 }
 0x20f   :  { %3136 = vmatprep.mubr.msk.bf16.mxu1 %vm1218_vm1, %v1556_v2 }
 0x216   :  { %v1558_v3 = vpop.permute.xlu1 %1557 }
 0x217   :  { %3137 = vmatmul.mubr.msk.bf16.gmra.mxu1 %vm1218_vm1, %v1558_v3 }
 0x21e   :  { %v1560_v17 = vpop.permute.xlu0 %1559 }
 0x21f   :  { %3140 = vmatprep.mubr.msk.bf16.mxu1 %vm1218_vm1, %v1560_v17 }
 0x226   :  { %v1562_v43 = vpop.permute.xlu1 %1561  ;;  %v3082_v6 = vpop.f32.mrf.mxu1 }
 0x227   :  { %v1310_v21 = vadd.f32 %v3082_v6, %v4433_v40  ;;  %3141 = vmatmul.mubr.msk.bf16.gmra.mxu1 %vm1218_vm1, %v1562_v43 }
 0x228   :  { %v1301_v47 = vpop.f32.mrf.mxu1 }
 0x229   :  { %v1430_v50 = vmax.f32 %v1310_v21, 0.0  ;;  %v1302_v49 = vadd.f32 %v4433_v40, %v1301_v47 }
 0x22a   :  { %v3083_v51 = vpop.f32.mrf.mxu1 }
 0x22b   :  { %1462 = vst.msk [vmem:[%s5376_s15 + $0x10] sm:$0xff] %vm223_vm0, %v1430_v50  ;;  %v1428_v26 = vmax.f32 %v1302_v49, 0.0  ;;  %v1313_v54 = vadd.f32 %v3083_v51, %v4433_v40 }
 0x22c   :  { %v1304_v19 = vpop.f32.mrf.mxu1 }
 0x22d   :  { %1460 = vst.msk [vmem:[%s5376_s15] sm:$0xff] %vm223_vm0, %v1428_v26  ;;  %v1431_v20 = vmax.f32 %v1313_v54, 0.0  ;;  %v1305_v32 = vadd.f32 %v4433_v40, %v1304_v19 }
 0x22e   :  { %v1564_v30 = vpop.permute.xlu0 %1563 }
 0x22f   :  { %1463 = vst.msk [vmem:[%s5376_s15 + $0x18] sm:$0xff] %vm223_vm0, %v1431_v20  ;;  %v1429_v33 = vmax.f32 %v1305_v32, 0.0  ;;  %3144 = vmatprep.mubr.msk.bf16.mxu1 %vm1218_vm1, %v1564_v30 }
 0x231   :  { %1461 = vst.msk [vmem:[%s5376_s15 + $0x8] sm:$0xff] %vm223_vm0, %v1429_v33 }
 0x236   :  { %v1566_v25 = vpop.permute.xlu1 %1565  ;;  %v3086_v0 = vpop.f32.mrf.mxu1 }
 0x237   :  { %v1326_v38 = vadd.f32 %v3086_v0, %v4433_v40  ;;  %3145 = vmatmul.mubr.msk.bf16.gmra.mxu1 %vm1218_vm1, %v1566_v25 }
 0x238   :  { %v1317_v45 = vpop.f32.mrf.mxu1 }
 0x239   :  { %v1434_v46 = vmax.f32 %v1326_v38, 0.0  ;;  %v1318_v28 = vadd.f32 %v4433_v40, %v1317_v45 }
 0x23a   :  { %v3087_v62 = vpop.f32.mrf.mxu1 }
 0x23b   :  { %1466 = vst.msk [vmem:[%s5376_s15 + $0x30] sm:$0xff] %vm223_vm0, %v1434_v46  ;;  %v1432_v61 = vmax.f32 %v1318_v28, 0.0  ;;  %v1329_v63 = vadd.f32 %v3087_v62, %v4433_v40 }
 0x23c   :  { %v1320_v58 = vpop.f32.mrf.mxu1 }
 0x23d   :  { %1464 = vst.msk [vmem:[%s5376_s15 + $0x20] sm:$0xff] %vm223_vm0, %v1432_v61  ;;  %v1435_v13 = vmax.f32 %v1329_v63, 0.0  ;;  %v1321_v14 = vadd.f32 %v4433_v40, %v1320_v58 }
 0x23e   :  { %v1568_v2 = vpop.permute.xlu0 %1567 }
 0x23f   :  { %1467 = vst.msk [vmem:[%s5376_s15 + $0x38] sm:$0xff] %vm223_vm0, %v1435_v13  ;;  %v1433_v3 = vmax.f32 %v1321_v14, 0.0  ;;  %3148 = vmatprep.mubr.msk.bf16.mxu1 %vm1218_vm1, %v1568_v2 }
 0x241   :  { %1465 = vst.msk [vmem:[%s5376_s15 + $0x28] sm:$0xff] %vm223_vm0, %v1433_v3 }
 0x246   :  { %v1570_v17 = vpop.permute.xlu1 %1569  ;;  %v3090_v15 = vpop.f32.mrf.mxu1 }
 0x247   :  { %v1342_v43 = vadd.f32 %v3090_v15, %v4433_v40  ;;  %3149 = vmatmul.mubr.msk.bf16.gmra.mxu1 %vm1218_vm1, %v1570_v17 }
 0x248   :  { %v1333_v6 = vpop.f32.mrf.mxu1 }
 0x249   :  { %v1438_v24 = vmax.f32 %v1342_v43, 0.0  ;;  %v1334_v21 = vadd.f32 %v4433_v40, %v1333_v6 }
 0x24a   :  { %v3091_v47 = vpop.f32.mrf.mxu1 }
 0x24b   :  { %1470 = vst.msk [vmem:[%s5376_s15 + $0x50] sm:$0xff] %vm223_vm0, %v1438_v24  ;;  %v1436_v50 = vmax.f32 %v1334_v21, 0.0  ;;  %v1345_v49 = vadd.f32 %v3091_v47, %v4433_v40 }
 0x24c   :  { %v1336_v51 = vpop.f32.mrf.mxu1 }
 0x24d   :  { %1468 = vst.msk [vmem:[%s5376_s15 + $0x40] sm:$0xff] %vm223_vm0, %v1436_v50  ;;  %v1439_v26 = vmax.f32 %v1345_v49, 0.0  ;;  %v1337_v54 = vadd.f32 %v4433_v40, %v1336_v51 }
 0x24f   :  { %1471 = vst.msk [vmem:[%s5376_s15 + $0x58] sm:$0xff] %vm223_vm0, %v1439_v26  ;;  %v1437_v19 = vmax.f32 %v1337_v54, 0.0 }
 0x251   :  { %1469 = vst.msk [vmem:[%s5376_s15 + $0x48] sm:$0xff] %vm223_vm0, %v1437_v19 }
 0x256   :  { %v3094_v20 = vpop.f32.mrf.mxu1 }
 0x257   :  { %v1358_v32 = vadd.f32 %v3094_v20, %v4433_v40 }
 0x258   :  { %v1349_v30 = vpop.f32.mrf.mxu1 }
 0x259   :  { %v1442_v33 = vmax.f32 %v1358_v32, 0.0  ;;  %v1350_v25 = vadd.f32 %v4433_v40, %v1349_v30 }
 0x25a   :  { %v3095_v0 = vpop.f32.mrf.mxu1 }
 0x25b   :  { %1474 = vst.msk [vmem:[%s5376_s15 + $0x70] sm:$0xff] %vm223_vm0, %v1442_v33  ;;  %v1440_v38 = vmax.f32 %v1350_v25, 0.0  ;;  %v1361_v45 = vadd.f32 %v3095_v0, %v4433_v40 }
 0x25c   :  { %v1352_v46 = vpop.f32.mrf.mxu1 }
 0x25d   :  { %1472 = vst.msk [vmem:[%s5376_s15 + $0x60] sm:$0xff] %vm223_vm0, %v1440_v38  ;;  %v1443_v28 = vmax.f32 %v1361_v45, 0.0  ;;  %v1353_v62 = vadd.f32 %v4433_v40, %v1352_v46 }
 0x25f   :  { %1475 = vst.msk [vmem:[%s5376_s15 + $0x78] sm:$0xff] %vm223_vm0, %v1443_v28  ;;  %v1441_v61 = vmax.f32 %v1353_v62, 0.0 }
 0x261   :  { %1473 = vst.msk [vmem:[%s5376_s15 + $0x68] sm:$0xff] %vm223_vm0, %v1441_v61 }
 0x266   :  { %v3098_v63 = vpop.f32.mrf.mxu1 }
 0x267   :  { %v1374_v58 = vadd.f32 %v3098_v63, %v4433_v40 }
 0x268   :  { %v1365_v13 = vpop.f32.mrf.mxu1 }
 0x269   :  { %v1446_v14 = vmax.f32 %v1374_v58, 0.0  ;;  %v1366_v2 = vadd.f32 %v4433_v40, %v1365_v13 }
 0x26a   :  { %v3099_v3 = vpop.f32.mrf.mxu1 }
 0x26b   :  { %1478 = vst.msk [vmem:[%s5376_s15 + $0x90] sm:$0xff] %vm223_vm0, %v1446_v14  ;;  %v1444_v17 = vmax.f32 %v1366_v2, 0.0  ;;  %v1377_v15 = vadd.f32 %v3099_v3, %v4433_v40 }
 0x26c   :  { %v1368_v43 = vpop.f32.mrf.mxu1 }
 0x26d   :  { %1476 = vst.msk [vmem:[%s5376_s15 + $0x80] sm:$0xff] %vm223_vm0, %v1444_v17  ;;  %v1447_v6 = vmax.f32 %v1377_v15, 0.0  ;;  %v1369_v24 = vadd.f32 %v4433_v40, %v1368_v43 }
 0x26f   :  { %1479 = vst.msk [vmem:[%s5376_s15 + $0x98] sm:$0xff] %vm223_vm0, %v1447_v6  ;;  %v1445_v21 = vmax.f32 %v1369_v24, 0.0 }
 0x271   :  { %1477 = vst.msk [vmem:[%s5376_s15 + $0x88] sm:$0xff] %vm223_vm0, %v1445_v21 }
 0x276   :  { %v3102_v47 = vpop.f32.mrf.mxu1 }
 0x277   :  { %v1390_v50 = vadd.f32 %v3102_v47, %v4433_v40 }
 0x278   :  { %v1381_v49 = vpop.f32.mrf.mxu1 }
 0x279   :  { %v1450_v51 = vmax.f32 %v1390_v50, 0.0  ;;  %v1382_v26 = vadd.f32 %v4433_v40, %v1381_v49 }
 0x27a   :  { %v3103_v54 = vpop.f32.mrf.mxu1 }
 0x27b   :  { %1482 = vst.msk [vmem:[%s5376_s15 + $0xb0] sm:$0xff] %vm223_vm0, %v1450_v51  ;;  %v1448_v19 = vmax.f32 %v1382_v26, 0.0  ;;  %v1393_v20 = vadd.f32 %v3103_v54, %v4433_v40 }
 0x27c   :  { %v1384_v32 = vpop.f32.mrf.mxu1 }
 0x27d   :  { %1480 = vst.msk [vmem:[%s5376_s15 + $0xa0] sm:$0xff] %vm223_vm0, %v1448_v19  ;;  %v1451_v30 = vmax.f32 %v1393_v20, 0.0  ;;  %v1385_v33 = vadd.f32 %v4433_v40, %v1384_v32  ;;  %v4606_v20 = vld [vmem:[%s5377_s10] ss:$0 sm:$0xff] }
 0x27f   :  { %1483 = vst.msk [vmem:[%s5376_s15 + $0xb8] sm:$0xff] %vm223_vm0, %v1451_v30  ;;  %v1449_v25 = vmax.f32 %v1385_v33, 0.0 }
 0x281   :  { %1481 = vst.msk [vmem:[%s5376_s15 + $0xa8] sm:$0xff] %vm223_vm0, %v1449_v25 }
 0x286   :  { %v3106_v0 = vpop.f32.mrf.mxu1 }
 0x287   :  { %v1406_v38 = vadd.f32 %v3106_v0, %v4433_v40 }
 0x288   :  { %v1397_v45 = vpop.f32.mrf.mxu1 }
 0x289   :  { %v1454_v46 = vmax.f32 %v1406_v38, 0.0  ;;  %v1398_v28 = vadd.f32 %v4433_v40, %v1397_v45 }
 0x28a   :  { %v3107_v62 = vpop.f32.mrf.mxu1 }
 0x28b   :  { %1486 = vst.msk [vmem:[%s5376_s15 + $0xd0] sm:$0xff] %vm223_vm0, %v1454_v46  ;;  %v1452_v61 = vmax.f32 %v1398_v28, 0.0  ;;  %v1409_v63 = vadd.f32 %v3107_v62, %v4433_v40 }
 0x28c   :  { %v1400_v58 = vpop.f32.mrf.mxu1 }
 0x28d   :  { %1484 = vst.msk [vmem:[%s5376_s15 + $0xc0] sm:$0xff] %vm223_vm0, %v1452_v61  ;;  %v1455_v13 = vmax.f32 %v1409_v63, 0.0  ;;  %v1401_v14 = vadd.f32 %v4433_v40, %v1400_v58 }
 0x28f   :  { %1487 = vst.msk [vmem:[%s5376_s15 + $0xd8] sm:$0xff] %vm223_vm0, %v1455_v13  ;;  %v1453_v2 = vmax.f32 %v1401_v14, 0.0 }
 0x291   :  { %1485 = vst.msk [vmem:[%s5376_s15 + $0xc8] sm:$0xff] %vm223_vm0, %v1453_v2 }
 0x296   :  { %v3110_v3 = vpop.f32.mrf.mxu1 }
 0x297   :  { %v1422_v17 = vadd.f32 %v3110_v3, %v4433_v40 }
 0x298   :  { %v1413_v15 = vpop.f32.mrf.mxu1 }
 0x299   :  { %v1458_v43 = vmax.f32 %v1422_v17, 0.0  ;;  %v1414_v6 = vadd.f32 %v4433_v40, %v1413_v15 }
 0x29a   :  { %v3111_v24 = vpop.f32.mrf.mxu1 }
 0x29b   :  { %1490 = vst.msk [vmem:[%s5376_s15 + $0xf0] sm:$0xff] %vm223_vm0, %v1458_v43  ;;  %v1456_v21 = vmax.f32 %v1414_v6, 0.0  ;;  %v1425_v47 = vadd.f32 %v3111_v24, %v4433_v40 }
 0x29c   :  { %v1416_v50 = vpop.f32.mrf.mxu1 }
 0x29d   :  { %1488 = vst.msk [vmem:[%s5376_s15 + $0xe0] sm:$0xff] %vm223_vm0, %v1456_v21  ;;  %v1459_v49 = vmax.f32 %v1425_v47, 0.0  ;;  %v1417_v51 = vadd.f32 %v4433_v40, %v1416_v50 }
 0x29e   :  { %v3122_v26 = vpop.f32.mrf.mxu1 }
 0x29f   :  { %1491 = vst.msk [vmem:[%s5376_s15 + $0xf8] sm:$0xff] %vm223_vm0, %v1459_v49  ;;  %v1457_v54 = vmax.f32 %v1417_v51, 0.0  ;;  %v1686_v33 = vadd.f32 %v3122_v26, %v4606_v20 }
 0x2a0   :  { %v1677_v19 = vpop.f32.mrf.mxu1 }
 0x2a1   :  { %1489 = vst.msk [vmem:[%s5376_s15 + $0xe8] sm:$0xff] %vm223_vm0, %v1457_v54  ;;  %v1678_v40 = vadd.f32 %v4606_v20, %v1677_v19  ;;  %v1806_v62 = vmax.f32 %v1686_v33, 0.0 }
 0x2a2   :  { %v3123_v32 = vpop.f32.mrf.mxu1 }
 0x2a3   :  { %v1689_v30 = vadd.f32 %v3123_v32, %v4606_v20  ;;  %v1804_v45 = vmax.f32 %v1678_v40, 0.0 }
 0x2a4   :  { %v1680_v25 = vpop.f32.mrf.mxu1 }
 0x2a5   :  { %v1681_v0 = vadd.f32 %v4606_v20, %v1680_v25  ;;  %v1807_v38 = vmax.f32 %v1689_v30, 0.0 }
 0x2a7   :  { %v1805_v46 = vmax.f32 %v1681_v0, 0.0  ;;  %v3126_v28 = vpop.f32.mrf.mxu1  ;;  %v1837_v58 = vpack.c.bf16 %v1807_v38, %v1806_v62 }
 0x2a8   :  { %v1702_v3 = vadd.f32 %v3126_v28, %v4606_v20 }
 0x2a9   :  { %v1836_v61 = vpack.c.bf16 %v1805_v46, %v1804_v45  ;;  %v1693_v63 = vpop.f32.mrf.mxu1 }
 0x2aa   :  { %v1694_v14 = vadd.f32 %v4606_v20, %v1693_v63  ;;  %v1810_v21 = vmax.f32 %v1702_v3, 0.0 }
 0x2ab   :  { %v3127_v13 = vpop.f32.mrf.mxu1  ;;  %3160 = vmatprep.mubr.msk.bf16.mxu0 %vm1218_vm1, %v1836_v61 }
 0x2ac   :  { %v1705_v2 = vadd.f32 %v3127_v13, %v4606_v20  ;;  %3161 = vmatmul.mubr.msk.bf16.vlgmr.msra.gmra.mxu0 %vm1218_vm1, %v1837_v58  ;;  %v1808_v6 = vmax.f32 %v1694_v14, 0.0 }
 0x2ad   :  { %v1696_v17 = vpop.f32.mrf.mxu1 }
 0x2ae   :  { %v1697_v15 = vadd.f32 %v4606_v20, %v1696_v17  ;;  %v1811_v43 = vmax.f32 %v1705_v2, 0.0 }
 0x2b0   :  { %v1809_v24 = vmax.f32 %v1697_v15, 0.0  ;;  %v1839_v50 = vpack.c.bf16 %v1811_v43, %v1810_v21 }
 0x2b2   :  { %v1838_v47 = vpack.c.bf16 %v1809_v24, %v1808_v6 }
 0x2b4   :  { %3164 = vmatprep.mubr.msk.bf16.mxu0 %vm1218_vm1, %v1838_v47 }
 0x2b5   :  { %3165 = vmatmul.mubr.msk.bf16.gmra.mxu0 %vm1218_vm1, %v1839_v50 }
 0x2b7   :  { %v3130_v49 = vpop.f32.mrf.mxu1 }
 0x2b8   :  { %v1718_v32 = vadd.f32 %v3130_v49, %v4606_v20 }
 0x2b9   :  { %v1709_v51 = vpop.f32.mrf.mxu1 }
 0x2ba   :  { %v1710_v54 = vadd.f32 %v4606_v20, %v1709_v51  ;;  %v1814_v38 = vmax.f32 %v1718_v32, 0.0 }
 0x2bb   :  { %v3131_v26 = vpop.f32.mrf.mxu1 }
 0x2bc   :  { %v1721_v19 = vadd.f32 %v3131_v26, %v4606_v20  ;;  %v1812_v25 = vmax.f32 %v1710_v54, 0.0 }
 0x2bd   :  { %v1712_v40 = vpop.f32.mrf.mxu1 }
 0x2be   :  { %v1713_v30 = vadd.f32 %v4606_v20, %v1712_v40  ;;  %v1815_v33 = vmax.f32 %v1721_v19, 0.0 }
 0x2c0   :  { %v1813_v0 = vmax.f32 %v1713_v30, 0.0  ;;  %v1841_v46 = vpack.c.bf16 %v1815_v33, %v1814_v38 }
 0x2c2   :  { %v1840_v45 = vpack.c.bf16 %v1813_v0, %v1812_v25 }
 0x2c4   :  { %3168 = vmatprep.mubr.msk.bf16.mxu0 %vm1218_vm1, %v1840_v45 }
 0x2c5   :  { %3169 = vmatmul.mubr.msk.bf16.gmra.mxu0 %vm1218_vm1, %v1841_v46 }
 0x2c7   :  { %v3134_v28 = vpop.f32.mrf.mxu1 }
 0x2c8   :  { %v1734_v13 = vadd.f32 %v3134_v28, %v4606_v20 }
 0x2c9   :  { %v1725_v62 = vpop.f32.mrf.mxu1 }
 0x2ca   :  { %v1726_v63 = vadd.f32 %v4606_v20, %v1725_v62  ;;  %v1818_v43 = vmax.f32 %v1734_v13, 0.0 }
 0x2cb   :  { %v3135_v61 = vpop.f32.mrf.mxu1 }
 0x2cc   :  { %v1737_v58 = vadd.f32 %v3135_v61, %v4606_v20  ;;  %v1816_v17 = vmax.f32 %v1726_v63, 0.0 }
 0x2cd   :  { %v1728_v14 = vpop.f32.mrf.mxu1 }
 0x2ce   :  { %v1729_v2 = vadd.f32 %v4606_v20, %v1728_v14  ;;  %v1819_v3 = vmax.f32 %v1737_v58, 0.0 }
 0x2d0   :  { %v1817_v15 = vmax.f32 %v1729_v2, 0.0  ;;  %v1843_v24 = vpack.c.bf16 %v1819_v3, %v1818_v43 }
 0x2d2   :  { %v1842_v6 = vpack.c.bf16 %v1817_v15, %v1816_v17 }
 0x2d4   :  { %3172 = vmatprep.mubr.msk.bf16.mxu0 %vm1218_vm1, %v1842_v6 }
 0x2d5   :  { %3173 = vmatmul.mubr.msk.bf16.gmra.mxu0 %vm1218_vm1, %v1843_v24 }
 0x2d7   :  { %v3138_v21 = vpop.f32.mrf.mxu1 }
 0x2d8   :  { %v1750_v26 = vadd.f32 %v3138_v21, %v4606_v20 }
 0x2d9   :  { %v1741_v47 = vpop.f32.mrf.mxu1 }
 0x2da   :  { %v1742_v49 = vadd.f32 %v4606_v20, %v1741_v47  ;;  %v1822_v33 = vmax.f32 %v1750_v26, 0.0 }
 0x2db   :  { %v3139_v50 = vpop.f32.mrf.mxu1 }
 0x2dc   :  { %v1753_v51 = vadd.f32 %v3139_v50, %v4606_v20  ;;  %v1820_v40 = vmax.f32 %v1742_v49, 0.0 }
 0x2dd   :  { %v1744_v54 = vpop.f32.mrf.mxu1 }
 0x2de   :  { %v1745_v19 = vadd.f32 %v4606_v20, %v1744_v54  ;;  %v1823_v32 = vmax.f32 %v1753_v51, 0.0 }
 0x2e0   :  { %v1821_v30 = vmax.f32 %v1745_v19, 0.0  ;;  %v1845_v0 = vpack.c.bf16 %v1823_v32, %v1822_v33 }
 0x2e2   :  { %v1844_v25 = vpack.c.bf16 %v1821_v30, %v1820_v40 }
 0x2e4   :  { %3176 = vmatprep.mubr.msk.bf16.mxu0 %vm1218_vm1, %v1844_v25 }
 0x2e5   :  { %3177 = vmatmul.mubr.msk.bf16.gmra.mxu0 %vm1218_vm1, %v1845_v0 }
 0x2e7   :  { %v3142_v38 = vpop.f32.mrf.mxu1 }
 0x2e8   :  { %v1766_v61 = vadd.f32 %v3142_v38, %v4606_v20 }
 0x2e9   :  { %v1757_v45 = vpop.f32.mrf.mxu1 }
 0x2ea   :  { %v1758_v28 = vadd.f32 %v4606_v20, %v1757_v45  ;;  %v1826_v3 = vmax.f32 %v1766_v61, 0.0 }
 0x2eb   :  { %v3143_v46 = vpop.f32.mrf.mxu1 }
 0x2ec   :  { %v1769_v62 = vadd.f32 %v3143_v46, %v4606_v20  ;;  %v1824_v14 = vmax.f32 %v1758_v28, 0.0 }
 0x2ed   :  { %v1760_v63 = vpop.f32.mrf.mxu1 }
 0x2ee   :  { %v1761_v58 = vadd.f32 %v4606_v20, %v1760_v63  ;;  %v1827_v13 = vmax.f32 %v1769_v62, 0.0 }
 0x2f0   :  { %v1825_v2 = vmax.f32 %v1761_v58, 0.0  ;;  %v1847_v15 = vpack.c.bf16 %v1827_v13, %v1826_v3  ;;  %v4656_v3 = vpop.f32.mrf.mxu0 }
 0x2f1   :  { %5514 = vst [vmem:[#allocation27_spill] sm:$0xff] %v4656_v3 }
 0x2f2   :  { %v1846_v17 = vpack.c.bf16 %v1825_v2, %v1824_v14 }
 0x2f4   :  { %3180 = vmatprep.mubr.msk.bf16.mxu0 %vm1218_vm1, %v1846_v17 }
 0x2f5   :  { %3181 = vmatmul.mubr.msk.bf16.gmra.mxu0 %vm1218_vm1, %v1847_v15  ;;  %v4661_v15 = vld [vmem:[%s5378_s12] ss:$0 sm:$0xff] }
 0x2f7   :  { %v3146_v43 = vpop.f32.mrf.mxu1 }
 0x2f8   :  { %v1782_v50 = vadd.f32 %v3146_v43, %v4606_v20 }
 0x2f9   :  { %v1773_v6 = vpop.f32.mrf.mxu1 }
 0x2fa   :  { %v1774_v21 = vadd.f32 %v4606_v20, %v1773_v6  ;;  %v1830_v32 = vmax.f32 %v1782_v50, 0.0 }
 0x2fb   :  { %v3147_v24 = vpop.f32.mrf.mxu1 }
 0x2fc   :  { %v1785_v47 = vadd.f32 %v3147_v24, %v4606_v20  ;;  %v1828_v54 = vmax.f32 %v1774_v21, 0.0 }
 0x2fd   :  { %v1776_v49 = vpop.f32.mrf.mxu1 }
 0x2fe   :  { %v1777_v51 = vadd.f32 %v4606_v20, %v1776_v49  ;;  %v1831_v26 = vmax.f32 %v1785_v47, 0.0 }
 0x300   :  { %v1829_v19 = vmax.f32 %v1777_v51, 0.0  ;;  %v1849_v30 = vpack.c.bf16 %v1831_v26, %v1830_v32 }
 0x302   :  { %v1848_v40 = vpack.c.bf16 %v1829_v19, %v1828_v54 }
 0x304   :  { %3184 = vmatprep.mubr.msk.bf16.mxu0 %vm1218_vm1, %v1848_v40 }
 0x305   :  { %3185 = vmatmul.mubr.msk.bf16.gmra.mxu0 %vm1218_vm1, %v1849_v30 }
 0x307   :  { %v3150_v33 = vpop.f32.mrf.mxu1 }
 0x308   :  { %v1798_v46 = vadd.f32 %v3150_v33, %v4606_v20 }
 0x309   :  { %v1789_v25 = vpop.f32.mrf.mxu1 }
 0x30a   :  { %v1790_v38 = vadd.f32 %v4606_v20, %v1789_v25  ;;  %v1834_v13 = vmax.f32 %v1798_v46, 0.0 }
 0x30b   :  { %v3151_v0 = vpop.f32.mrf.mxu1 }
 0x30c   :  { %v1801_v45 = vadd.f32 %v3151_v0, %v4606_v20  ;;  %v1832_v63 = vmax.f32 %v1790_v38, 0.0 }
 0x30d   :  { %v1792_v28 = vpop.f32.mrf.mxu1 }
 0x30e   :  { %v1793_v62 = vadd.f32 %v4606_v20, %v1792_v28  ;;  %v1835_v61 = vmax.f32 %v1801_v45, 0.0 }
 0x310   :  { %v1833_v58 = vmax.f32 %v1793_v62, 0.0  ;;  %v1851_v2 = vpack.c.bf16 %v1835_v61, %v1834_v13 }
 0x312   :  { %v1850_v14 = vpack.c.bf16 %v1833_v58, %v1832_v63 }
 0x314   :  { %3188 = vmatprep.mubr.msk.bf16.mxu0 %vm1218_vm1, %v1850_v14 }
 0x315   :  { %3189 = vmatmul.mubr.msk.bf16.gmra.mxu0 %vm1218_vm1, %v1851_v2 }
 0x36c   :  { %v3162_v17 = vpop.f32.mrf.mxu0 }
 0x36d   :  { %v1982_v20 = vadd.f32 %v3162_v17, %v4661_v15 }
 0x36e   :  { %v1973_v43 = vpop.f32.mrf.mxu0 }
 0x36f   :  { %v1974_v6 = vadd.f32 %v4661_v15, %v1973_v43  ;;  %v4667_v50 = vmul.f32 0.35355338, %v1982_v20 }
 0x370   :  { %v3163_v24 = vpop.f32.mrf.mxu0 }
 0x371   :  { %v4665_v21 = vmul.f32 0.35355338, %v1974_v6  ;;  %v1985_v49 = vadd.f32 %v3163_v24, %v4661_v15  ;;  %v2138_v33 = vsel %vm223_vm0, %v4667_v50, -inf }
 0x372   :  { %v1976_v47 = vpop.f32.mrf.mxu0 }
 0x373   :  { %v1977_v51 = vadd.f32 %v4661_v15, %v1976_v47  ;;  %v2132_v26 = vsel %vm223_vm0, %v4665_v21, -inf  ;;  %v4675_v32 = vmul.f32 0.35355338, %v1985_v49  ;;  %v2327_v49 = vld [vmem:[%s5379_s13 + $0x18] sm:$0xff] }
 0x374   :  { %2133 = vmax.xlane.f32.xlu0 %v2132_v26  ;;  %3192 = vmatprep.subr.mxu1 %v2327_v49 }
 0x375   :  { %v4673_v54 = vmul.f32 0.35355338, %v1977_v51  ;;  %v3166_v19 = vpop.f32.mrf.mxu0  ;;  %v2141_v28 = vsel %vm223_vm0, %v4675_v32, -inf  ;;  %3193 = vmatpush3.msra.mxu1 %v2327_v49 }
 0x376   :  { %v1998_v25 = vadd.f32 %v3166_v19, %v4661_v15 }
 0x377   :  { %v1989_v40 = vpop.f32.mrf.mxu0  ;;  %v2135_v30 = vsel %vm223_vm0, %v4673_v54, -inf }
 0x378   :  { %v1990_v0 = vadd.f32 %v4661_v15, %v1989_v40  ;;  %2136 = vmax.xlane.f32.xlu1 %v2135_v30  ;;  %2139 = vmax.xlane.f32.xlu0 %v2138_v33  ;;  %v4687_v62 = vmul.f32 0.35355338, %v1998_v25 }
 0x379   :  { %v3167_v38 = vpop.f32.mrf.mxu0 }
 0x37a   :  { %v4683_v45 = vmul.f32 0.35355338, %v1990_v0  ;;  %v2001_v61 = vadd.f32 %v3167_v38, %v4661_v15  ;;  %v2150_v2 = vsel %vm223_vm0, %v4687_v62, -inf  ;;  %v2326_v38 = vld [vmem:[%s5379_s13 + $0x10] sm:$0xff] }
 0x37b   :  { %v1992_v46 = vpop.f32.mrf.mxu0  ;;  %3194 = vmatprep.subr.mxu1 %v2326_v38 }
 0x37c   :  { %v1993_v63 = vadd.f32 %v4661_v15, %v1992_v46  ;;  %2142 = vmax.xlane.f32.xlu0 %v2141_v28  ;;  %v2144_v58 = vsel %vm223_vm0, %v4683_v45, -inf  ;;  %v4695_v14 = vmul.f32 0.35355338, %v2001_v61  ;;  %3195 = vmatpush3.msra.mxu1 %v2326_v38 }
 0x37d   :  { %2145 = vmax.xlane.f32.xlu1 %v2144_v58  ;;  %v2324_v58 = vld [vmem:[%s5379_s13] sm:$0xff] }
 0x37e   :  { %v4693_v13 = vmul.f32 0.35355338, %v1993_v63  ;;  %v2153_v43 = vsel %vm223_vm0, %v4695_v14, -inf  ;;  %v2325_v63 = vld [vmem:[%s5379_s13 + $0x8] sm:$0xff] }
 0x37f   :  { %3196 = vmatprep.subr.mxu1 %v2325_v63 }
 0x380   :  { %v2147_v17 = vsel %vm223_vm0, %v4693_v13, -inf  ;;  %3197 = vmatpush3.msra.mxu1 %v2325_v63 }
 0x381   :  { %2151 = vmax.xlane.f32.xlu1 %v2150_v2  ;;  %2148 = vmax.xlane.f32.xlu0 %v2147_v17 }
 0x382   :  { %3198 = vmatprep.subr.mxu1 %v2324_v58 }
 0x383   :  { %3199 = vmatpush3.msra.mxu1 %v2324_v58 }
 0x385   :  { %v3170_v20 = vpop.f32.mrf.mxu0  ;;  %2154 = vmax.xlane.f32.xlu0 %v2153_v43 }
 0x386   :  { %v2014_v24 = vadd.f32 %v3170_v20, %v4661_v15 }
 0x387   :  { %v2005_v6 = vpop.f32.mrf.mxu0 }
 0x388   :  { %v2006_v47 = vadd.f32 %v4661_v15, %v2005_v6  ;;  %v4710_v40 = vmul.f32 0.35355338, %v2014_v24 }
 0x389   :  { %v3171_v51 = vpop.f32.mrf.mxu0 }
 0x38a   :  { %v4708_v26 = vmul.f32 0.35355338, %v2006_v47  ;;  %v2017_v30 = vadd.f32 %v3171_v51, %v4661_v15  ;;  %v2162_v28 = vsel %vm223_vm0, %v4710_v40, -inf }
 0x38b   :  { %v2008_v19 = vpop.f32.mrf.mxu0 }
 0x38c   :  { %v2009_v33 = vadd.f32 %v4661_v15, %v2008_v19  ;;  %v2156_v25 = vsel %vm223_vm0, %v4708_v26, -inf  ;;  %v4721_v46 = vmul.f32 0.35355338, %v2017_v30 }
 0x38d   :  { %2157 = vmax.xlane.f32.xlu1 %v2156_v25 }
 0x38e   :  { %v4716_v0 = vmul.f32 0.35355338, %v2009_v33  ;;  %v2165_v2 = vsel %vm223_vm0, %v4721_v46, -inf }
 0x390   :  { %v2159_v61 = vsel %vm223_vm0, %v4716_v0, -inf }
 0x391   :  { %2163 = vmax.xlane.f32.xlu1 %v2162_v28  ;;  %2160 = vmax.xlane.f32.xlu0 %v2159_v61 }
 0x395   :  { %v3174_v17 = vpop.f32.mrf.mxu0  ;;  %2166 = vmax.xlane.f32.xlu0 %v2165_v2 }
 0x396   :  { %v2030_v20 = vadd.f32 %v3174_v17, %v4661_v15 }
 0x397   :  { %v2021_v43 = vpop.f32.mrf.mxu0 }
 0x398   :  { %v2022_v6 = vadd.f32 %v4661_v15, %v2021_v43  ;;  %v4739_v51 = vmul.f32 0.35355338, %v2030_v20 }
 0x399   :  { %v3175_v24 = vpop.f32.mrf.mxu0 }
 0x39a   :  { %v4737_v47 = vmul.f32 0.35355338, %v2022_v6  ;;  %v2033_v19 = vadd.f32 %v3175_v24, %v4661_v15  ;;  %v2174_v28 = vsel %vm223_vm0, %v4739_v51, -inf }
 0x39b   :  { %v2024_v49 = vpop.f32.mrf.mxu0 }
 0x39c   :  { %v2025_v30 = vadd.f32 %v4661_v15, %v2024_v49  ;;  %v2168_v33 = vsel %vm223_vm0, %v4737_v47, -inf  ;;  %v4747_v38 = vmul.f32 0.35355338, %v2033_v19 }
 0x39d   :  { %2169 = vmax.xlane.f32.xlu1 %v2168_v33 }
 0x39e   :  { %v4745_v25 = vmul.f32 0.35355338, %v2025_v30  ;;  %v2177_v63 = vsel %vm223_vm0, %v4747_v38, -inf }
 0x3a0   :  { %v2171_v61 = vsel %vm223_vm0, %v4745_v25, -inf }
 0x3a1   :  { %2175 = vmax.xlane.f32.xlu1 %v2174_v28  ;;  %2172 = vmax.xlane.f32.xlu0 %v2171_v61 }
 0x3a5   :  { %v3178_v58 = vpop.f32.mrf.mxu0  ;;  %2178 = vmax.xlane.f32.xlu0 %v2177_v63 }
 0x3a6   :  { %v2046_v17 = vadd.f32 %v3178_v58, %v4661_v15 }
 0x3a7   :  { %v2037_v2 = vpop.f32.mrf.mxu0 }
 0x3a8   :  { %v2038_v43 = vadd.f32 %v4661_v15, %v2037_v2  ;;  %v4759_v49 = vmul.f32 0.35355338, %v2046_v17 }
 0x3a9   :  { %v3179_v20 = vpop.f32.mrf.mxu0 }
 0x3aa   :  { %v4757_v6 = vmul.f32 0.35355338, %v2038_v43  ;;  %v2049_v19 = vadd.f32 %v3179_v20, %v4661_v15  ;;  %v2186_v63 = vsel %vm223_vm0, %v4759_v49, -inf }
 0x3ab   :  { %v2040_v24 = vpop.f32.mrf.mxu0 }
 0x3ac   :  { %v2041_v30 = vadd.f32 %v4661_v15, %v2040_v24  ;;  %v2180_v33 = vsel %vm223_vm0, %v4757_v6, -inf  ;;  %v4767_v61 = vmul.f32 0.35355338, %v2049_v19 }
 0x3ad   :  { %2181 = vmax.xlane.f32.xlu1 %v2180_v33 }
 0x3ae   :  { %v4765_v28 = vmul.f32 0.35355338, %v2041_v30  ;;  %v2189_v2 = vsel %vm223_vm0, %v4767_v61, -inf }
 0x3b0   :  { %v2183_v58 = vsel %vm223_vm0, %v4765_v28, -inf }
 0x3b1   :  { %2187 = vmax.xlane.f32.xlu1 %v2186_v63  ;;  %2184 = vmax.xlane.f32.xlu0 %v2183_v58 }
 0x3b5   :  { %v3182_v17 = vpop.f32.mrf.mxu0  ;;  %2190 = vmax.xlane.f32.xlu0 %v2189_v2 }
 0x3b6   :  { %v2062_v20 = vadd.f32 %v3182_v17, %v4661_v15 }
 0x3b7   :  { %v2053_v43 = vpop.f32.mrf.mxu0 }
 0x3b8   :  { %v2054_v24 = vadd.f32 %v4661_v15, %v2053_v43  ;;  %v4779_v53 = vmul.f32 0.35355338, %v2062_v20 }
 0x3b9   :  { %v3183_v19 = vpop.f32.mrf.mxu0 }
 0x3ba   :  { %v4777_v30 = vmul.f32 0.35355338, %v2054_v24  ;;  %v2065_v57 = vadd.f32 %v3183_v19, %v4661_v15  ;;  %v2198_v17 = vsel %vm223_vm0, %v4779_v53, -inf }
 0x3bb   :  { %v2056_v33 = vpop.f32.mrf.mxu0 }
 0x3bc   :  { %v2057_v63 = vadd.f32 %v4661_v15, %v2056_v33  ;;  %v2192_v58 = vsel %vm223_vm0, %v4777_v30, -inf  ;;  %v4787_v3 = vmul.f32 0.35355338, %v2065_v57 }
 0x3bd   :  { %2193 = vmax.xlane.f32.xlu1 %v2192_v58 }
 0x3be   :  { %v4785_v2 = vmul.f32 0.35355338, %v2057_v63  ;;  %v2201_v20 = vsel %vm223_vm0, %v4787_v3, -inf }
 0x3c0   :  { %v2195_v43 = vsel %vm223_vm0, %v4785_v2, -inf }
 0x3c1   :  { %2199 = vmax.xlane.f32.xlu1 %v2198_v17  ;;  %2196 = vmax.xlane.f32.xlu0 %v2195_v43 }
 0x3c5   :  { %v3186_v24 = vpop.f32.mrf.mxu0  ;;  %2202 = vmax.xlane.f32.xlu0 %v2201_v20 }
 0x3c6   :  { %v2078_v33 = vadd.f32 %v3186_v24, %v4661_v15 }
 0x3c7   :  { %v2069_v19 = vpop.f32.mrf.mxu0 }
 0x3c8   :  { %v2070_v63 = vadd.f32 %v4661_v15, %v2069_v19  ;;  %v4799_v42 = vmul.f32 0.35355338, %v2078_v33 }
 0x3c9   :  { %v3187_v57 = vpop.f32.mrf.mxu0 }
 0x3ca   :  { %v4797_v58 = vmul.f32 0.35355338, %v2070_v63  ;;  %v2081_v11 = vadd.f32 %v3187_v57, %v4661_v15  ;;  %v2210_v24 = vsel %vm223_vm0, %v4799_v42, -inf }
 0x3cb   :  { %v2072_v36 = vpop.f32.mrf.mxu0 }
 0x3cc   :  { %v2073_v17 = vadd.f32 %v4661_v15, %v2072_v36  ;;  %v2204_v43 = vsel %vm223_vm0, %v4797_v58, -inf  ;;  %v4807_v29 = vmul.f32 0.35355338, %v2081_v11 }
 0x3cd   :  { %2205 = vmax.xlane.f32.xlu1 %v2204_v43 }
 0x3ce   :  { %v4805_v20 = vmul.f32 0.35355338, %v2073_v17  ;;  %v2213_v33 = vsel %vm223_vm0, %v4807_v29, -inf }
 0x3d0   :  { %v2207_v19 = vsel %vm223_vm0, %v4805_v20, -inf }
 0x3d1   :  { %2211 = vmax.xlane.f32.xlu1 %v2210_v24  ;;  %2208 = vmax.xlane.f32.xlu0 %v2207_v19 }
 0x3d5   :  { %v3190_v36 = vpop.f32.mrf.mxu0  ;;  %2214 = vmax.xlane.f32.xlu0 %v2213_v33 }
 0x3d6   :  { %v2094_v57 = vadd.f32 %v3190_v36, %v4661_v15 }
 0x3d7   :  { %v2085_v63 = vpop.f32.mrf.mxu0 }
 0x3d8   :  { %v2086_v17 = vadd.f32 %v4661_v15, %v2085_v63  ;;  %v4819_v59 = vmul.f32 0.35355338, %v2094_v57 }
 0x3d9   :  { %v3191_v11 = vpop.f32.mrf.mxu0 }
 0x3da   :  { %v4817_v43 = vmul.f32 0.35355338, %v2086_v17  ;;  %v2097_v5 = vadd.f32 %v3191_v11, %v4661_v15  ;;  %v2222_v36 = vsel %vm223_vm0, %v4819_v59, -inf }
 0x3db   :  { %v2088_v55 = vpop.f32.mrf.mxu0 }
 0x3dc   :  { %v2089_v24 = vadd.f32 %v4661_v15, %v2088_v55  ;;  %v2216_v19 = vsel %vm223_vm0, %v4817_v43, -inf  ;;  %v4827_v34 = vmul.f32 0.35355338, %v2097_v5 }
 0x3dd   :  { %2217 = vmax.xlane.f32.xlu1 %v2216_v19 }
 0x3de   :  { %v4825_v33 = vmul.f32 0.35355338, %v2089_v24  ;;  %v2225_v57 = vsel %vm223_vm0, %v4827_v34, -inf }
 0x3e0   :  { %v2219_v63 = vsel %vm223_vm0, %v4825_v33, -inf }
 0x3e1   :  { %2223 = vmax.xlane.f32.xlu1 %v2222_v36  ;;  %2220 = vmax.xlane.f32.xlu0 %v2219_v63 }
 0x3e5   :  { %2226 = vmax.xlane.f32.xlu0 %v2225_v57 }
 0x3fd   :  { %v2134_v55 = vpop.xlane.xlu0 %2133 }
 0x3fe   :  { %v2228_v15 = vsub.f32 %v4665_v21, %v2134_v55 }
 0x400   :  { %v2260_v17 = vmul.f32 1.442695, %v2228_v15 }
 0x401   :  { %v2137_v11 = vpop.xlane.xlu1 %2136  ;;  %v2140_v24 = vpop.xlane.xlu0 %2139 }
 0x402   :  { %3280 = vpow2.f32 %v2260_v17  ;;  %v2229_v5 = vsub.f32 %v4673_v54, %v2137_v11  ;;  %v2230_v19 = vsub.f32 %v4667_v50, %v2140_v24 }
 0x404   :  { %v2262_v10 = vmul.f32 1.442695, %v2229_v5  ;;  %v2264_v37 = vmul.f32 1.442695, %v2230_v19 }
 0x405   :  { %v2143_v41 = vpop.xlane.xlu0 %2142 }
 0x406   :  { %3282 = vpow2.f32 %v2262_v10  ;;  %v2231_v36 = vsub.f32 %v4675_v32, %v2143_v41  ;;  %v2146_v63 = vpop.xlane.xlu1 %2145 }
 0x407   :  { %3284 = vpow2.f32 %v2264_v37  ;;  %v2232_v57 = vsub.f32 %v4683_v45, %v2146_v63 }
 0x408   :  { %v2266_v60 = vmul.f32 1.442695, %v2231_v36 }
 0x409   :  { %v2268_v21 = vmul.f32 1.442695, %v2232_v57 }
 0x40a   :  { %3286 = vpow2.f32 %v2266_v60  ;;  %v2152_v55 = vpop.xlane.xlu1 %2151  ;;  %v2149_v15 = vpop.xlane.xlu0 %2148 }
 0x40b   :  { %3288 = vpow2.f32 %v2268_v21  ;;  %v2234_v54 = vsub.f32 %v4687_v62, %v2152_v55  ;;  %v2233_v50 = vsub.f32 %v4693_v13, %v2149_v15 }
 0x40d   :  { %v2272_v17 = vmul.f32 1.442695, %v2234_v54  ;;  %v2270_v11 = vmul.f32 1.442695, %v2233_v50 }
 0x40e   :  { %v2155_v24 = vpop.xlane.xlu0 %2154 }
 0x40f   :  { %v4842_v10 = vpop.eup %3280  ;;  %3290 = vpow2.f32 %v2272_v17  ;;  %v2235_v41 = vsub.f32 %v4695_v14, %v2155_v24 }
 0x410   :  { %3292 = vpow2.f32 %v2270_v11  ;;  %3200 = vmatprep.mubr.msk.f32.mxu1 %vm223_vm0, %v4842_v10 }
 0x411   :  { %v2274_v60 = vmul.f32 1.442695, %v2235_v41 }
 0x413   :  { %v4847_v37 = vpop.eup %3282  ;;  %3294 = vpow2.f32 %v2274_v60 }
 0x414   :  { %v4849_v32 = vpop.eup %3284  ;;  %3201 = vmatmul.mubr.msk.f32.vlgmr.msra.gmra.mxu1 %vm223_vm0, %v4847_v37 }
 0x415   :  { %3203 = vmatprep.mubr.msk.f32.mxu1 %vm223_vm0, %v4849_v32 }
 0x416   :  { %v2158_v45 = vpop.xlane.xlu1 %2157 }
 0x417   :  { %v4855_v62 = vpop.eup %3286  ;;  %v2236_v13 = vsub.f32 %v4708_v26, %v2158_v45 }
 0x418   :  { %v4858_v14 = vpop.eup %3288  ;;  %3204 = vmatmul.mubr.msk.f32.gmra.mxu1 %vm223_vm0, %v4855_v62 }
 0x419   :  { %v2276_v5 = vmul.f32 1.442695, %v2236_v13  ;;  %3206 = vmatprep.mubr.msk.f32.mxu1 %vm223_vm0, %v4858_v14 }
 0x41a   :  { %v2164_v19 = vpop.xlane.xlu1 %2163  ;;  %v2161_v36 = vpop.xlane.xlu0 %2160 }
 0x41b   :  { %3296 = vpow2.f32 %v2276_v5  ;;  %v2238_v63 = vsub.f32 %v4710_v40, %v2164_v19  ;;  %v2237_v57 = vsub.f32 %v4716_v0, %v2161_v36 }
 0x41c   :  { %v4866_v21 = vpop.eup %3290 }
 0x41d   :  { %v4868_v55 = vpop.eup %3292  ;;  %v2280_v26 = vmul.f32 1.442695, %v2238_v63  ;;  %v2278_v15 = vmul.f32 1.442695, %v2237_v57 }
 0x41e   :  { %3207 = vmatmul.mubr.msk.f32.gmra.mxu1 %vm223_vm0, %v4868_v55  ;;  %v2167_v54 = vpop.xlane.xlu0 %2166 }
 0x41f   :  { %3298 = vpow2.f32 %v2280_v26  ;;  %3209 = vmatprep.mubr.msk.f32.mxu1 %vm223_vm0, %v4866_v21  ;;  %v2239_v50 = vsub.f32 %v4721_v46, %v2167_v54 }
 0x420   :  { %v4875_v17 = vpop.eup %3294  ;;  %3300 = vpow2.f32 %v2278_v15 }
 0x421   :  { %v2282_v40 = vmul.f32 1.442695, %v2239_v50 }
 0x422   :  { %3210 = vmatmul.mubr.msk.f32.gmra.mxu1 %vm223_vm0, %v4875_v17 }
 0x423   :  { %3302 = vpow2.f32 %v2282_v40 }
 0x426   :  { %v2170_v0 = vpop.xlane.xlu1 %2169 }
 0x427   :  { %v2240_v11 = vsub.f32 %v4737_v47, %v2170_v0 }
 0x428   :  { %v4880_v24 = vpop.eup %3296 }
 0x429   :  { %v2284_v41 = vmul.f32 1.442695, %v2240_v11  ;;  %3212 = vmatprep.mubr.msk.f32.mxu1 %vm223_vm0, %v4880_v24 }
 0x42a   :  { %v2176_v60 = vpop.xlane.xlu1 %2175  ;;  %v2173_v45 = vpop.xlane.xlu0 %2172 }
 0x42b   :  { %3304 = vpow2.f32 %v2284_v41  ;;  %v2242_v46 = vsub.f32 %v4739_v51, %v2176_v60  ;;  %v2241_v13 = vsub.f32 %v4745_v25, %v2173_v45 }
 0x42c   :  { %v4886_v5 = vpop.eup %3298 }
 0x42d   :  { %v4888_v19 = vpop.eup %3300  ;;  %v2288_v36 = vmul.f32 1.442695, %v2242_v46  ;;  %v2286_v63 = vmul.f32 1.442695, %v2241_v13 }
 0x42e   :  { %3213 = vmatmul.mubr.msk.f32.gmra.mxu1 %vm223_vm0, %v4888_v19  ;;  %v2179_v47 = vpop.xlane.xlu0 %2178 }
 0x42f   :  { %3306 = vpow2.f32 %v2288_v36  ;;  %3215 = vmatprep.mubr.msk.f32.mxu1 %vm223_vm0, %v4886_v5  ;;  %v2243_v57 = vsub.f32 %v4747_v38, %v2179_v47 }
 0x430   :  { %v4895_v26 = vpop.eup %3302  ;;  %3308 = vpow2.f32 %v2286_v63 }
 0x431   :  { %v2290_v51 = vmul.f32 1.442695, %v2243_v57 }
 0x432   :  { %3216 = vmatmul.mubr.msk.f32.gmra.mxu1 %vm223_vm0, %v4895_v26 }
 0x433   :  { %3310 = vpow2.f32 %v2290_v51 }
 0x436   :  { %v2182_v25 = vpop.xlane.xlu1 %2181 }
 0x437   :  { %v2244_v15 = vsub.f32 %v4757_v6, %v2182_v25 }
 0x438   :  { %v4900_v54 = vpop.eup %3304 }
 0x439   :  { %v2292_v50 = vmul.f32 1.442695, %v2244_v15  ;;  %3218 = vmatprep.mubr.msk.f32.mxu1 %vm223_vm0, %v4900_v54 }
 0x43a   :  { %v2188_v40 = vpop.xlane.xlu1 %2187  ;;  %v2185_v0 = vpop.xlane.xlu0 %2184 }
 0x43b   :  { %3312 = vpow2.f32 %v2292_v50  ;;  %v2246_v38 = vsub.f32 %v4759_v49, %v2188_v40  ;;  %v2245_v11 = vsub.f32 %v4765_v28, %v2185_v0 }
 0x43c   :  { %v4906_v41 = vpop.eup %3306 }
 0x43d   :  { %v4908_v60 = vpop.eup %3308  ;;  %v2296_v45 = vmul.f32 1.442695, %v2246_v38  ;;  %v2294_v46 = vmul.f32 1.442695, %v2245_v11 }
 0x43e   :  { %3219 = vmatmul.mubr.msk.f32.gmra.mxu1 %vm223_vm0, %v4908_v60  ;;  %v2191_v6 = vpop.xlane.xlu0 %2190 }
 0x43f   :  { %3314 = vpow2.f32 %v2296_v45  ;;  %3221 = vmatprep.mubr.msk.f32.mxu1 %vm223_vm0, %v4906_v41  ;;  %v2247_v13 = vsub.f32 %v4767_v61, %v2191_v6 }
 0x440   :  { %v4915_v36 = vpop.eup %3310  ;;  %3316 = vpow2.f32 %v2294_v46 }
 0x441   :  { %v2298_v49 = vmul.f32 1.442695, %v2247_v13 }
 0x442   :  { %3222 = vmatmul.mubr.msk.f32.gmra.mxu1 %vm223_vm0, %v4915_v36 }
 0x443   :  { %3318 = vpow2.f32 %v2298_v49 }
 0x446   :  { %v2194_v28 = vpop.xlane.xlu1 %2193 }
 0x447   :  { %v2248_v63 = vsub.f32 %v4777_v30, %v2194_v28 }
 0x448   :  { %v4920_v47 = vpop.eup %3312 }
 0x449   :  { %v2300_v57 = vmul.f32 1.442695, %v2248_v63  ;;  %3224 = vmatprep.mubr.msk.f32.mxu1 %vm223_vm0, %v4920_v47 }
 0x44a   :  { %v2200_v51 = vpop.xlane.xlu1 %2199  ;;  %v2197_v25 = vpop.xlane.xlu0 %2196 }
 0x44b   :  { %3320 = vpow2.f32 %v2300_v57  ;;  %v2250_v61 = vsub.f32 %v4779_v53, %v2200_v51  ;;  %v2249_v15 = vsub.f32 %v4785_v2, %v2197_v25 }
 0x44c   :  { %v4926_v50 = vpop.eup %3314 }
 0x44d   :  { %v4928_v40 = vpop.eup %3316  ;;  %v2304_v0 = vmul.f32 1.442695, %v2250_v61  ;;  %v2302_v38 = vmul.f32 1.442695, %v2249_v15 }
 0x44e   :  { %3225 = vmatmul.mubr.msk.f32.gmra.mxu1 %vm223_vm0, %v4928_v40  ;;  %v2203_v30 = vpop.xlane.xlu0 %2202 }
 0x44f   :  { %3322 = vpow2.f32 %v2304_v0  ;;  %3227 = vmatprep.mubr.msk.f32.mxu1 %vm223_vm0, %v4926_v50  ;;  %v2251_v11 = vsub.f32 %v4787_v3, %v2203_v30 }
 0x450   :  { %v4935_v45 = vpop.eup %3318  ;;  %3324 = vpow2.f32 %v2302_v38 }
 0x451   :  { %v2306_v53 = vmul.f32 1.442695, %v2251_v11 }
 0x452   :  { %3228 = vmatmul.mubr.msk.f32.gmra.mxu1 %vm223_vm0, %v4935_v45 }
 0x453   :  { %3326 = vpow2.f32 %v2306_v53 }
 0x456   :  { %v2206_v2 = vpop.xlane.xlu1 %2205 }
 0x457   :  { %v2252_v46 = vsub.f32 %v4797_v58, %v2206_v2 }
 0x458   :  { %v4940_v6 = vpop.eup %3320 }
 0x459   :  { %v2308_v13 = vmul.f32 1.442695, %v2252_v46  ;;  %3230 = vmatprep.mubr.msk.f32.mxu1 %vm223_vm0, %v4940_v6 }
 0x45a   :  { %v2212_v49 = vpop.xlane.xlu1 %2211  ;;  %v2209_v28 = vpop.xlane.xlu0 %2208 }
 0x45b   :  { %3328 = vpow2.f32 %v2308_v13  ;;  %v2254_v3 = vsub.f32 %v4799_v42, %v2212_v49  ;;  %v2253_v63 = vsub.f32 %v4805_v20, %v2209_v28 }
 0x45c   :  { %v4946_v57 = vpop.eup %3322 }
 0x45d   :  { %v4948_v51 = vpop.eup %3324  ;;  %v2312_v25 = vmul.f32 1.442695, %v2254_v3  ;;  %v2310_v61 = vmul.f32 1.442695, %v2253_v63 }
 0x45e   :  { %3231 = vmatmul.mubr.msk.f32.gmra.mxu1 %vm223_vm0, %v4948_v51  ;;  %v2215_v58 = vpop.xlane.xlu0 %2214 }
 0x45f   :  { %3330 = vpow2.f32 %v2312_v25  ;;  %3233 = vmatprep.mubr.msk.f32.mxu1 %vm223_vm0, %v4946_v57  ;;  %v2255_v15 = vsub.f32 %v4807_v29, %v2215_v58 }
 0x460   :  { %v4955_v0 = vpop.eup %3326  ;;  %3332 = vpow2.f32 %v2310_v61 }
 0x461   :  { %v2314_v42 = vmul.f32 1.442695, %v2255_v15 }
 0x462   :  { %3234 = vmatmul.mubr.msk.f32.gmra.mxu1 %vm223_vm0, %v4955_v0 }
 0x463   :  { %3334 = vpow2.f32 %v2314_v42 }
 0x466   :  { %v2218_v20 = vpop.xlane.xlu1 %2217 }
 0x467   :  { %v2256_v38 = vsub.f32 %v4817_v43, %v2218_v20 }
 0x468   :  { %v4960_v30 = vpop.eup %3328 }
 0x469   :  { %v2316_v11 = vmul.f32 1.442695, %v2256_v38  ;;  %3236 = vmatprep.mubr.msk.f32.mxu1 %vm223_vm0, %v4960_v30 }
 0x46a   :  { %v2224_v53 = vpop.xlane.xlu1 %2223  ;;  %v2221_v2 = vpop.xlane.xlu0 %2220 }
 0x46b   :  { %3336 = vpow2.f32 %v2316_v11  ;;  %v2258_v29 = vsub.f32 %v4819_v59, %v2224_v53  ;;  %v2257_v46 = vsub.f32 %v4825_v33, %v2221_v2 }
 0x46c   :  { %v4966_v13 = vpop.eup %3330 }
 0x46d   :  { %v4968_v49 = vpop.eup %3332  ;;  %v2320_v28 = vmul.f32 1.442695, %v2258_v29  ;;  %v2318_v3 = vmul.f32 1.442695, %v2257_v46  ;;  %v5515_v46 = vld [vmem:[#allocation2_spill] sm:$0xff] }
 0x46e   :  { %3237 = vmatmul.mubr.msk.f32.gmra.mxu1 %vm223_vm0, %v4968_v49  ;;  %v2227_v43 = vpop.xlane.xlu0 %2226 }
 0x46f   :  { %3338 = vpow2.f32 %v2320_v28  ;;  %3239 = vmatprep.mubr.msk.f32.mxu1 %vm223_vm0, %v4966_v13  ;;  %v2259_v63 = vsub.f32 %v4827_v34, %v2227_v43  ;;  %v1070_v28 = vadd.f32 %v5515_v46, %v4188_v16  ;;  %v1074_v16 = vadd.f32 %v5515_v46, %v4203_v35 }
 0x470   :  { %v4975_v25 = vpop.eup %3334  ;;  %3340 = vpow2.f32 %v2318_v3 }
 0x471   :  { %v2322_v59 = vmul.f32 1.442695, %v2259_v63 }
 0x472   :  { %3240 = vmatmul.mubr.msk.f32.gmra.mxu1 %vm223_vm0, %v4975_v25 }
 0x473   :  { %3342 = vpow2.f32 %v2322_v59  ;;  %v1068_v59 = vadd.f32 %v5515_v46, %v4180_v1 }
 0x478   :  { %v4979_v33 = vpop.eup %3336 }
 0x479   :  { %3242 = vmatprep.mubr.msk.f32.mxu1 %vm223_vm0, %v4979_v33 }
 0x47c   :  { %v4983_v61 = vpop.eup %3338 }
 0x47d   :  { %v4985_v58 = vpop.eup %3340 }
 0x47e   :  { %3243 = vmatmul.mubr.msk.f32.gmra.mxu1 %vm223_vm0, %v4985_v58 }
 0x47f   :  { %3245 = vmatprep.mubr.msk.f32.mxu1 %vm223_vm0, %v4983_v61 }
 0x480   :  { %v4991_v34 = vpop.eup %3342 }
 0x482   :  { %3246 = vmatmul.mubr.msk.f32.gmra.mxu1 %vm223_vm0, %v4991_v34 }
 0x4d4   :  { %v3202_v15 = vpop.f32.mrf.mxu1 }
 0x4d5   :  { %3344 = vrcp.f32 %v3202_v15 }
 0x4d6   :  { %v2490_v42 = vpop.f32.mrf.mxu1 }
 0x4d7   :  { %3346 = vrcp.f32 %v2490_v42 }
 0x4d8   :  { %v3205_v20 = vpop.f32.mrf.mxu1 }
 0x4d9   :  { %3348 = vrcp.f32 %v3205_v20 }
 0x4da   :  { %v2500_v38 = vpop.f32.mrf.mxu1 }
 0x4db   :  { %3350 = vrcp.f32 %v2500_v38 }
 0x4de   :  { %v3208_v11 = vpop.f32.mrf.mxu1 }
 0x4df   :  { %3352 = vrcp.f32 %v3208_v11 }
 0x4e0   :  { %v2510_v53 = vpop.f32.mrf.mxu1 }
 0x4e1   :  { %3354 = vrcp.f32 %v2510_v53  ;;  %v1078_v53 = vadd.f32 %v5515_v46, %v4221_v39 }
 0x4e2   :  { %v3345_v2 = vpop.eup %3344  ;;  %v3211_v29 = vpop.f32.mrf.mxu1 }
 0x4e3   :  { %v2652_v3 = vmul.f32 %v3345_v2, %v4847_v37  ;;  %3356 = vrcp.f32 %v3211_v29 }
 0x4e4   :  { %v3347_v43 = vpop.eup %3346  ;;  %v2520_v63 = vpop.f32.mrf.mxu1 }
 0x4e5   :  { %2714 = vst.msk [vmem:[%s5380_s16 + $0x8] sm:$0xff] %vm223_vm0, %v2652_v3  ;;  %v2746_v15 = vmul.f32 %v2652_v3, %v1070_v28  ;;  %v2650_v42 = vmul.f32 %v3347_v43, %v4842_v10  ;;  %3358 = vrcp.f32 %v2520_v63  ;;  %v1072_v10 = vadd.f32 %v5515_v46, %v4193_v48 }
 0x4e6   :  { %v3349_v20 = vpop.eup %3348  ;;  %v1076_v28 = vadd.f32 %v5515_v46, %v4208_v23 }
 0x4e7   :  { %2778 = vst.msk [vmem:[%s5381_s14 + $0x8] sm:$0xff] %vm223_vm0, %v2746_v15  ;;  %2713 = vst.msk [vmem:[%s5380_s16] sm:$0xff] %vm223_vm0, %v2650_v42  ;;  %v2745_v1 = vmul.f32 %v2650_v42, %v1068_v59  ;;  %v2656_v37 = vmul.f32 %v3349_v20, %v4855_v62  ;;  %v1082_v59 = vadd.f32 %v5515_v46, %v4242_v12 }
 0x4e8   :  { %v3351_v38 = vpop.eup %3350  ;;  %v1080_v42 = vadd.f32 %v5515_v46, %v4229_v56 }
 0x4e9   :  { %2777 = vst.msk [vmem:[%s5381_s14] sm:$0xff] %vm223_vm0, %v2745_v1  ;;  %2716 = vst.msk [vmem:[%s5380_s16 + $0x18] sm:$0xff] %vm223_vm0, %v2656_v37  ;;  %v2748_v35 = vmul.f32 %v2656_v37, %v1074_v16  ;;  %v2654_v11 = vmul.f32 %v3351_v38, %v4849_v32  ;;  %v5516_v16 = vld [vmem:[#allocation3_spill] sm:$0xff]  ;;  %v5517_v1 = vld [vmem:[#allocation4_spill] sm:$0xff] }
 0x4ea   :  { %v614_v37 = vadd.f32 %v5517_v1, %v5516_v16  ;;  %v5518_v38 = vld [vmem:[#allocation5_spill] sm:$0xff] }
 0x4eb   :  { %2780 = vst.msk [vmem:[%s5381_s14 + $0x18] sm:$0xff] %vm223_vm0, %v2748_v35  ;;  %2715 = vst.msk [vmem:[%s5380_s16 + $0x10] sm:$0xff] %vm223_vm0, %v2654_v11  ;;  %v2747_v48 = vmul.f32 %v2654_v11, %v1072_v10  ;;  %v5519_v10 = vld [vmem:[#allocation6_spill] sm:$0xff] }
 0x4ec   :  { %v3353_v62 = vpop.eup %3352  ;;  %v624_v35 = vadd.f32 %v5519_v10, %v5518_v38  ;;  %v1092_v38 = vadd.f32 %v5515_v46, %v4276_v18 }
 0x4ed   :  { %2779 = vst.msk [vmem:[%s5381_s14 + $0x10] sm:$0xff] %vm223_vm0, %v2747_v48  ;;  %v2660_v32 = vmul.f32 %v3353_v62, %v4868_v55 }
 0x4ee   :  { %v3355_v2 = vpop.eup %3354  ;;  %v3214_v29 = vpop.f32.mrf.mxu1  ;;  %v1014_v62 = vadd.f32 %v4267_v31, %v624_v35 }
 0x4ef   :  { %2718 = vst.msk [vmem:[%s5380_s16 + $0x28] sm:$0xff] %vm223_vm0, %v2660_v32  ;;  %v2750_v3 = vmul.f32 %v2660_v32, %v1078_v53  ;;  %v2658_v39 = vmul.f32 %v3355_v2, %v4858_v14  ;;  %3360 = vrcp.f32 %v3214_v29  ;;  %v1084_v29 = vadd.f32 %v5515_v46, %v4248_v4 }
 0x4f0   :  { %v3357_v43 = vpop.eup %3356  ;;  %v2530_v63 = vpop.f32.mrf.mxu1  ;;  %v1090_v31 = vadd.f32 %v5515_v46, %v1014_v62  ;;  %v1096_v62 = vadd.f32 %v5515_v46, %v4290_v44 }
 0x4f1   :  { %2782 = vst.msk [vmem:[%s5381_s14 + $0x28] sm:$0xff] %vm223_vm0, %v2750_v3  ;;  %2717 = vst.msk [vmem:[%s5380_s16 + $0x20] sm:$0xff] %vm223_vm0, %v2658_v39  ;;  %v2749_v23 = vmul.f32 %v2658_v39, %v1076_v28  ;;  %v2664_v55 = vmul.f32 %v3357_v43, %v4875_v17  ;;  %3362 = vrcp.f32 %v2530_v63  ;;  %v1088_v63 = vadd.f32 %v5515_v46, %v4262_v27 }
 0x4f2   :  { %v3359_v14 = vpop.eup %3358  ;;  %v3217_v15 = vpop.f32.mrf.mxu1 }
 0x4f3   :  { %2781 = vst.msk [vmem:[%s5381_s14 + $0x20] sm:$0xff] %vm223_vm0, %v2749_v23  ;;  %2720 = vst.msk [vmem:[%s5380_s16 + $0x38] sm:$0xff] %vm223_vm0, %v2664_v55  ;;  %v2752_v12 = vmul.f32 %v2664_v55, %v1082_v59  ;;  %v2662_v20 = vmul.f32 %v3359_v14, %v4866_v21  ;;  %3364 = vrcp.f32 %v3217_v15  ;;  %v1010_v21 = vadd.f32 %v4253_v8, %v614_v37  ;;  %v5520_v55 = vld [vmem:[#allocation7_spill] sm:$0xff]  ;;  %v5521_v14 = vld [vmem:[#allocation8_spill] sm:$0xff] }
 0x4f4   :  { %v2540_v17 = vpop.f32.mrf.mxu1  ;;  %v634_v15 = vadd.f32 %v5521_v14, %v5520_v55 }
 0x4f5   :  { %2784 = vst.msk [vmem:[%s5381_s14 + $0x38] sm:$0xff] %vm223_vm0, %v2752_v12  ;;  %2719 = vst.msk [vmem:[%s5380_s16 + $0x30] sm:$0xff] %vm223_vm0, %v2662_v20  ;;  %v2751_v56 = vmul.f32 %v2662_v20, %v1080_v42  ;;  %3366 = vrcp.f32 %v2540_v17  ;;  %v1086_v48 = vadd.f32 %v5515_v46, %v1010_v21  ;;  %v5522_v42 = vld [vmem:[#allocation13_spill] sm:$0xff]  ;;  %v5523_v12 = vld [vmem:[#allocation14_spill] sm:$0xff] }
 0x4f6   :  { %v644_v20 = vadd.f32 %v5523_v12, %v5522_v42 }
 0x4f7   :  { %2783 = vst.msk [vmem:[%s5381_s14 + $0x30] sm:$0xff] %vm223_vm0, %v2751_v56 }
 0x4f8   :  { %v1022_v16 = vadd.f32 %v4295_v9, %v644_v20 }
 0x4fa   :  { %v1098_v9 = vadd.f32 %v5515_v46, %v1022_v16  ;;  %v5531_v16 = vld [vmem:[#allocation38_spill] sm:$0xff] }
 0x4fc   :  { %v3361_v11 = vpop.eup %3360 }
 0x4fd   :  { %v2668_v53 = vmul.f32 %v3361_v11, %v4888_v19 }
 0x4fe   :  { %v3363_v32 = vpop.eup %3362  ;;  %v3220_v2 = vpop.f32.mrf.mxu1 }
 0x4ff   :  { %2722 = vst.msk [vmem:[%s5380_s16 + $0x48] sm:$0xff] %vm223_vm0, %v2668_v53  ;;  %v2754_v8 = vmul.f32 %v2668_v53, %v1086_v48  ;;  %v2666_v28 = vmul.f32 %v3363_v32, %v4880_v24  ;;  %3368 = vrcp.f32 %v3220_v2  ;;  %v5524_v2 = vld [vmem:[#allocation21_spill] sm:$0xff] }
 0x500   :  { %v3365_v3 = vpop.eup %3364  ;;  %v2550_v39 = vpop.f32.mrf.mxu1 }
 0x501   :  { %2786 = vst.msk [vmem:[%s5381_s14 + $0x48] sm:$0xff] %vm223_vm0, %v2754_v8  ;;  %2721 = vst.msk [vmem:[%s5380_s16 + $0x40] sm:$0xff] %vm223_vm0, %v2666_v28  ;;  %v2753_v4 = vmul.f32 %v2666_v28, %v1084_v29  ;;  %v2672_v19 = vmul.f32 %v3365_v3, %v4895_v26  ;;  %3370 = vrcp.f32 %v2550_v39  ;;  %v5525_v29 = vld [vmem:[#allocation22_spill] sm:$0xff]  ;;  %v5526_v28 = vld [vmem:[#allocation29_spill] sm:$0xff] }
 0x502   :  { %v3367_v24 = vpop.eup %3366  ;;  %v3223_v43 = vpop.f32.mrf.mxu1  ;;  %v654_v8 = vadd.f32 %v5525_v29, %v5524_v2  ;;  %v5527_v3 = vld [vmem:[#allocation30_spill] sm:$0xff] }
 0x503   :  { %2785 = vst.msk [vmem:[%s5381_s14 + $0x40] sm:$0xff] %vm223_vm0, %v2753_v4  ;;  %2724 = vst.msk [vmem:[%s5380_s16 + $0x58] sm:$0xff] %vm223_vm0, %v2672_v19  ;;  %v2756_v59 = vmul.f32 %v2672_v19, %v1090_v31  ;;  %v2670_v23 = vmul.f32 %v3367_v24, %v4886_v5  ;;  %3372 = vrcp.f32 %v3223_v43  ;;  %v1018_v5 = vadd.f32 %v4281_v52, %v634_v15 }
 0x504   :  { %v2560_v26 = vpop.f32.mrf.mxu1  ;;  %v664_v39 = vadd.f32 %v5527_v3, %v5526_v28 }
 0x505   :  { %2788 = vst.msk [vmem:[%s5381_s14 + $0x58] sm:$0xff] %vm223_vm0, %v2756_v59  ;;  %2723 = vst.msk [vmem:[%s5380_s16 + $0x50] sm:$0xff] %vm223_vm0, %v2670_v23  ;;  %v2755_v27 = vmul.f32 %v2670_v23, %v1088_v63  ;;  %3374 = vrcp.f32 %v2560_v26  ;;  %v1094_v56 = vadd.f32 %v5515_v46, %v1018_v5  ;;  %v5528_v59 = vld [vmem:[#allocation9_spill] sm:$0xff]  ;;  %v5529_v5 = vld [vmem:[#allocation10_spill] sm:$0xff] }
 0x506   :  { %v1030_v19 = vadd.f32 %v4323_v7, %v664_v39  ;;  %v1100_v23 = vadd.f32 %v5515_v46, %v5528_v59  ;;  %v1104_v42 = vadd.f32 %v5515_v46, %v5529_v5  ;;  %v5539_v59 = vld [vmem:[#allocation17_spill] sm:$0xff] }
 0x507   :  { %2787 = vst.msk [vmem:[%s5381_s14 + $0x50] sm:$0xff] %vm223_vm0, %v2755_v27 }
 0x508   :  { %v1106_v7 = vadd.f32 %v5515_v46, %v1030_v19 }
 0x50c   :  { %v3369_v17 = vpop.eup %3368 }
 0x50d   :  { %v2676_v1 = vmul.f32 %v3369_v17, %v4908_v60 }
 0x50e   :  { %v3371_v37 = vpop.eup %3370  ;;  %v3226_v21 = vpop.f32.mrf.mxu1 }
 0x50f   :  { %2726 = vst.msk [vmem:[%s5380_s16 + $0x68] sm:$0xff] %vm223_vm0, %v2676_v1  ;;  %v2758_v52 = vmul.f32 %v2676_v1, %v1094_v56  ;;  %v2674_v10 = vmul.f32 %v3371_v37, %v4900_v54  ;;  %3376 = vrcp.f32 %v3226_v21  ;;  %v5530_v56 = vld [vmem:[#allocation37_spill] sm:$0xff] }
 0x510   :  { %v3373_v35 = vpop.eup %3372  ;;  %v2570_v11 = vpop.f32.mrf.mxu1  ;;  %v674_v1 = vadd.f32 %v5531_v16, %v5530_v56  ;;  %v5533_v21 = vld [vmem:[#allocation45_spill] sm:$0xff]  ;;  %v5544_v16 = vld [vmem:[#allocation24_spill] sm:$0xff] }
 0x511   :  { %2790 = vst.msk [vmem:[%s5381_s14 + $0x68] sm:$0xff] %vm223_vm0, %v2758_v52  ;;  %2725 = vst.msk [vmem:[%s5380_s16 + $0x60] sm:$0xff] %vm223_vm0, %v2674_v10  ;;  %v2757_v18 = vmul.f32 %v2674_v10, %v1092_v38  ;;  %v2680_v60 = vmul.f32 %v3373_v35, %v4915_v36  ;;  %3378 = vrcp.f32 %v2570_v11  ;;  %v5534_v38 = vld [vmem:[#allocation46_spill] sm:$0xff]  ;;  %v5535_v11 = vld [vmem:[#allocation16_spill] sm:$0xff] }
 0x512   :  { %v3375_v54 = vpop.eup %3374  ;;  %v3229_v48 = vpop.f32.mrf.mxu1  ;;  %v684_v52 = vadd.f32 %v5534_v38, %v5533_v21 }
 0x513   :  { %2789 = vst.msk [vmem:[%s5381_s14 + $0x60] sm:$0xff] %vm223_vm0, %v2757_v18  ;;  %2728 = vst.msk [vmem:[%s5380_s16 + $0x78] sm:$0xff] %vm223_vm0, %v2680_v60  ;;  %v2760_v53 = vmul.f32 %v2680_v60, %v1098_v9  ;;  %v2678_v32 = vmul.f32 %v3375_v54, %v4906_v41  ;;  %3380 = vrcp.f32 %v3229_v48  ;;  %v1026_v41 = vadd.f32 %v4309_v22, %v654_v8  ;;  %v5536_v48 = vld [vmem:[#allocation11_spill] sm:$0xff] }
 0x514   :  { %v2580_v36 = vpop.f32.mrf.mxu1  ;;  %v1038_v9 = vadd.f32 %v5535_v11, %v684_v52  ;;  %v5546_v52 = vld [vmem:[#allocation23_spill] sm:$0xff] }
 0x515   :  { %2792 = vst.msk [vmem:[%s5381_s14 + $0x78] sm:$0xff] %vm223_vm0, %v2760_v53  ;;  %2727 = vst.msk [vmem:[%s5380_s16 + $0x70] sm:$0xff] %vm223_vm0, %v2678_v32  ;;  %v2759_v44 = vmul.f32 %v2678_v32, %v1096_v62  ;;  %3382 = vrcp.f32 %v2580_v36  ;;  %v1102_v4 = vadd.f32 %v5515_v46, %v1026_v41  ;;  %v1108_v62 = vadd.f32 %v5515_v46, %v5536_v48  ;;  %v5537_v41 = vld [vmem:[#allocation15_spill] sm:$0xff]  ;;  %v5547_v48 = vld [vmem:[#allocation25_spill] sm:$0xff] }
 0x516   :  { %v1114_v2 = vadd.f32 %v5515_v46, %v1038_v9  ;;  %v1112_v28 = vadd.f32 %v5515_v46, %v5537_v41 }
 0x517   :  { %2791 = vst.msk [vmem:[%s5381_s14 + $0x70] sm:$0xff] %vm223_vm0, %v2759_v44 }
 0x51c   :  { %v3377_v31 = vpop.eup %3376 }
 0x51d   :  { %v2684_v24 = vmul.f32 %v3377_v31, %v4928_v40 }
 0x51e   :  { %v3379_v43 = vpop.eup %3378  ;;  %v3232_v63 = vpop.f32.mrf.mxu1 }
 0x51f   :  { %2730 = vst.msk [vmem:[%s5380_s16 + $0x88] sm:$0xff] %vm223_vm0, %v2684_v24  ;;  %v2762_v22 = vmul.f32 %v2684_v24, %v1102_v4  ;;  %v2682_v26 = vmul.f32 %v3379_v43, %v4920_v47  ;;  %3384 = vrcp.f32 %v3232_v63  ;;  %v5538_v4 = vld [vmem:[#allocation18_spill] sm:$0xff] }
 0x520   :  { %v3381_v27 = vpop.eup %3380  ;;  %v2590_v55 = vpop.f32.mrf.mxu1  ;;  %v1118_v19 = vadd.f32 %v5515_v46, %v5538_v4 }
 0x521   :  { %2794 = vst.msk [vmem:[%s5381_s14 + $0x88] sm:$0xff] %vm223_vm0, %v2762_v22  ;;  %2729 = vst.msk [vmem:[%s5380_s16 + $0x80] sm:$0xff] %vm223_vm0, %v2682_v26  ;;  %v2761_v40 = vmul.f32 %v2682_v26, %v1100_v23  ;;  %v2688_v14 = vmul.f32 %v3381_v27, %v4935_v45  ;;  %3386 = vrcp.f32 %v2590_v55  ;;  %v1116_v23 = vadd.f32 %v5515_v46, %v5539_v59 }
 0x522   :  { %v3383_v47 = vpop.eup %3382  ;;  %v3235_v15 = vpop.f32.mrf.mxu1 }
 0x523   :  { %2793 = vst.msk [vmem:[%s5381_s14 + $0x80] sm:$0xff] %vm223_vm0, %v2761_v40  ;;  %2732 = vst.msk [vmem:[%s5380_s16 + $0x98] sm:$0xff] %vm223_vm0, %v2688_v14  ;;  %v2764_v12 = vmul.f32 %v2688_v14, %v1106_v7  ;;  %v2686_v20 = vmul.f32 %v3383_v47, %v4926_v50  ;;  %3388 = vrcp.f32 %v3235_v15  ;;  %v5532_v50 = vld [vmem:[#allocation12_spill] sm:$0xff]  ;;  %v5541_v15 = vld [vmem:[#allocation19_spill] sm:$0xff] }
 0x524   :  { %v2600_v45 = vpop.f32.mrf.mxu1  ;;  %v1034_v37 = vadd.f32 %v5532_v50, %v674_v1  ;;  %v5540_v7 = vld [vmem:[#allocation20_spill] sm:$0xff]  ;;  %v1120_v5 = vadd.f32 %v5515_v46, %v5541_v15  ;;  %v1126_v1 = vadd.f32 %v5515_v46, %v5544_v16  ;;  %v5545_v50 = vld [vmem:[#allocation27_spill] sm:$0xff] }
 0x525   :  { %2796 = vst.msk [vmem:[%s5381_s14 + $0x98] sm:$0xff] %vm223_vm0, %v2764_v12  ;;  %2731 = vst.msk [vmem:[%s5380_s16 + $0x90] sm:$0xff] %vm223_vm0, %v2686_v20  ;;  %v2763_v17 = vmul.f32 %v2686_v20, %v1104_v42  ;;  %3390 = vrcp.f32 %v2600_v45  ;;  %v1122_v40 = vadd.f32 %v5515_v46, %v5540_v7  ;;  %v5543_v45 = vld [vmem:[#allocation26_spill] sm:$0xff] }
 0x526   :  { %v1110_v35 = vadd.f32 %v5515_v46, %v1034_v37 }
 0x527   :  { %2795 = vst.msk [vmem:[%s5381_s14 + $0x90] sm:$0xff] %vm223_vm0, %v2763_v17 }
 0x52c   :  { %v3385_v10 = vpop.eup %3384 }
 0x52d   :  { %v2692_v18 = vmul.f32 %v3385_v10, %v4948_v51  ;;  %v1124_v10 = vadd.f32 %v5515_v46, %v5546_v52 }
 0x52e   :  { %v3387_v60 = vpop.eup %3386  ;;  %v3238_v54 = vpop.f32.mrf.mxu1 }
 0x52f   :  { %2734 = vst.msk [vmem:[%s5380_s16 + $0xa8] sm:$0xff] %vm223_vm0, %v2692_v18  ;;  %v2766_v53 = vmul.f32 %v2692_v18, %v1110_v35  ;;  %v2690_v32 = vmul.f32 %v3387_v60, %v4940_v6  ;;  %3392 = vrcp.f32 %v3238_v54 }
 0x530   :  { %v3389_v36 = vpop.eup %3388  ;;  %v2610_v44 = vpop.f32.mrf.mxu1 }
 0x531   :  { %2798 = vst.msk [vmem:[%s5381_s14 + $0xa8] sm:$0xff] %vm223_vm0, %v2766_v53  ;;  %2733 = vst.msk [vmem:[%s5380_s16 + $0xa0] sm:$0xff] %vm223_vm0, %v2690_v32  ;;  %v2765_v51 = vmul.f32 %v2690_v32, %v1108_v62  ;;  %v2696_v29 = vmul.f32 %v3389_v36, %v4955_v0  ;;  %3394 = vrcp.f32 %v2610_v44 }
 0x532   :  { %v3391_v6 = vpop.eup %3390  ;;  %v3241_v8 = vpop.f32.mrf.mxu1 }
 0x533   :  { %2797 = vst.msk [vmem:[%s5381_s14 + $0xa0] sm:$0xff] %vm223_vm0, %v2765_v51  ;;  %2736 = vst.msk [vmem:[%s5380_s16 + $0xb8] sm:$0xff] %vm223_vm0, %v2696_v29  ;;  %v2768_v3 = vmul.f32 %v2696_v29, %v1114_v2  ;;  %v2694_v39 = vmul.f32 %v3391_v6, %v4946_v57  ;;  %3396 = vrcp.f32 %v3241_v8 }
 0x534   :  { %v2620_v0 = vpop.f32.mrf.mxu1 }
 0x535   :  { %2800 = vst.msk [vmem:[%s5381_s14 + $0xb8] sm:$0xff] %vm223_vm0, %v2768_v3  ;;  %2735 = vst.msk [vmem:[%s5380_s16 + $0xb0] sm:$0xff] %vm223_vm0, %v2694_v39  ;;  %v2767_v31 = vmul.f32 %v2694_v39, %v1112_v28  ;;  %3398 = vrcp.f32 %v2620_v0 }
 0x537   :  { %2799 = vst.msk [vmem:[%s5381_s14 + $0xb0] sm:$0xff] %vm223_vm0, %v2767_v31 }
 0x53c   :  { %v3393_v57 = vpop.eup %3392 }
 0x53d   :  { %v2700_v24 = vmul.f32 %v3393_v57, %v4968_v49 }
 0x53e   :  { %v3395_v43 = vpop.eup %3394  ;;  %v3244_v63 = vpop.f32.mrf.mxu1 }
 0x53f   :  { %2738 = vst.msk [vmem:[%s5380_s16 + $0xc8] sm:$0xff] %vm223_vm0, %v2700_v24  ;;  %v2770_v22 = vmul.f32 %v2700_v24, %v1118_v19  ;;  %v2698_v26 = vmul.f32 %v3395_v43, %v4960_v30  ;;  %3400 = vrcp.f32 %v3244_v63 }
 0x540   :  { %v3397_v27 = vpop.eup %3396  ;;  %v2630_v55 = vpop.f32.mrf.mxu1 }
 0x541   :  { %2802 = vst.msk [vmem:[%s5381_s14 + $0xc8] sm:$0xff] %vm223_vm0, %v2770_v22  ;;  %2737 = vst.msk [vmem:[%s5380_s16 + $0xc0] sm:$0xff] %vm223_vm0, %v2698_v26  ;;  %v2769_v49 = vmul.f32 %v2698_v26, %v1116_v23  ;;  %v2704_v14 = vmul.f32 %v3397_v27, %v4975_v25  ;;  %3402 = vrcp.f32 %v2630_v55 }
 0x542   :  { %v3399_v30 = vpop.eup %3398  ;;  %v3247_v47 = vpop.f32.mrf.mxu1 }
 0x543   :  { %2801 = vst.msk [vmem:[%s5381_s14 + $0xc0] sm:$0xff] %vm223_vm0, %v2769_v49  ;;  %2740 = vst.msk [vmem:[%s5380_s16 + $0xd8] sm:$0xff] %vm223_vm0, %v2704_v14  ;;  %v2772_v42 = vmul.f32 %v2704_v14, %v1122_v40  ;;  %v2702_v12 = vmul.f32 %v3399_v30, %v4966_v13  ;;  %3404 = vrcp.f32 %v3247_v47  ;;  %v5542_v13 = vld [vmem:[#allocation67_spill] sm:$0xff] }
 0x544   :  { %v2640_v25 = vpop.f32.mrf.mxu1  ;;  %v724_v17 = vadd.f32 %v5543_v45, %v5542_v13 }
 0x545   :  { %2804 = vst.msk [vmem:[%s5381_s14 + $0xd8] sm:$0xff] %vm223_vm0, %v2772_v42  ;;  %2739 = vst.msk [vmem:[%s5380_s16 + $0xd0] sm:$0xff] %vm223_vm0, %v2702_v12  ;;  %v2771_v20 = vmul.f32 %v2702_v12, %v1120_v5  ;;  %3406 = vrcp.f32 %v2640_v25 }
 0x546   :  { %v1054_v37 = vadd.f32 %v5545_v50, %v724_v17 }
 0x547   :  { %2803 = vst.msk [vmem:[%s5381_s14 + $0xd0] sm:$0xff] %vm223_vm0, %v2771_v20 }
 0x548   :  { %v1130_v18 = vadd.f32 %v5515_v46, %v1054_v37 }
 0x54c   :  { %v3401_v56 = vpop.eup %3400 }
 0x54d   :  { %v2708_v21 = vmul.f32 %v3401_v56, %v4985_v58 }
 0x54e   :  { %v3403_v38 = vpop.eup %3402 }
 0x54f   :  { %2742 = vst.msk [vmem:[%s5380_s16 + $0xe8] sm:$0xff] %vm223_vm0, %v2708_v21  ;;  %v2774_v35 = vmul.f32 %v2708_v21, %v1126_v1  ;;  %v2706_v11 = vmul.f32 %v3403_v38, %v4979_v33  ;;  %v1128_v33 = vadd.f32 %v5515_v46, %v5547_v48 }
 0x550   :  { %v3405_v9 = vpop.eup %3404 }
 0x551   :  { %2806 = vst.msk [vmem:[%s5381_s14 + $0xe8] sm:$0xff] %vm223_vm0, %v2774_v35  ;;  %2741 = vst.msk [vmem:[%s5380_s16 + $0xe0] sm:$0xff] %vm223_vm0, %v2706_v11  ;;  %v2773_v58 = vmul.f32 %v2706_v11, %v1124_v10  ;;  %v2712_v60 = vmul.f32 %v3405_v9, %v4991_v34 }
 0x552   :  { %v3407_v54 = vpop.eup %3406 }
 0x553   :  { %2805 = vst.msk [vmem:[%s5381_s14 + $0xe0] sm:$0xff] %vm223_vm0, %v2773_v58  ;;  %2744 = vst.msk [vmem:[%s5380_s16 + $0xf8] sm:$0xff] %vm223_vm0, %v2712_v60  ;;  %v2776_v62 = vmul.f32 %v2712_v60, %v1130_v18  ;;  %v2710_v53 = vmul.f32 %v3407_v54, %v4983_v61 }
 0x555   :  { %2808 = vst.msk [vmem:[%s5381_s14 + $0xf8] sm:$0xff] %vm223_vm0, %v2776_v62  ;;  %2743 = vst.msk [vmem:[%s5380_s16 + $0xf0] sm:$0xff] %vm223_vm0, %v2710_v53  ;;  %v2775_v34 = vmul.f32 %v2710_v53, %v1128_v33 }
 0x557   :  { %2807 = vst.msk [vmem:[%s5381_s14 + $0xf0] sm:$0xff] %vm223_vm0, %v2775_v34 }

</bundles_post_ra>
